<compile_context>
chip_gen: v5e
topology: v5e:2x2
jax: 0.10.0
libtpu: 0.0.40
codegen_flags: <defaults>
</compile_context>

<pallas_src>
import functools

import numpy as np

import jax
import jax.numpy as jnp
from jax import lax
from jax.experimental import pallas as pl
from jax.experimental.pallas import tpu as pltpu


# ---------------------------------------------------------------------------
# Fixed Net1 geometry (fc1 = 320 = 20*4*4  =>  28x28x1 input).
# ---------------------------------------------------------------------------
_K = 5                       # conv kernel size
_H0 = _W0 = 28               # input spatial size
_C1 = 10                     # conv1 out channels
_H1 = _W1 = _H0 - _K + 1     # 24  conv1 valid output
_P1 = _H1 // 2               # 12  after 2x2 pool
_N1 = _W1 * _C1              # 240 conv1 matmul lanes: lane = wo*C1 + co
_S1 = _N1 - _C1              # 230 pooled "sparse" lanes: valid at 2*C1*g + ci
_C2 = 20                     # conv2 out channels
_H2 = _W2 = _P1 - _K + 1     # 8
_P2 = _H2 // 2               # 4
_N2 = _W2 * _C2              # 160 conv2 matmul lanes: lane = wo*C2 + co
_S2 = _N2 - _C2              # 140 pooled "sparse" lanes: valid at 2*C2*g + co
_NF1 = 50                    # fc1 hidden size
_B_TILE = 64                 # images per grid step (fits default scoped VMEM
                             # on v5e/v6e/v7x with headroom; >=2 steps for
                             # realistic batches so v7x megacore is used)


# ---------------------------------------------------------------------------
# The single fused forward kernel (one batch tile per grid step)
# ---------------------------------------------------------------------------
def _net1_fused_kernel(x_ref, t1_ref, b1_ref, t2_ref, b2_ref,
                       fc1_ref, fc1b_ref, fc2_ref, fc2b_ref,
                       logits_ref, e1_ref):
    B = x_ref.shape[0]
    x = x_ref[...]                                        # (B, 28, 28), lanes = W

    # ---- conv1 (5x5 valid): 5 width-Toeplitz MXU matmuls over kh ----------
    acc1 = jnp.zeros((B * _H1, _N1), jnp.float32)         # lane = wo*10 + co
    for kh in range(_K):
        slab = x[:, kh:kh + _H1, :].reshape(B * _H1, _W0)
        acc1 = acc1 + jnp.dot(slab, t1_ref[kh],
                              preferred_element_type=jnp.float32)

    # ---- 2x2 max-pool + bias + ReLU (bias commutes with max-pool) ---------
    r1 = acc1.reshape(B, _P1, 2, _N1)
    hp = jnp.maximum(r1[:, :, 0, :], r1[:, :, 1, :])      # H-pool  (B, 12, 240)
    m1 = jnp.maximum(hp[:, :, :_S1], hp[:, :, _C1:])      # W-pool  (B, 12, 230)
    h1 = jnp.maximum(m1 + b1_ref[...], 0.0)               # valid lanes: 20*g + ci

    # ---- conv2 (5x5 valid) on the sparse lane layout -----------------------
    acc2 = jnp.zeros((B * _H2, _N2), jnp.float32)         # lane = wo*20 + co
    for kh in range(_K):
        slab = h1[:, kh:kh + _H2, :].reshape(B * _H2, _S1)
        acc2 = acc2 + jnp.dot(slab, t2_ref[kh],
                              preferred_element_type=jnp.float32)

    r2 = acc2.reshape(B, _P2, 2, _N2)
    hp2 = jnp.maximum(r2[:, :, 0, :], r2[:, :, 1, :])     # (B, 4, 160)
    m2 = jnp.maximum(hp2[:, :, :_S2], hp2[:, :, _C2:])    # (B, 4, 140)
    h2 = jnp.maximum(m2 + b2_ref[...], 0.0)               # valid lanes: 40*w + co

    # ---- fc1 + relu: contract the 4 pooled rows with sparse-row weights ----
    acc3 = jnp.zeros((B, _NF1), jnp.float32)
    for h in range(_P2):
        acc3 = acc3 + jnp.dot(h2[:, h, :], fc1_ref[h],
                              preferred_element_type=jnp.float32)
    e1 = jnp.maximum(acc3 + fc1b_ref[...], 0.0)
    e1_ref[...] = e1

    # TODO(synk): F.dropout(e1) is eval-mode identity here.
    logits_ref[...] = (jnp.dot(e1, fc2_ref[...],
                               preferred_element_type=jnp.float32)
                       + fc2b_ref[...])


# ---------------------------------------------------------------------------
# Small plain linear kernel (only for the embedding=True branch: fc2 alone)
# ---------------------------------------------------------------------------
def _linear_kernel(x_ref, w_ref, b_ref, o_ref):
    o_ref[...] = jnp.dot(x_ref[...], w_ref[...],
                         preferred_element_type=jnp.float32) + b_ref[...]


def pallas_linear(x, w, b_row, *, tile_m=1024):
    M, K = x.shape
    N = w.shape[1]
    tm = M if M <= tile_m else tile_m
    return pl.pallas_call(
        _linear_kernel,
        out_shape=jax.ShapeDtypeStruct((M, N), jnp.float32),
        grid=(pl.cdiv(M, tm),),
        in_specs=[pl.BlockSpec((tm, K), lambda i: (i, 0)),
                  pl.BlockSpec((K, N), lambda i: (0, 0)),
                  pl.BlockSpec((1, N), lambda i: (0, 0))],
        out_specs=pl.BlockSpec((tm, N), lambda i: (i, 0)),
        compiler_params=pltpu.CompilerParams(dimension_semantics=("parallel",)),
    )(x, w, b_row)


# ---------------------------------------------------------------------------
# Parameters (deterministic PyTorch-default-style uniform init) + prep
# ---------------------------------------------------------------------------
def init_params(key):
    def uniform(k, shape, fan_in):
        bound = 1.0 / jnp.sqrt(float(fan_in))
        return jax.random.uniform(k, shape, jnp.float32, -bound, bound)

    ks = jax.random.split(key, 8)
    return {
        "conv1_w": uniform(ks[0], (10, 1, 5, 5), 1 * 25),
        "conv1_b": uniform(ks[1], (10,), 1 * 25),
        "conv2_w": uniform(ks[2], (20, 10, 5, 5), 10 * 25),
        "conv2_b": uniform(ks[3], (20,), 10 * 25),
        "fc1_w": uniform(ks[4], (320, 50), 320),   # rows in PyTorch CHW order
        "fc1_b": uniform(ks[5], (50,), 320),
        "fc2_w": uniform(ks[6], (50, 10), 50),
        "fc2_b": uniform(ks[7], (10,), 50),
    }


def _width_toeplitz(w_kh, n_in_rows, in_stride, w_out):
    """Banded matrix for a 1D (width) conv at a fixed kh.

    w_kh: (Cout, Cin, K) numpy weights (indexed [co, ci, kw]).
    Returns T of shape (n_in_rows, w_out*Cout) with
      T[in_stride*(wo+kw) + ci, wo*Cout + co] = w_kh[co, ci, kw]
    and zeros elsewhere (unused / garbage input lanes hit zero rows).
    """
    cout, cin, k = w_kh.shape
    t = np.zeros((n_in_rows, w_out * cout), np.float32)
    for wo in range(w_out):
        for kw in range(k):
            for ci in range(cin):
                t[in_stride * (wo + kw) + ci,
                  wo * cout:(wo + 1) * cout] = w_kh[:, ci, kw]
    return t


def prepare_pallas_params(p):
    """One-time host-side re-layout of the weights for the fused kernel."""
    w1 = np.asarray(p["conv1_w"], np.float32)    # (10, 1, 5, 5)
    b1 = np.asarray(p["conv1_b"], np.float32)    # (10,)
    w2 = np.asarray(p["conv2_w"], np.float32)    # (20, 10, 5, 5)
    b2 = np.asarray(p["conv2_b"], np.float32)    # (20,)
    fc1w = np.asarray(p["fc1_w"], np.float32)    # (320, 50), PyTorch CHW rows
    fc1b = np.asarray(p["fc1_b"], np.float32)
    fc2w = np.asarray(p["fc2_w"], np.float32)
    fc2b = np.asarray(p["fc2_b"], np.float32)

    # conv1: input lane = w (Cin=1), output lane = wo*C1 + co
    t1 = np.stack([_width_toeplitz(w1[:, :, kh, :], _W0, 1, _W1)
                   for kh in range(_K)])                       # (5, 28, 240)
    # conv2: input lane = 2*C1*g + ci (sparse pooled layout), out lane = wo*C2+co
    t2 = np.stack([_width_toeplitz(w2[:, :, kh, :], _S1, 2 * _C1, _W2)
                   for kh in range(_K)])                       # (5, 230, 160)

    # biases replicated into the sparse pooled lane layouts
    b1s = np.tile(np.concatenate([b1, np.zeros(_C1, np.float32)]),
                  _P1)[:_S1].reshape(1, _S1)                   # (1, 230)
    b2s = np.tile(np.concatenate([b2, np.zeros(_C2, np.float32)]),
                  _P2)[:_S2].reshape(1, _S2)                   # (1, 140)

    # fc1 rows permuted (PyTorch CHW flatten -> per-h sparse lane layout)
    fc1s = np.zeros((_P2, _S2, _NF1), np.float32)
    for h in range(_P2):
        for w in range(_P2):
            for c in range(_C2):
                fc1s[h, 2 * _C2 * w + c, :] = fc1w[c * 16 + h * 4 + w, :]

    out = dict(t1=t1, b1s=b1s, t2=t2, b2s=b2s, fc1s=fc1s,
               fc1_b=fc1b.reshape(1, -1), fc2_w=fc2w,
               fc2_b=fc2b.reshape(1, -1))
    return {k: jnp.asarray(v) for k, v in out.items()}


# ---------------------------------------------------------------------------
# Net1 forward (eval mode)
# ---------------------------------------------------------------------------
def net1_forward(pp, x, embedding=False):
    """Returns (logits, e1) exactly like Net1.forward (eval-mode dropout)."""
    if embedding:
        e1 = x
        logits = pallas_linear(e1, pp["fc2_w"], pp["fc2_b"])
        return logits, e1

    N = x.shape[0]
    assert x.shape[1:] == (1, _H0, _W0)
    n_label = pp["fc2_w"].shape[1]
    xs = x.reshape(N, _H0, _W0)                 # squeeze the single channel
    bt = N if N <= _B_TILE else _B_TILE

    logits, e1 = pl.pallas_call(
        _net1_fused_kernel,
        out_shape=(jax.ShapeDtypeStruct((N, n_label), jnp.float32),
                   jax.ShapeDtypeStruct((N, _NF1), jnp.float32)),
        grid=(pl.cdiv(N, bt),),
        in_specs=[
            pl.BlockSpec((bt, _H0, _W0), lambda n: (n, 0, 0)),
            pl.BlockSpec((_K, _W0, _N1), lambda n: (0, 0, 0)),
            pl.BlockSpec((1, _S1), lambda n: (0, 0)),
            pl.BlockSpec((_K, _S1, _N2), lambda n: (0, 0, 0)),
            pl.BlockSpec((1, _S2), lambda n: (0, 0)),
            pl.BlockSpec((_P2, _S2, _NF1), lambda n: (0, 0, 0)),
            pl.BlockSpec((1, _NF1), lambda n: (0, 0)),
            pl.BlockSpec((_NF1, n_label), lambda n: (0, 0)),
            pl.BlockSpec((1, n_label), lambda n: (0, 0)),
        ],
        out_specs=(pl.BlockSpec((bt, n_label), lambda n: (n, 0)),
                   pl.BlockSpec((bt, _NF1), lambda n: (n, 0))),
        compiler_params=pltpu.CompilerParams(
            dimension_semantics=("parallel",),
            vmem_limit_bytes=32 * 1024 * 1024),
    )(xs, pp["t1"], pp["b1s"], pp["t2"], pp["b2s"],
      pp["fc1s"], pp["fc1_b"], pp["fc2_w"], pp["fc2_b"])
    return logits, e1


# ---------------------------------------------------------------------------
# Pure-JAX reference (sanity check)
# ---------------------------------------------------------------------------
def net1_reference(params, x_nchw):
    def conv(x, w, b):
        y = lax.conv_general_dilated(
            x, w, window_strides=(1, 1), padding="VALID",
            dimension_numbers=("NCHW", "OIHW", "NCHW"))
        return y + b[None, :, None, None]

    def pool(x):
        return lax.reduce_window(x, -jnp.inf, lax.max,
                                 (1, 1, 2, 2), (1, 1, 2, 2), "VALID")

    h = jax.nn.relu(pool(conv(x_nchw, params["conv1_w"], params["conv1_b"])))
    h = jax.nn.relu(pool(conv(h, params["conv2_w"], params["conv2_b"])))
    h = h.reshape(-1, 320)                                 # CHW flatten (PyTorch)
    e1 = jax.nn.relu(h @ params["fc1_w"] + params["fc1_b"])
    logits = e1 @ params["fc2_w"] + params["fc2_b"]
    return logits, e1


# ---------------------------------------------------------------------------
if __name__ == "__main__":
    key = jax.random.PRNGKey(0)
    pkey, xkey = jax.random.split(key)
    params = init_params(pkey)
    pparams = prepare_pallas_params(params)

    # 320 = 20 * 4 * 4 implies a 28x28 single-channel input (MNIST-style).
    x = jax.random.normal(xkey, (2, 1, 28, 28), jnp.float32)

    fwd = jax.jit(functools.partial(net1_forward, pparams))
    logits, e1 = fwd(x)
    jax.block_until_ready((logits, e1))
    assert logits.shape == (2, 10) and e1.shape == (2, 50)

    ref_logits, ref_e1 = jax.jit(functools.partial(net1_reference, params))(x)
    assert jnp.allclose(logits, ref_logits, rtol=2e-2, atol=2e-2)
    assert jnp.allclose(e1, ref_e1, rtol=2e-2, atol=2e-2)

    # embedding=True branch: e1 passed straight to fc2 (dropout = identity).
    emb_fwd = jax.jit(functools.partial(net1_forward, pparams, embedding=True))
    emb_logits, emb_e1 = emb_fwd(e1)
    jax.block_until_ready((emb_logits, emb_e1))
    ref_emb = e1 @ params["fc2_w"] + params["fc2_b"]
    assert jnp.allclose(emb_logits, ref_emb, rtol=2e-2, atol=2e-2)
    assert emb_e1.shape == (2, 50)

    print("KERNEL_OK")
</pallas_src>

<mosaic_0001>
module attributes {stable_mosaic.version = 11 : i64} {
  func.func @_net1_fused_kernel(%arg0: i32, %arg1: memref<2x28x28xf32, #tpu.memory_space<vmem>>, %arg2: memref<5x28x240xf32, #tpu.memory_space<vmem>>, %arg3: memref<1x230xf32, #tpu.memory_space<vmem>>, %arg4: memref<5x230x160xf32, #tpu.memory_space<vmem>>, %arg5: memref<1x140xf32, #tpu.memory_space<vmem>>, %arg6: memref<4x140x50xf32, #tpu.memory_space<vmem>>, %arg7: memref<1x50xf32, #tpu.memory_space<vmem>>, %arg8: memref<50x10xf32, #tpu.memory_space<vmem>>, %arg9: memref<1x10xf32, #tpu.memory_space<vmem>>, %arg10: memref<2x10xf32, #tpu.memory_space<vmem>>, %arg11: memref<2x50xf32, #tpu.memory_space<vmem>>) attributes {dimension_semantics = [#tpu.dimension_semantics<parallel>], iteration_bounds = array<i64: 1>, scalar_prefetch = 0 : i64, scratch_operands = 0 : i64, tpu.core_type = #tpu.core_type<tc>, window_params = [{transform_indices = @transform_0, window_bounds = array<i64: 2, 28, 28>}, {pipeline_mode = #tpu.pipeline_mode<synchronous>, transform_indices = @transform_1, window_bounds = array<i64: 5, 28, 240>}, {pipeline_mode = #tpu.pipeline_mode<synchronous>, transform_indices = @transform_2, window_bounds = array<i64: 1, 230>}, {pipeline_mode = #tpu.pipeline_mode<synchronous>, transform_indices = @transform_3, window_bounds = array<i64: 5, 230, 160>}, {pipeline_mode = #tpu.pipeline_mode<synchronous>, transform_indices = @transform_4, window_bounds = array<i64: 1, 140>}, {pipeline_mode = #tpu.pipeline_mode<synchronous>, transform_indices = @transform_5, window_bounds = array<i64: 4, 140, 50>}, {pipeline_mode = #tpu.pipeline_mode<synchronous>, transform_indices = @transform_6, window_bounds = array<i64: 1, 50>}, {pipeline_mode = #tpu.pipeline_mode<synchronous>, transform_indices = @transform_7, window_bounds = array<i64: 50, 10>}, {pipeline_mode = #tpu.pipeline_mode<synchronous>, transform_indices = @transform_8, window_bounds = array<i64: 1, 10>}, {transform_indices = @transform_9, window_bounds = array<i64: 2, 10>}, {transform_indices = @transform_10, window_bounds = array<i64: 2, 50>}]} {
    %c0 = arith.constant 0 : index
    %c0_0 = arith.constant 0 : index
    %c0_1 = arith.constant 0 : index
    %0 = vector.load %arg1[%c0, %c0_0, %c0_1] : memref<2x28x28xf32, #tpu.memory_space<vmem>>, vector<2x28x28xf32>
    %cst = arith.constant 0.000000e+00 : f32
    %1 = vector.broadcast %cst : f32 to vector<48x240xf32>
    %2 = vector.extract_strided_slice %0 {offsets = [0, 0, 0], sizes = [2, 24, 28], strides = [1, 1, 1]} : vector<2x28x28xf32> to vector<2x24x28xf32>
    %3 = vector.shape_cast %2 : vector<2x24x28xf32> to vector<48x28xf32>
    %c0_2 = arith.constant 0 : index
    %c0_3 = arith.constant 0 : index
    %c0_4 = arith.constant 0 : index
    %4 = vector.load %arg2[%c0_2, %c0_3, %c0_4] : memref<5x28x240xf32, #tpu.memory_space<vmem>>, vector<1x28x240xf32>
    %5 = vector.shape_cast %4 : vector<1x28x240xf32> to vector<28x240xf32>
    %cst_5 = arith.constant dense<0.000000e+00> : vector<48x240xf32>
    %6 = tpu.matmul %3, %5, %cst_5 {dimension_numbers = #tpu.dot_dimension_numbers<[1], [0], [0], [1], [0, 0, 1, 1], [], []>} : vector<48x28xf32>, vector<28x240xf32>, vector<48x240xf32> -> vector<48x240xf32>
    %7 = arith.addf %1, %6 : vector<48x240xf32>
    %8 = vector.extract_strided_slice %0 {offsets = [0, 1, 0], sizes = [2, 24, 28], strides = [1, 1, 1]} : vector<2x28x28xf32> to vector<2x24x28xf32>
    %9 = vector.shape_cast %8 : vector<2x24x28xf32> to vector<48x28xf32>
    %c1 = arith.constant 1 : index
    %c0_6 = arith.constant 0 : index
    %c0_7 = arith.constant 0 : index
    %10 = vector.load %arg2[%c1, %c0_6, %c0_7] : memref<5x28x240xf32, #tpu.memory_space<vmem>>, vector<1x28x240xf32>
    %11 = vector.shape_cast %10 : vector<1x28x240xf32> to vector<28x240xf32>
    %cst_8 = arith.constant dense<0.000000e+00> : vector<48x240xf32>
    %12 = tpu.matmul %9, %11, %cst_8 {dimension_numbers = #tpu.dot_dimension_numbers<[1], [0], [0], [1], [0, 0, 1, 1], [], []>} : vector<48x28xf32>, vector<28x240xf32>, vector<48x240xf32> -> vector<48x240xf32>
    %13 = arith.addf %7, %12 : vector<48x240xf32>
    %14 = vector.extract_strided_slice %0 {offsets = [0, 2, 0], sizes = [2, 24, 28], strides = [1, 1, 1]} : vector<2x28x28xf32> to vector<2x24x28xf32>
    %15 = vector.shape_cast %14 : vector<2x24x28xf32> to vector<48x28xf32>
    %c2 = arith.constant 2 : index
    %c0_9 = arith.constant 0 : index
    %c0_10 = arith.constant 0 : index
    %16 = vector.load %arg2[%c2, %c0_9, %c0_10] : memref<5x28x240xf32, #tpu.memory_space<vmem>>, vector<1x28x240xf32>
    %17 = vector.shape_cast %16 : vector<1x28x240xf32> to vector<28x240xf32>
    %cst_11 = arith.constant dense<0.000000e+00> : vector<48x240xf32>
    %18 = tpu.matmul %15, %17, %cst_11 {dimension_numbers = #tpu.dot_dimension_numbers<[1], [0], [0], [1], [0, 0, 1, 1], [], []>} : vector<48x28xf32>, vector<28x240xf32>, vector<48x240xf32> -> vector<48x240xf32>
    %19 = arith.addf %13, %18 : vector<48x240xf32>
    %20 = vector.extract_strided_slice %0 {offsets = [0, 3, 0], sizes = [2, 24, 28], strides = [1, 1, 1]} : vector<2x28x28xf32> to vector<2x24x28xf32>
    %21 = vector.shape_cast %20 : vector<2x24x28xf32> to vector<48x28xf32>
    %c3 = arith.constant 3 : index
    %c0_12 = arith.constant 0 : index
    %c0_13 = arith.constant 0 : index
    %22 = vector.load %arg2[%c3, %c0_12, %c0_13] : memref<5x28x240xf32, #tpu.memory_space<vmem>>, vector<1x28x240xf32>
    %23 = vector.shape_cast %22 : vector<1x28x240xf32> to vector<28x240xf32>
    %cst_14 = arith.constant dense<0.000000e+00> : vector<48x240xf32>
    %24 = tpu.matmul %21, %23, %cst_14 {dimension_numbers = #tpu.dot_dimension_numbers<[1], [0], [0], [1], [0, 0, 1, 1], [], []>} : vector<48x28xf32>, vector<28x240xf32>, vector<48x240xf32> -> vector<48x240xf32>
    %25 = arith.addf %19, %24 : vector<48x240xf32>
    %26 = vector.extract_strided_slice %0 {offsets = [0, 4, 0], sizes = [2, 24, 28], strides = [1, 1, 1]} : vector<2x28x28xf32> to vector<2x24x28xf32>
    %27 = vector.shape_cast %26 : vector<2x24x28xf32> to vector<48x28xf32>
    %c4 = arith.constant 4 : index
    %c0_15 = arith.constant 0 : index
    %c0_16 = arith.constant 0 : index
    %28 = vector.load %arg2[%c4, %c0_15, %c0_16] : memref<5x28x240xf32, #tpu.memory_space<vmem>>, vector<1x28x240xf32>
    %29 = vector.shape_cast %28 : vector<1x28x240xf32> to vector<28x240xf32>
    %cst_17 = arith.constant dense<0.000000e+00> : vector<48x240xf32>
    %30 = tpu.matmul %27, %29, %cst_17 {dimension_numbers = #tpu.dot_dimension_numbers<[1], [0], [0], [1], [0, 0, 1, 1], [], []>} : vector<48x28xf32>, vector<28x240xf32>, vector<48x240xf32> -> vector<48x240xf32>
    %31 = arith.addf %25, %30 : vector<48x240xf32>
    %32 = vector.shape_cast %31 : vector<48x240xf32> to vector<2x12x2x240xf32>
    %33 = vector.extract_strided_slice %32 {offsets = [0, 0, 0, 0], sizes = [2, 12, 1, 240], strides = [1, 1, 1, 1]} : vector<2x12x2x240xf32> to vector<2x12x1x240xf32>
    %34 = vector.shape_cast %33 : vector<2x12x1x240xf32> to vector<2x12x240xf32>
    %35 = vector.extract_strided_slice %32 {offsets = [0, 0, 1, 0], sizes = [2, 12, 1, 240], strides = [1, 1, 1, 1]} : vector<2x12x2x240xf32> to vector<2x12x1x240xf32>
    %36 = vector.shape_cast %35 : vector<2x12x1x240xf32> to vector<2x12x240xf32>
    %37 = arith.maximumf %34, %36 : vector<2x12x240xf32>
    %38 = vector.extract_strided_slice %37 {offsets = [0, 0, 0], sizes = [2, 12, 230], strides = [1, 1, 1]} : vector<2x12x240xf32> to vector<2x12x230xf32>
    %39 = vector.extract_strided_slice %37 {offsets = [0, 0, 10], sizes = [2, 12, 230], strides = [1, 1, 1]} : vector<2x12x240xf32> to vector<2x12x230xf32>
    %40 = arith.maximumf %38, %39 : vector<2x12x230xf32>
    %c0_18 = arith.constant 0 : index
    %c0_19 = arith.constant 0 : index
    %41 = vector.load %arg3[%c0_18, %c0_19] : memref<1x230xf32, #tpu.memory_space<vmem>>, vector<1x230xf32>
    %42 = vector.shape_cast %41 : vector<1x230xf32> to vector<1x1x230xf32>
    %43 = vector.broadcast %42 : vector<1x1x230xf32> to vector<2x12x230xf32>
    %44 = arith.addf %40, %43 : vector<2x12x230xf32>
    %cst_20 = arith.constant 0.000000e+00 : f32
    %45 = vector.broadcast %cst_20 : f32 to vector<2x12x230xf32>
    %46 = arith.maximumf %44, %45 : vector<2x12x230xf32>
    %cst_21 = arith.constant 0.000000e+00 : f32
    %47 = vector.broadcast %cst_21 : f32 to vector<16x160xf32>
    %48 = vector.extract_strided_slice %46 {offsets = [0, 0, 0], sizes = [2, 8, 230], strides = [1, 1, 1]} : vector<2x12x230xf32> to vector<2x8x230xf32>
    %49 = vector.shape_cast %48 : vector<2x8x230xf32> to vector<16x230xf32>
    %c0_22 = arith.constant 0 : index
    %c0_23 = arith.constant 0 : index
    %c0_24 = arith.constant 0 : index
    %50 = vector.load %arg4[%c0_22, %c0_23, %c0_24] : memref<5x230x160xf32, #tpu.memory_space<vmem>>, vector<1x230x160xf32>
    %51 = vector.shape_cast %50 : vector<1x230x160xf32> to vector<230x160xf32>
    %cst_25 = arith.constant dense<0.000000e+00> : vector<16x160xf32>
    %52 = tpu.matmul %49, %51, %cst_25 {dimension_numbers = #tpu.dot_dimension_numbers<[1], [0], [0], [1], [0, 0, 1, 1], [], []>} : vector<16x230xf32>, vector<230x160xf32>, vector<16x160xf32> -> vector<16x160xf32>
    %53 = arith.addf %47, %52 : vector<16x160xf32>
    %54 = vector.extract_strided_slice %46 {offsets = [0, 1, 0], sizes = [2, 8, 230], strides = [1, 1, 1]} : vector<2x12x230xf32> to vector<2x8x230xf32>
    %55 = vector.shape_cast %54 : vector<2x8x230xf32> to vector<16x230xf32>
    %c1_26 = arith.constant 1 : index
    %c0_27 = arith.constant 0 : index
    %c0_28 = arith.constant 0 : index
    %56 = vector.load %arg4[%c1_26, %c0_27, %c0_28] : memref<5x230x160xf32, #tpu.memory_space<vmem>>, vector<1x230x160xf32>
    %57 = vector.shape_cast %56 : vector<1x230x160xf32> to vector<230x160xf32>
    %cst_29 = arith.constant dense<0.000000e+00> : vector<16x160xf32>
    %58 = tpu.matmul %55, %57, %cst_29 {dimension_numbers = #tpu.dot_dimension_numbers<[1], [0], [0], [1], [0, 0, 1, 1], [], []>} : vector<16x230xf32>, vector<230x160xf32>, vector<16x160xf32> -> vector<16x160xf32>
    %59 = arith.addf %53, %58 : vector<16x160xf32>
    %60 = vector.extract_strided_slice %46 {offsets = [0, 2, 0], sizes = [2, 8, 230], strides = [1, 1, 1]} : vector<2x12x230xf32> to vector<2x8x230xf32>
    %61 = vector.shape_cast %60 : vector<2x8x230xf32> to vector<16x230xf32>
    %c2_30 = arith.constant 2 : index
    %c0_31 = arith.constant 0 : index
    %c0_32 = arith.constant 0 : index
    %62 = vector.load %arg4[%c2_30, %c0_31, %c0_32] : memref<5x230x160xf32, #tpu.memory_space<vmem>>, vector<1x230x160xf32>
    %63 = vector.shape_cast %62 : vector<1x230x160xf32> to vector<230x160xf32>
    %cst_33 = arith.constant dense<0.000000e+00> : vector<16x160xf32>
    %64 = tpu.matmul %61, %63, %cst_33 {dimension_numbers = #tpu.dot_dimension_numbers<[1], [0], [0], [1], [0, 0, 1, 1], [], []>} : vector<16x230xf32>, vector<230x160xf32>, vector<16x160xf32> -> vector<16x160xf32>
    %65 = arith.addf %59, %64 : vector<16x160xf32>
    %66 = vector.extract_strided_slice %46 {offsets = [0, 3, 0], sizes = [2, 8, 230], strides = [1, 1, 1]} : vector<2x12x230xf32> to vector<2x8x230xf32>
    %67 = vector.shape_cast %66 : vector<2x8x230xf32> to vector<16x230xf32>
    %c3_34 = arith.constant 3 : index
    %c0_35 = arith.constant 0 : index
    %c0_36 = arith.constant 0 : index
    %68 = vector.load %arg4[%c3_34, %c0_35, %c0_36] : memref<5x230x160xf32, #tpu.memory_space<vmem>>, vector<1x230x160xf32>
    %69 = vector.shape_cast %68 : vector<1x230x160xf32> to vector<230x160xf32>
    %cst_37 = arith.constant dense<0.000000e+00> : vector<16x160xf32>
    %70 = tpu.matmul %67, %69, %cst_37 {dimension_numbers = #tpu.dot_dimension_numbers<[1], [0], [0], [1], [0, 0, 1, 1], [], []>} : vector<16x230xf32>, vector<230x160xf32>, vector<16x160xf32> -> vector<16x160xf32>
    %71 = arith.addf %65, %70 : vector<16x160xf32>
    %72 = vector.extract_strided_slice %46 {offsets = [0, 4, 0], sizes = [2, 8, 230], strides = [1, 1, 1]} : vector<2x12x230xf32> to vector<2x8x230xf32>
    %73 = vector.shape_cast %72 : vector<2x8x230xf32> to vector<16x230xf32>
    %c4_38 = arith.constant 4 : index
    %c0_39 = arith.constant 0 : index
    %c0_40 = arith.constant 0 : index
    %74 = vector.load %arg4[%c4_38, %c0_39, %c0_40] : memref<5x230x160xf32, #tpu.memory_space<vmem>>, vector<1x230x160xf32>
    %75 = vector.shape_cast %74 : vector<1x230x160xf32> to vector<230x160xf32>
    %cst_41 = arith.constant dense<0.000000e+00> : vector<16x160xf32>
    %76 = tpu.matmul %73, %75, %cst_41 {dimension_numbers = #tpu.dot_dimension_numbers<[1], [0], [0], [1], [0, 0, 1, 1], [], []>} : vector<16x230xf32>, vector<230x160xf32>, vector<16x160xf32> -> vector<16x160xf32>
    %77 = arith.addf %71, %76 : vector<16x160xf32>
    %78 = vector.shape_cast %77 : vector<16x160xf32> to vector<2x4x2x160xf32>
    %79 = vector.extract_strided_slice %78 {offsets = [0, 0, 0, 0], sizes = [2, 4, 1, 160], strides = [1, 1, 1, 1]} : vector<2x4x2x160xf32> to vector<2x4x1x160xf32>
    %80 = vector.shape_cast %79 : vector<2x4x1x160xf32> to vector<2x4x160xf32>
    %81 = vector.extract_strided_slice %78 {offsets = [0, 0, 1, 0], sizes = [2, 4, 1, 160], strides = [1, 1, 1, 1]} : vector<2x4x2x160xf32> to vector<2x4x1x160xf32>
    %82 = vector.shape_cast %81 : vector<2x4x1x160xf32> to vector<2x4x160xf32>
    %83 = arith.maximumf %80, %82 : vector<2x4x160xf32>
    %84 = vector.extract_strided_slice %83 {offsets = [0, 0, 0], sizes = [2, 4, 140], strides = [1, 1, 1]} : vector<2x4x160xf32> to vector<2x4x140xf32>
    %85 = vector.extract_strided_slice %83 {offsets = [0, 0, 20], sizes = [2, 4, 140], strides = [1, 1, 1]} : vector<2x4x160xf32> to vector<2x4x140xf32>
    %86 = arith.maximumf %84, %85 : vector<2x4x140xf32>
    %c0_42 = arith.constant 0 : index
    %c0_43 = arith.constant 0 : index
    %87 = vector.load %arg5[%c0_42, %c0_43] : memref<1x140xf32, #tpu.memory_space<vmem>>, vector<1x140xf32>
    %88 = vector.shape_cast %87 : vector<1x140xf32> to vector<1x1x140xf32>
    %89 = vector.broadcast %88 : vector<1x1x140xf32> to vector<2x4x140xf32>
    %90 = arith.addf %86, %89 : vector<2x4x140xf32>
    %cst_44 = arith.constant 0.000000e+00 : f32
    %91 = vector.broadcast %cst_44 : f32 to vector<2x4x140xf32>
    %92 = arith.maximumf %90, %91 : vector<2x4x140xf32>
    %cst_45 = arith.constant 0.000000e+00 : f32
    %93 = vector.broadcast %cst_45 : f32 to vector<2x50xf32>
    %94 = vector.extract_strided_slice %92 {offsets = [0, 0, 0], sizes = [2, 1, 140], strides = [1, 1, 1]} : vector<2x4x140xf32> to vector<2x1x140xf32>
    %95 = vector.shape_cast %94 : vector<2x1x140xf32> to vector<2x140xf32>
    %c0_46 = arith.constant 0 : index
    %c0_47 = arith.constant 0 : index
    %c0_48 = arith.constant 0 : index
    %96 = vector.load %arg6[%c0_46, %c0_47, %c0_48] : memref<4x140x50xf32, #tpu.memory_space<vmem>>, vector<1x140x50xf32>
    %97 = vector.shape_cast %96 : vector<1x140x50xf32> to vector<140x50xf32>
    %cst_49 = arith.constant dense<0.000000e+00> : vector<2x50xf32>
    %98 = tpu.matmul %95, %97, %cst_49 {dimension_numbers = #tpu.dot_dimension_numbers<[1], [0], [0], [1], [0, 0, 1, 1], [], []>} : vector<2x140xf32>, vector<140x50xf32>, vector<2x50xf32> -> vector<2x50xf32>
    %99 = arith.addf %93, %98 : vector<2x50xf32>
    %100 = vector.extract_strided_slice %92 {offsets = [0, 1, 0], sizes = [2, 1, 140], strides = [1, 1, 1]} : vector<2x4x140xf32> to vector<2x1x140xf32>
    %101 = vector.shape_cast %100 : vector<2x1x140xf32> to vector<2x140xf32>
    %c1_50 = arith.constant 1 : index
    %c0_51 = arith.constant 0 : index
    %c0_52 = arith.constant 0 : index
    %102 = vector.load %arg6[%c1_50, %c0_51, %c0_52] : memref<4x140x50xf32, #tpu.memory_space<vmem>>, vector<1x140x50xf32>
    %103 = vector.shape_cast %102 : vector<1x140x50xf32> to vector<140x50xf32>
    %cst_53 = arith.constant dense<0.000000e+00> : vector<2x50xf32>
    %104 = tpu.matmul %101, %103, %cst_53 {dimension_numbers = #tpu.dot_dimension_numbers<[1], [0], [0], [1], [0, 0, 1, 1], [], []>} : vector<2x140xf32>, vector<140x50xf32>, vector<2x50xf32> -> vector<2x50xf32>
    %105 = arith.addf %99, %104 : vector<2x50xf32>
    %106 = vector.extract_strided_slice %92 {offsets = [0, 2, 0], sizes = [2, 1, 140], strides = [1, 1, 1]} : vector<2x4x140xf32> to vector<2x1x140xf32>
    %107 = vector.shape_cast %106 : vector<2x1x140xf32> to vector<2x140xf32>
    %c2_54 = arith.constant 2 : index
    %c0_55 = arith.constant 0 : index
    %c0_56 = arith.constant 0 : index
    %108 = vector.load %arg6[%c2_54, %c0_55, %c0_56] : memref<4x140x50xf32, #tpu.memory_space<vmem>>, vector<1x140x50xf32>
    %109 = vector.shape_cast %108 : vector<1x140x50xf32> to vector<140x50xf32>
    %cst_57 = arith.constant dense<0.000000e+00> : vector<2x50xf32>
    %110 = tpu.matmul %107, %109, %cst_57 {dimension_numbers = #tpu.dot_dimension_numbers<[1], [0], [0], [1], [0, 0, 1, 1], [], []>} : vector<2x140xf32>, vector<140x50xf32>, vector<2x50xf32> -> vector<2x50xf32>
    %111 = arith.addf %105, %110 : vector<2x50xf32>
    %112 = vector.extract_strided_slice %92 {offsets = [0, 3, 0], sizes = [2, 1, 140], strides = [1, 1, 1]} : vector<2x4x140xf32> to vector<2x1x140xf32>
    %113 = vector.shape_cast %112 : vector<2x1x140xf32> to vector<2x140xf32>
    %c3_58 = arith.constant 3 : index
    %c0_59 = arith.constant 0 : index
    %c0_60 = arith.constant 0 : index
    %114 = vector.load %arg6[%c3_58, %c0_59, %c0_60] : memref<4x140x50xf32, #tpu.memory_space<vmem>>, vector<1x140x50xf32>
    %115 = vector.shape_cast %114 : vector<1x140x50xf32> to vector<140x50xf32>
    %cst_61 = arith.constant dense<0.000000e+00> : vector<2x50xf32>
    %116 = tpu.matmul %113, %115, %cst_61 {dimension_numbers = #tpu.dot_dimension_numbers<[1], [0], [0], [1], [0, 0, 1, 1], [], []>} : vector<2x140xf32>, vector<140x50xf32>, vector<2x50xf32> -> vector<2x50xf32>
    %117 = arith.addf %111, %116 : vector<2x50xf32>
    %c0_62 = arith.constant 0 : index
    %c0_63 = arith.constant 0 : index
    %118 = vector.load %arg7[%c0_62, %c0_63] : memref<1x50xf32, #tpu.memory_space<vmem>>, vector<1x50xf32>
    %119 = vector.broadcast %118 : vector<1x50xf32> to vector<2x50xf32>
    %120 = arith.addf %117, %119 : vector<2x50xf32>
    %cst_64 = arith.constant 0.000000e+00 : f32
    %121 = vector.broadcast %cst_64 : f32 to vector<2x50xf32>
    %122 = arith.maximumf %120, %121 : vector<2x50xf32>
    %c0_65 = arith.constant 0 : index
    %c0_66 = arith.constant 0 : index
    %123 = vector.load %arg11[%c0_65, %c0_66] : memref<2x50xf32, #tpu.memory_space<vmem>>, vector<2x50xf32>
    tpu.vector_store %arg11[%c0_65, %c0_66], %122 {strides = array<i32>} : memref<2x50xf32, #tpu.memory_space<vmem>>, vector<2x50xf32>,
    %c0_67 = arith.constant 0 : index
    %c0_68 = arith.constant 0 : index
    %124 = vector.load %arg8[%c0_67, %c0_68] : memref<50x10xf32, #tpu.memory_space<vmem>>, vector<50x10xf32>
    %cst_69 = arith.constant dense<0.000000e+00> : vector<2x10xf32>
    %125 = tpu.matmul %122, %124, %cst_69 {dimension_numbers = #tpu.dot_dimension_numbers<[1], [0], [0], [1], [0, 0, 1, 1], [], []>} : vector<2x50xf32>, vector<50x10xf32>, vector<2x10xf32> -> vector<2x10xf32>
    %c0_70 = arith.constant 0 : index
    %c0_71 = arith.constant 0 : index
    %126 = vector.load %arg9[%c0_70, %c0_71] : memref<1x10xf32, #tpu.memory_space<vmem>>, vector<1x10xf32>
    %127 = vector.broadcast %126 : vector<1x10xf32> to vector<2x10xf32>
    %128 = arith.addf %125, %127 : vector<2x10xf32>
    %c0_72 = arith.constant 0 : index
    %c0_73 = arith.constant 0 : index
    %129 = vector.load %arg10[%c0_72, %c0_73] : memref<2x10xf32, #tpu.memory_space<vmem>>, vector<2x10xf32>
    tpu.vector_store %arg10[%c0_72, %c0_73], %128 {strides = array<i32>} : memref<2x10xf32, #tpu.memory_space<vmem>>, vector<2x10xf32>,
    return
  }
  func.func @transform_0(%arg0: i32) -> (i32, i32, i32) {
    %c0_i32 = arith.constant 0 : i32
    %c0_i32_0 = arith.constant 0 : i32
    %c0_i32_1 = arith.constant 0 : i32
    return %arg0, %c0_i32, %c0_i32_0 : i32, i32, i32
  }
  func.func @transform_1(%arg0: i32) -> (i32, i32, i32) {
    %c0_i32 = arith.constant 0 : i32
    %c0_i32_0 = arith.constant 0 : i32
    %c0_i32_1 = arith.constant 0 : i32
    %c0_i32_2 = arith.constant 0 : i32
    return %c0_i32, %c0_i32_0, %c0_i32_1 : i32, i32, i32
  }
  func.func @transform_2(%arg0: i32) -> (i32, i32) {
    %c0_i32 = arith.constant 0 : i32
    %c0_i32_0 = arith.constant 0 : i32
    %c0_i32_1 = arith.constant 0 : i32
    return %c0_i32, %c0_i32_0 : i32, i32
  }
  func.func @transform_3(%arg0: i32) -> (i32, i32, i32) {
    %c0_i32 = arith.constant 0 : i32
    %c0_i32_0 = arith.constant 0 : i32
    %c0_i32_1 = arith.constant 0 : i32
    %c0_i32_2 = arith.constant 0 : i32
    return %c0_i32, %c0_i32_0, %c0_i32_1 : i32, i32, i32
  }
  func.func @transform_4(%arg0: i32) -> (i32, i32) {
    %c0_i32 = arith.constant 0 : i32
    %c0_i32_0 = arith.constant 0 : i32
    %c0_i32_1 = arith.constant 0 : i32
    return %c0_i32, %c0_i32_0 : i32, i32
  }
  func.func @transform_5(%arg0: i32) -> (i32, i32, i32) {
    %c0_i32 = arith.constant 0 : i32
    %c0_i32_0 = arith.constant 0 : i32
    %c0_i32_1 = arith.constant 0 : i32
    %c0_i32_2 = arith.constant 0 : i32
    return %c0_i32, %c0_i32_0, %c0_i32_1 : i32, i32, i32
  }
  func.func @transform_6(%arg0: i32) -> (i32, i32) {
    %c0_i32 = arith.constant 0 : i32
    %c0_i32_0 = arith.constant 0 : i32
    %c0_i32_1 = arith.constant 0 : i32
    return %c0_i32, %c0_i32_0 : i32, i32
  }
  func.func @transform_7(%arg0: i32) -> (i32, i32) {
    %c0_i32 = arith.constant 0 : i32
    %c0_i32_0 = arith.constant 0 : i32
    %c0_i32_1 = arith.constant 0 : i32
    return %c0_i32, %c0_i32_0 : i32, i32
  }
  func.func @transform_8(%arg0: i32) -> (i32, i32) {
    %c0_i32 = arith.constant 0 : i32
    %c0_i32_0 = arith.constant 0 : i32
    %c0_i32_1 = arith.constant 0 : i32
    return %c0_i32, %c0_i32_0 : i32, i32
  }
  func.func @transform_9(%arg0: i32) -> (i32, i32) {
    %c0_i32 = arith.constant 0 : i32
    %c0_i32_0 = arith.constant 0 : i32
    return %arg0, %c0_i32 : i32, i32
  }
  func.func @transform_10(%arg0: i32) -> (i32, i32) {
    %c0_i32 = arith.constant 0 : i32
    %c0_i32_0 = arith.constant 0 : i32
    return %arg0, %c0_i32 : i32, i32
  }
}

</mosaic_0001>

<bundles_post_ra>
// kernel: net1_forward.1
= control target key start
LH: loop header
LB: loop body
LE: loop exit
PB: predicated region body
PF: predicated region fallthrough
CT: control target
= control target key end

     0   :  { %16 = vsyncpa [#allocation3], 0  ;;  %s4386_s0 = inlined_call_operand.vmem [shape: f32[2,28,28], index: 0, kind: input, shape index: {}]   ;;  %s4387_s1 = inlined_call_operand.hbm [shape: f32[5,28,240], index: 1, kind: input, shape index: {}]   ;;  %s4388_s2 = inlined_call_operand.hbm [shape: f32[1,230], index: 2, kind: input, shape index: {}]   ;;  %s4389_s3 = inlined_call_operand.hbm [shape: f32[5,230,160], index: 3, kind: input, shape index: {}]   ;;  %s4390_s4 = inlined_call_operand.hbm [shape: f32[1,140], index: 4, kind: input, shape index: {}]   ;;  %s4391_s5 = inlined_call_operand.hbm [shape: f32[4,140,50], index: 5, kind: input, shape index: {}]   ;;  %s4392_s6 = inlined_call_operand.hbm [shape: f32[1,50], index: 6, kind: input, shape index: {}]   ;;  %s4393_s7 = inlined_call_operand.hbm [shape: f32[50,10], index: 7, kind: input, shape index: {}]   ;;  %s4394_s8 = inlined_call_operand.hbm [shape: f32[1,10], index: 8, kind: input, shape index: {}]   ;;  %s4395_s9 = inlined_call_operand.hbm [shape: f32[2,10], index: 9, kind: output, shape index: {0}]   ;;  %s4396_s10 = inlined_call_operand.hbm [shape: f32[2,50], index: 10, kind: output, shape index: {1}]  }
   0x1   :  { %17 = vsyncpa [#allocation6], 0 }
   0x2   :  { %18 = vsyncpa [#allocation9], 0 }
   0x3   :  { %19 = vsyncpa [#allocation12], 0 }
   0x4   :  { %20 = vsyncpa [#allocation15], 0 }
   0x5   :  { %21 = vsyncpa [#allocation4], 0  ;;  %s43_s15 = sshll.u32 %s4388_s2, 4  ;;  %s44_s15 = int_to_ptr.hbm [resolvable:$true] %s43_s15 }
   0x6   :  { %22 = vsyncpa [#allocation18], 0  ;;  %s3164_s16 = smov [#allocation5]   ;;  %s67_s20 = sshll.u32 %s4390_s4, 4  ;;  %s68_s20 = int_to_ptr.hbm [resolvable:$true] %s67_s20 }
   0x7   :  { %s45_s17 = sshll.u32 %s3164_s16, 4  ;;  %s3165_s21 = smov [#allocation8]   ;;  %s46_s17 = int_to_ptr.vmem [resolvable:$true] %s45_s17 }
   0x8   :  { %48 = dma.hbm_to_vmem [thread:$0]  %s44_s15, 32, %s46_s17, [#allocation6]  }
   0x9   :  { %s69_s22 = sshll.u32 %s3165_s21, 4  ;;  %s91_s25 = sshll.u32 %s4392_s6, 4  ;;  %s70_s22 = int_to_ptr.vmem [resolvable:$true] %s69_s22  ;;  %s92_s25 = int_to_ptr.hbm [resolvable:$true] %s91_s25 }
   0xa   :  { %72 = dma.hbm_to_vmem [thread:$0]  %s68_s20, 32, %s70_s22, [#allocation9]  }
   0xb   :  { %s29_s27 = sshll.u32 %s4387_s1, 4  ;;  %s3166_s28 = smov [#allocation11]   ;;  %s30_s27 = int_to_ptr.hbm [resolvable:$true] %s29_s27 }
   0xc   :  { %s93_s29 = sshll.u32 %s3166_s28, 4  ;;  %s3167_s4 = smov [#allocation2]   ;;  %s94_s29 = int_to_ptr.vmem [resolvable:$true] %s93_s29 }
   0xd   :  { %96 = dma.hbm_to_vmem [thread:$0]  %s92_s25, 16, %s94_s29, [#allocation12]  }
   0xe   :  { %s31_s30 = sshll.u32 %s3167_s4, 4  ;;  %s3168_s11 = smov 256   ;;  %s32_s30 = int_to_ptr.vmem [resolvable:$true] %s31_s30 }
   0xf   :  { %s3169_s12 = smov 16   ;;  %s53_s14 = sshll.u32 %s4389_s3, 4  ;;  %s54_s14 = int_to_ptr.hbm [resolvable:$true] %s53_s14 }
  0x10   :  { %37 = dma.hbm_to_vmem [thread:$0]  %s30_s27, 5120, %s32_s30, [#allocation3], %s3168_s11, %s3168_s11, %s3169_s12  }
  0x11   :  { %s3170_s15 = smov [#allocation7]   ;;  %s77_s18 = sshll.u32 %s4391_s5, 4  ;;  %s78_s18 = int_to_ptr.hbm [resolvable:$true] %s77_s18 }
  0x12   :  { %s55_s16 = sshll.u32 %s3170_s15, 4  ;;  %s3171_s19 = smov [#allocation10]   ;;  %s56_s16 = int_to_ptr.vmem [resolvable:$true] %s55_s16 }
  0x13   :  { %61 = dma.hbm_to_vmem [thread:$0]  %s54_s14, 37120, %s56_s16, [#allocation6], %s3168_s11, %s3168_s11, %s3169_s12  }
  0x14   :  { %s79_s20 = sshll.u32 %s3171_s19, 4  ;;  %s3172_s21 = smov 128   ;;  %s80_s20 = int_to_ptr.vmem [resolvable:$true] %s79_s20 }
  0x15   :  { %s3173_s22 = smov 8   ;;  %s101_s3 = sshll.u32 %s4393_s7, 4  ;;  %s102_s3 = int_to_ptr.hbm [resolvable:$true] %s101_s3 }
  0x16   :  { %85 = dma.hbm_to_vmem [thread:$0]  %s78_s18, 9216, %s80_s20, [#allocation9], %s3172_s21, %s3172_s21, %s3173_s22  }
  0x17   :  { %s3174_s25 = smov [#allocation13]   ;;  %s115_s5 = sshll.u32 %s4394_s8, 4  ;;  %s116_s5 = int_to_ptr.hbm [resolvable:$true] %s115_s5 }
  0x18   :  { %s103_s2 = sshll.u32 %s3174_s25, 4  ;;  %s3175_s28 = smov [#allocation14]   ;;  %s104_s2 = int_to_ptr.vmem [resolvable:$true] %s103_s2 }
  0x19   :  { %109 = dma.hbm_to_vmem [thread:$0]  %s102_s3, 896, %s104_s2, [#allocation12], %s3172_s21, %s3172_s21, %s3173_s22  }
  0x1a   :  { %s117_s29 = sshll.u32 %s3175_s28, 4  ;;  %s118_s29 = int_to_ptr.vmem [resolvable:$true] %s117_s29 }
  0x1b   :  { %120 = dma.hbm_to_vmem [thread:$0]  %s116_s5, 16, %s118_s29, [#allocation15]  }
  0x1c   :  { %3150 = dma.done.wait [#allocation3], 5120  }
  0x1d   :  { %3151 = vsyncadd [#allocation3], 4294962176 }
  0x1e   :  { %3152 = dma.done.wait [#allocation6], 37152  }
  0x1f   :  { %3153 = vsyncadd [#allocation6], 4294930144 }
  0x20   :  { %3154 = dma.done.wait [#allocation9], 9248  }
  0x21   :  { %3155 = vsyncadd [#allocation9], 4294958048 }
  0x22   :  { %3156 = dma.done.wait [#allocation12], 912  }
  0x23   :  { %3157 = vsyncadd [#allocation12], 4294966384 }
  0x24   :  { %3158 = dma.done.wait [#allocation15], 16  }
  0x25   :  { %3159 = vsyncadd [#allocation15], 4294967280  ;;  %vm214_vm0 = vcmask 1043456   ;;  %v199_v0 = vld [vmem:[#allocation2 + $0x70] sm:$0xf]  ;;  %v197_v4 = vld [vmem:[#allocation2 + $0x60] sm:$0xff] }
  0x26   :  { %v200_v1 = vld [vmem:[#allocation2 + $0x78] sm:$0xf]  ;;  %v167_v2 = vld [vmem:[#allocation2 + $0x30] sm:$0xf]  ;;  %2746 = vmatpush.msk.msra.mxu0 %vm214_vm0, %v199_v0  ;;  %v198_v5 = vld [vmem:[#allocation2 + $0x68] sm:$0xff]  ;;  %vm177_vm1 = vcmask 1046528  }
  0x27   :  { %2888 = vmatpush.msk.msra.mxu1 %vm214_vm0, %v200_v1  ;;  %v168_v3 = vld [vmem:[#allocation2 + $0x38] sm:$0xf]  ;;  %2760 = vmatpush.msk.msra.mxu2 %vm214_vm0, %v167_v2  ;;  %v165_v6 = vld [vmem:[#allocation2 + $0x20] sm:$0xff]  ;;  %v166_v7 = vld [vmem:[#allocation2 + $0x28] sm:$0xff]  ;;  %vm201_vm2 = vcmask 228352   ;;  %vm379_vm3 = vcmask 1045504  }
  0x28   :  { %2767 = vmatpush.msk.msra.mxu3 %vm214_vm0, %v168_v3  ;;  %v195_v8 = vld [vmem:[#allocation2 + $0x50] sm:$0xff]  ;;  %234 = vmatpush.msra.mxu0 %v197_v4  ;;  %v196_v9 = vld [vmem:[#allocation2 + $0x58] sm:$0xff]  ;;  %v193_v12 = vld [vmem:[#allocation2 + $0x40] sm:$0xff]  ;;  %vm503_vm4 = vcmask 1044480   ;;  %vm770_vm5 = vcmask 1043458   ;;  %vm773_vm6 = vcmask 1045508  }
  0x29   :  { %2889 = vmatpush.msra.mxu1 %v198_v5  ;;  %v163_v10 = vld [vmem:[#allocation2 + $0x10] sm:$0xff]  ;;  %v164_v11 = vld [vmem:[#allocation2 + $0x18] sm:$0xff]  ;;  %322 = vmatpush.msra.mxu2 %v165_v6  ;;  %v194_v13 = vld [vmem:[#allocation2 + $0x48] sm:$0xff]  ;;  %vm768_vm7 = vcmask 1041408   ;;  %vm1029_vm8 = vcmask 965632   ;;  %vm1339_vm9 = vcmask 1041409  }
  0x2a   :  { %357 = vmatpush.msra.mxu3 %v166_v7  ;;  %v161_v14 = vld [vmem:[#allocation2] sm:$0xff]  ;;  %235 = vmatpush.msra.mxu0 %v195_v8  ;;  %v162_v15 = vld [vmem:[#allocation2 + $0x8] sm:$0xff]  ;;  %v3278_v20 = vld [vmem:[%s4386_s0 + $0x10] sm:$0xff]  ;;  %vm1341_vm10 = vcmask 1042434   ;;  %vm1343_vm11 = vcmask 1043459   ;;  %vm1345_vm12 = vcmask 1044484  }
  0x2b   :  { %2890 = vmatpush.msra.mxu1 %v196_v9  ;;  %v3266_v16 = vld [vmem:[%s4386_s0] sm:$0xff]  ;;  %v3271_v17 = vld [vmem:[%s4386_s0 + $0x8] sm:$0xff]  ;;  %323 = vmatpush.msra.mxu2 %v163_v10  ;;  %v181_v21 = vrot.slane %v3278_v20, 1  ;;  %v3287_v23 = vld [vmem:[%s4386_s0 + $0x18] sm:$0xf]  ;;  %v383_v58 = vrot.slane %v3278_v20, 2 }
  0x2c   :  { %358 = vmatpush.msra.mxu3 %v164_v11  ;;  %v178_v18 = vrot.slane %v3266_v16, 1  ;;  %v179_v19 = vrot.slane %v3271_v17, 1  ;;  %236 = vmatpush.msra.mxu0 %v193_v12  ;;  %v402_v25 = vld [vmem:[#allocation2 + $0xb8] sm:$0xf]  ;;  %v400_v26 = vld [vmem:[#allocation2 + $0xa8] sm:$0xff]  ;;  %v183_v27 = vrot.slane %v3287_v23, 1 }
  0x2d   :  { %2891 = vmatpush.msra.mxu1 %v194_v13  ;;  %324 = vmatpush.msra.mxu2 %v161_v14  ;;  %v398_v28 = vld [vmem:[#allocation2 + $0x98] sm:$0xff]  ;;  %v3304_v30 = vld [vmem:[%s4386_s0 + $0x20] sm:$0xff]  ;;  %v3309_v31 = vld [vmem:[%s4386_s0 + $0x28] sm:$0xff]  ;;  %v380_v54 = vrot.slane %v3266_v16, 2  ;;  %v381_v55 = vrot.slane %v3271_v17, 2  ;;  %v504_v59 = vrot.slane %v3266_v16, 3 }
  0x2e   :  { %359 = vmatpush.msra.mxu3 %v162_v15  ;;  %v3282_v22 = vsel %vm177_vm1, %v178_v18, %v179_v19  ;;  %v182_v24 = vsel %vm177_vm1, %v179_v19, %v181_v21  ;;  %2761 = vmatmul.msk.f32.vlgmr.msra.gmra.mxu2 %vm201_vm2, %v3266_v16  ;;  %v184_v29 = vsel %vm177_vm1, %v181_v21, %v183_v27  ;;  %v396_v32 = vld [vmem:[#allocation2 + $0x88] sm:$0xff]  ;;  %v526_v33 = vld [vmem:[#allocation2 + $0xf8] sm:$0xf]  ;;  %v525_v35 = vld [vmem:[#allocation2 + $0xf0] sm:$0xf]  ;;  %v185_v36 = vrot.slane %v3304_v30, 1 }
  0x2f   :  { %2747 = vmatmul.msk.f32.vlgmr.msra.gmra.mxu0 %vm201_vm2, %v3282_v22  ;;  %2755 = vmatmul.msk.f32.vlgmr.msra.gmra.mxu1 %vm201_vm2, %v182_v24  ;;  %v524_v34 = vld [vmem:[#allocation2 + $0xe8] sm:$0xff]  ;;  %v186_v37 = vrot.slane %v3309_v31, 1  ;;  %v523_v38 = vld [vmem:[#allocation2 + $0xe0] sm:$0xff]  ;;  %v522_v39 = vld [vmem:[#allocation2 + $0xd8] sm:$0xff]  ;;  %v382_v56 = vsel %vm379_vm3, %v380_v54, %v381_v55  ;;  %v505_v60 = vrot.slane %v3271_v17, 3  ;;  %v384_v61 = vsel %vm379_vm3, %v381_v55, %v383_v58  ;;  %s3177_s21 = smov 108  }
  0x30   :  { %2768 = vmatmul.msk.f32.vlgmr.msra.gmra.mxu3 %vm201_vm2, %v3266_v16  ;;  %2753 = vmatpush.msk.msrb.mxu0 %vm214_vm0, %v200_v1  ;;  %v3325_v41 = vld [vmem:[%s4386_s0 + $0x30] sm:$0xff]  ;;  %v520_v42 = vld [vmem:[#allocation2 + $0xc8] sm:$0xff]  ;;  %v399_v45 = vld [vmem:[#allocation2 + $0xa0] sm:$0xff]  ;;  %v385_v2 = vrot.slane %v3287_v23, 2  ;;  %v507_v3 = vrot.slane %v3278_v20, 3  ;;  %v627_v7 = vrot.slane %v3266_v16, 4 }
  0x31   :  { %2781 = vmatpush.msk.msrb.mxu1 %vm214_vm0, %v402_v25  ;;  %2795 = vmatpush.msk.msrb.mxu3 %vm214_vm0, %v526_v33  ;;  %v187_v40 = vsel %vm177_vm1, %v185_v36, %v186_v37  ;;  %v401_v43 = vld [vmem:[#allocation2 + $0xb0] sm:$0xf]  ;;  %v188_v46 = vrot.slane %v3325_v41, 1  ;;  %v519_v47 = vld [vmem:[#allocation2 + $0xc0] sm:$0xff]  ;;  %v3339_v50 = vld [vmem:[%s4386_s0 + $0x38] sm:$0xf]  ;;  %v506_v62 = vsel %vm503_vm4, %v504_v59, %v505_v60 }
  0x32   :  { %269 = vmatpush.msrb.mxu0 %v198_v5  ;;  %2788 = vmatpush.msk.msrb.mxu2 %vm214_vm0, %v525_v35  ;;  %v521_v44 = vld [vmem:[#allocation2 + $0xd0] sm:$0xff]  ;;  %v395_v51 = vld [vmem:[#allocation2 + $0x80] sm:$0xff]  ;;  %v190_v52 = vrot.slane %v3339_v50, 1  ;;  %v649_v57 = vld [vmem:[#allocation2 + $0x138] sm:$0xf]  ;;  %v386_v5 = vsel %vm379_vm3, %v383_v58, %v385_v2  ;;  %v508_v6 = vsel %vm503_vm4, %v505_v60, %v507_v3  ;;  %v628_v8 = vrot.slane %v3271_v17, 4 }
  0x33   :  { %469 = vmatpush.msrb.mxu1 %v400_v26  ;;  %593 = vmatpush.msrb.mxu3 %v524_v34  ;;  %v397_v48 = vld [vmem:[#allocation2 + $0x90] sm:$0xff]  ;;  %v189_v49 = vsel %vm177_vm1, %v186_v37, %v188_v46  ;;  %v647_v0 = vld [vmem:[#allocation2 + $0x128] sm:$0xff]  ;;  %v645_v1 = vld [vmem:[#allocation2 + $0x118] sm:$0xff]  ;;  %v387_v11 = vrot.slane %v3304_v30, 2  ;;  %v388_v12 = vrot.slane %v3309_v31, 2  ;;  %v630_v16 = vrot.slane %v3278_v20, 4 }
  0x34   :  { %270 = vmatpush.msrb.mxu0 %v196_v9  ;;  %558 = vmatpush.msrb.mxu2 %v523_v38  ;;  %v191_v53 = vsel %vm177_vm1, %v188_v46, %v190_v52  ;;  %v648_v63 = vld [vmem:[#allocation2 + $0x130] sm:$0xf]  ;;  %v643_v4 = vld [vmem:[#allocation2 + $0x108] sm:$0xff]  ;;  %v629_v9 = vsel %vm214_vm0, %v627_v7, %v628_v8  ;;  %v646_v10 = vld [vmem:[#allocation2 + $0x120] sm:$0xff]  ;;  %v390_v21 = vrot.slane %v3325_v41, 2  ;;  %v392_v26 = vrot.slane %v3339_v50, 2 }
  0x35   :  { %470 = vmatpush.msrb.mxu1 %v398_v28  ;;  %594 = vmatpush.msrb.mxu3 %v522_v39  ;;  %v389_v14 = vsel %vm379_vm3, %v387_v11, %v388_v12  ;;  %v644_v18 = vld [vmem:[#allocation2 + $0x110] sm:$0xff]  ;;  %v642_v19 = vld [vmem:[#allocation2 + $0x100] sm:$0xff]  ;;  %v514_v27 = vrot.slane %v3325_v41, 3  ;;  %v632_v34 = vrot.slane %v3287_v23, 4  ;;  %v634_v36 = vrot.slane %v3304_v30, 4  ;;  %s3176_s0 = smov 118  }
  0x36   :  { %2762 = vmatmul.msk.f32.gmra.mxu2 %vm201_vm2, %v3271_v17  ;;  %271 = vmatpush.msrb.mxu0 %v194_v13  ;;  %v509_v13 = vrot.slane %v3287_v23, 3  ;;  %v393_v28 = vsel %vm379_vm3, %v390_v21, %v392_v26  ;;  %v635_v37 = vrot.slane %v3309_v31, 4  ;;  %v637_v39 = vrot.slane %v3325_v41, 4  ;;  %s3178_s22 = smov [#allocation17]   ;;  %s2727_s25 = sshll.u32 %s4396_s10, 4  ;;  %s2728_s25 = int_to_ptr.hbm [resolvable:$true] %s2727_s25 }
  0x37   :  { %2748 = vmatmul.msk.f32.gmra.mxu0 %vm201_vm2, %v182_v24  ;;  %2756 = vmatmul.msk.f32.gmra.mxu1 %vm201_vm2, %v184_v29  ;;  %v512_v24 = vrot.slane %v3309_v31, 3  ;;  %v633_v35 = vsel %vm214_vm0, %v630_v16, %v632_v34  ;;  %vm1347_vm13 = vcmask 1045509   ;;  %vm1349_vm14 = vcmask 1046534   ;;  %s2725_s23 = sshll.u32 %s3178_s22, 4  ;;  %s3179_s2 = smov [#allocation16]   ;;  %s2726_s23 = int_to_ptr.vmem [resolvable:$true] %s2725_s23 }
  0x38   :  { %2769 = vmatmul.msk.f32.gmra.mxu3 %vm201_vm2, %v3271_v17  ;;  %471 = vmatpush.msrb.mxu1 %v396_v32  ;;  %v510_v15 = vsel %vm503_vm4, %v507_v3, %v509_v13  ;;  %v631_v17 = vsel %vm214_vm0, %v628_v8, %v630_v16  ;;  %v516_v32 = vrot.slane %v3339_v50, 3  ;;  %v636_v38 = vsel %vm214_vm0, %v634_v36, %v635_v37  ;;  %s2714_s26 = sshll.u32 %s3179_s2, 4  ;;  %s2716_s28 = sshll.u32 %s4395_s9, 4  ;;  %s2715_s26 = int_to_ptr.vmem [resolvable:$true] %s2714_s26  ;;  %s2717_s28 = int_to_ptr.hbm [resolvable:$true] %s2716_s28 }
  0x39   :  { %595 = vmatpush.msrb.mxu3 %v520_v42  ;;  %2774 = vmatpush.msk.msra.mxu0 %vm214_vm0, %v401_v43  ;;  %v638_v23 = vsel %vm214_vm0, %v635_v37, %v637_v39  ;;  %vm1351_vm15 = vcmask 1047559   ;;  %vm1376_vm1 = vcmask 834560  }
  0x3a   :  { %559 = vmatpush.msrb.mxu2 %v521_v44  ;;  %2809 = vmatpush.msk.msra.mxu1 %vm214_vm0, %v649_v57  ;;  %v517_v33 = vsel %vm503_vm4, %v514_v27, %v516_v32 }
  0x3b   :  { %434 = vmatpush.msra.mxu0 %v399_v45 }
  0x3c   :  { %560 = vmatpush.msrb.mxu2 %v519_v47  ;;  %716 = vmatpush.msra.mxu1 %v647_v0 }
  0x3d   :  { %435 = vmatpush.msra.mxu0 %v397_v48 }
  0x3e   :  { %2763 = vmatmul.msk.f32.gmra.mxu2 %vm201_vm2, %v3278_v20  ;;  %717 = vmatpush.msra.mxu1 %v645_v1 }
  0x3f   :  { %2749 = vmatmul.msk.f32.gmra.mxu0 %vm201_vm2, %v184_v29  ;;  %2757 = vmatmul.msk.f32.gmra.mxu1 %vm201_vm2, %v187_v40  ;;  %v515_v29 = vsel %vm503_vm4, %v512_v24, %v514_v27 }
  0x40   :  { %2770 = vmatmul.msk.f32.gmra.mxu3 %vm201_vm2, %v3278_v20  ;;  %436 = vmatpush.msra.mxu0 %v395_v51  ;;  %v391_v20 = vsel %vm379_vm3, %v388_v12, %v390_v21 }
  0x41   :  { %718 = vmatpush.msra.mxu1 %v643_v4 }
  0x46   :  { %2764 = vmatmul.msk.f32.gmra.mxu2 %vm201_vm2, %v3304_v30 }
  0x47   :  { %2750 = vmatmul.msk.f32.gmra.mxu0 %vm201_vm2, %v187_v40  ;;  %2758 = vmatmul.msk.f32.gmra.mxu1 %vm201_vm2, %v189_v49  ;;  %v639_v40 = vrot.slane %v3339_v50, 4 }
  0x48   :  { %2771 = vmatmul.msk.f32.gmra.mxu3 %vm201_vm2, %v3304_v30 }
  0x4e   :  { %2765 = vmatmul.msk.f32.gmra.mxu2 %vm201_vm2, %v3309_v31 }
  0x4f   :  { %2751 = vmatmul.msk.f32.gmra.mxu0 %vm201_vm2, %v189_v49  ;;  %2759 = vmatmul.msk.f32.gmra.mxu1 %vm201_vm2, %v191_v53 }
  0x50   :  { %2772 = vmatmul.msk.f32.gmra.mxu3 %vm201_vm2, %v3309_v31  ;;  %v640_v31 = vsel %vm214_vm0, %v637_v39, %v639_v40 }
  0x56   :  { %2766 = vmatmul.msk.f32.gmra.mxu2 %vm201_vm2, %v3325_v41 }
  0x57   :  { %2752 = vmatmul.msk.f32.gmra.mxu0 %vm201_vm2, %v191_v53  ;;  %2782 = vmatmul.msk.f32.vlgmr.msrb.gmra.mxu1 %vm201_vm2, %v382_v56 }
  0x58   :  { %2773 = vmatmul.msk.f32.gmra.mxu3 %vm201_vm2, %v3325_v41 }
  0x5e   :  { %2789 = vmatmul.msk.f32.vlgmr.msrb.gmra.mxu2 %vm201_vm2, %v506_v62 }
  0x5f   :  { %2754 = vmatmul.msk.f32.vlgmr.msrb.gmra.mxu0 %vm201_vm2, %v3282_v22  ;;  %2783 = vmatmul.msk.f32.gmra.mxu1 %vm201_vm2, %v384_v61  ;;  %v511_v22 = vrot.slane %v3304_v30, 3 }
  0x60   :  { %2796 = vmatmul.msk.f32.vlgmr.msrb.gmra.mxu3 %vm201_vm2, %v506_v62  ;;  %2802 = vmatpush.msk.msrb.mxu0 %vm214_vm0, %v648_v63 }
  0x61   :  { %v513_v25 = vsel %vm503_vm4, %v511_v22, %v512_v24  ;;  %vm2667_vm4 = vcmask 402432  }
  0x62   :  { %681 = vmatpush.msrb.mxu0 %v646_v10 }
  0x64   :  { %682 = vmatpush.msrb.mxu0 %v644_v18 }
  0x66   :  { %2790 = vmatmul.msk.f32.gmra.mxu2 %vm201_vm2, %v508_v6  ;;  %683 = vmatpush.msrb.mxu0 %v642_v19 }
  0x67   :  { %2775 = vmatmul.msk.f32.vlgmr.msra.gmra.mxu0 %vm201_vm2, %v382_v56  ;;  %2784 = vmatmul.msk.f32.gmra.mxu1 %vm201_vm2, %v386_v5 }
  0x68   :  { %2797 = vmatmul.msk.f32.gmra.mxu3 %vm201_vm2, %v508_v6 }
  0x6e   :  { %2791 = vmatmul.msk.f32.gmra.mxu2 %vm201_vm2, %v510_v15 }
  0x6f   :  { %2776 = vmatmul.msk.f32.gmra.mxu0 %vm201_vm2, %v384_v61  ;;  %2785 = vmatmul.msk.f32.gmra.mxu1 %vm201_vm2, %v389_v14 }
  0x70   :  { %2798 = vmatmul.msk.f32.gmra.mxu3 %vm201_vm2, %v510_v15 }
  0x76   :  { %2792 = vmatmul.msk.f32.gmra.mxu2 %vm201_vm2, %v513_v25 }
  0x77   :  { %2777 = vmatmul.msk.f32.gmra.mxu0 %vm201_vm2, %v386_v5  ;;  %2786 = vmatmul.msk.f32.gmra.mxu1 %vm201_vm2, %v391_v20 }
  0x78   :  { %2799 = vmatmul.msk.f32.gmra.mxu3 %vm201_vm2, %v513_v25 }
  0x7e   :  { %2793 = vmatmul.msk.f32.gmra.mxu2 %vm201_vm2, %v515_v29 }
  0x7f   :  { %2778 = vmatmul.msk.f32.gmra.mxu0 %vm201_vm2, %v389_v14  ;;  %2787 = vmatmul.msk.f32.gmra.mxu1 %vm201_vm2, %v393_v28 }
  0x80   :  { %2800 = vmatmul.msk.f32.gmra.mxu3 %vm201_vm2, %v515_v29 }
  0x86   :  { %2794 = vmatmul.msk.f32.gmra.mxu2 %vm201_vm2, %v517_v33 }
  0x87   :  { %2779 = vmatmul.msk.f32.gmra.mxu0 %vm201_vm2, %v391_v20  ;;  %2810 = vmatmul.msk.f32.vlgmr.msra.gmra.mxu1 %vm201_vm2, %v629_v9 }
  0x88   :  { %2801 = vmatmul.msk.f32.gmra.mxu3 %vm201_vm2, %v517_v33 }
  0x8f   :  { %2780 = vmatmul.msk.f32.gmra.mxu0 %vm201_vm2, %v393_v28  ;;  %2811 = vmatmul.msk.f32.gmra.mxu1 %vm201_vm2, %v631_v17 }
  0x97   :  { %2803 = vmatmul.msk.f32.vlgmr.msrb.gmra.mxu0 %vm201_vm2, %v629_v9  ;;  %2812 = vmatmul.msk.f32.gmra.mxu1 %vm201_vm2, %v633_v35 }
  0x9f   :  { %2804 = vmatmul.msk.f32.gmra.mxu0 %vm201_vm2, %v631_v17  ;;  %2813 = vmatmul.msk.f32.gmra.mxu1 %vm201_vm2, %v636_v38 }
  0xa7   :  { %2805 = vmatmul.msk.f32.gmra.mxu0 %vm201_vm2, %v633_v35  ;;  %2814 = vmatmul.msk.f32.gmra.mxu1 %vm201_vm2, %v638_v23 }
  0xac   :  { %v238_v42 = vpop.f32.mrf.mxu0  ;;  %v276_v30 = vpop.f32.mrf.mxu1 }
  0xaf   :  { %2806 = vmatmul.msk.f32.gmra.mxu0 %vm201_vm2, %v636_v38  ;;  %2815 = vmatmul.msk.f32.gmra.mxu1 %vm201_vm2, %v640_v31 }
  0xb1   :  { %v326_v49 = vpop.f32.mrf.mxu2 }
  0xb2   :  { %v327_v17 = vadd.f32 %v326_v49, %v238_v42 }
  0xb3   :  { %v361_v47 = vpop.f32.mrf.mxu3 }
  0xb4   :  { %v241_v43 = vpop.f32.mrf.mxu0  ;;  %v3440_v44 = vpop.f32.mrf.mxu1 }
  0xb7   :  { %2807 = vmatmul.msk.f32.gmra.mxu0 %vm201_vm2, %v638_v23 }
  0xb9   :  { %v329_v55 = vpop.f32.mrf.mxu2 }
  0xba   :  { %v330_v29 = vadd.f32 %v329_v55, %v241_v43 }
  0xbb   :  { %v364_v52 = vpop.f32.mrf.mxu3 }
  0xbc   :  { %v3443_v41 = vpop.f32.mrf.mxu0  ;;  %v3445_v45 = vpop.f32.mrf.mxu1  ;;  %v365_v25 = vadd.f32 %v364_v52, %v276_v30 }
  0xbf   :  { %2808 = vmatmul.msk.f32.gmra.mxu0 %vm201_vm2, %v640_v31  ;;  %vm2312_vm2 = vcmask 883712  }
  0xc1   :  { %v332_v59 = vpop.f32.mrf.mxu2 }
  0xc3   :  { %v367_v56 = vpop.f32.mrf.mxu3 }
  0xc4   :  { %v3448_v46 = vpop.f32.mrf.mxu0  ;;  %v3450_v48 = vpop.f32.mrf.mxu1  ;;  %v368_v49 = vadd.f32 %v367_v56, %v3440_v44 }
  0xc9   :  { %v3460_v63 = vpop.f32.mrf.mxu2 }
  0xcb   :  { %v3458_v60 = vpop.f32.mrf.mxu3 }
  0xcc   :  { %v3452_v50 = vpop.f32.mrf.mxu0  ;;  %v3454_v51 = vpop.f32.mrf.mxu1 }
  0xd1   :  { %v3466_v3 = vpop.f32.mrf.mxu2 }
  0xd3   :  { %v3462_v1 = vpop.f32.mrf.mxu3 }
  0xd4   :  { %v3456_v53 = vpop.f32.mrf.mxu0  ;;  %v473_v54 = vpop.f32.mrf.mxu1 }
  0xd9   :  { %v3476_v9 = vpop.f32.mrf.mxu2 }
  0xdb   :  { %v3470_v6 = vpop.f32.mrf.mxu3 }
  0xdc   :  { %v273_v57 = vpop.f32.mrf.mxu0  ;;  %v476_v58 = vpop.f32.mrf.mxu1 }
  0xdd   :  { %v362_v14 = vadd.f32 %v361_v47, %v273_v57  ;;  %v494_v27 = vadd.f32 %v476_v58, %v365_v25 }
  0xdf   :  { %v492_v18 = vadd.f32 %v473_v54, %v362_v14  ;;  %v333_v54 = vadd.f32 %v332_v59, %v3443_v41 }
  0xe1   :  { %v562_v13 = vpop.f32.mrf.mxu2 }
  0xe3   :  { %v597_v10 = vpop.f32.mrf.mxu3 }
  0xe4   :  { %v438_v61 = vpop.f32.mrf.mxu0  ;;  %v479_v62 = vpop.f32.mrf.mxu1  ;;  %v616_v21 = vadd.f32 %v597_v10, %v492_v18 }
  0xe5   :  { %v491_v22 = vadd.f32 %v438_v61, %v327_v17  ;;  %v496_v61 = vadd.f32 %v479_v62, %v368_v49 }
  0xe7   :  { %v615_v26 = vadd.f32 %v562_v13, %v491_v22 }
  0xe9   :  { %v565_v24 = vpop.f32.mrf.mxu2 }
  0xeb   :  { %v600_v15 = vpop.f32.mrf.mxu3 }
  0xec   :  { %v441_v0 = vpop.f32.mrf.mxu0  ;;  %v3464_v2 = vpop.f32.mrf.mxu1  ;;  %v618_v35 = vadd.f32 %v600_v15, %v494_v27 }
  0xed   :  { %v493_v36 = vadd.f32 %v441_v0, %v330_v29 }
  0xef   :  { %v617_v52 = vadd.f32 %v565_v24, %v493_v36 }
  0xf1   :  { %v568_v30 = vpop.f32.mrf.mxu2 }
  0xf3   :  { %v603_v32 = vpop.f32.mrf.mxu3 }
  0xf4   :  { %v444_v4 = vpop.f32.mrf.mxu0  ;;  %v3468_v5 = vpop.f32.mrf.mxu1  ;;  %v620_v44 = vadd.f32 %v603_v32, %v496_v61 }
  0xf5   :  { %v495_v56 = vadd.f32 %v444_v4, %v333_v54  ;;  %v336_v4 = vadd.f32 %v3460_v63, %v3448_v46 }
  0xfb   :  { %v606_v41 = vpop.f32.mrf.mxu3 }
  0xfc   :  { %v3472_v7 = vpop.f32.mrf.mxu0  ;;  %v3474_v8 = vpop.f32.mrf.mxu1 }
  0xfd   :  { %v497_v63 = vadd.f32 %v3472_v7, %v336_v4 }
 0x104   :  { %v3478_v11 = vpop.f32.mrf.mxu0  ;;  %v720_v12 = vpop.f32.mrf.mxu1 }
 0x105   :  { %v739_v20 = vadd.f32 %v720_v12, %v616_v21 }
 0x107   :  { %v3482_v33 = vrot.slane %v739_v20, 6  ;;  %v619_v20 = vadd.f32 %v568_v30, %v495_v56 }
 0x10c   :  { %v3480_v16 = vpop.f32.mrf.mxu0  ;;  %v723_v19 = vpop.f32.mrf.mxu1 }
 0x10d   :  { %v741_v42 = vadd.f32 %v723_v19, %v618_v35  ;;  %v371_v19 = vadd.f32 %v3458_v60, %v3445_v45 }
 0x10f   :  { %v763_v0 = vrot.slane %v741_v42, 6  ;;  %v498_v25 = vadd.f32 %v3464_v2, %v371_v19  ;;  %v374_v42 = vadd.f32 %v3462_v1, %v3450_v48 }
 0x111   :  { %v622_v46 = vadd.f32 %v606_v41, %v498_v25 }
 0x114   :  { %v685_v28 = vpop.f32.mrf.mxu0  ;;  %v726_v39 = vpop.f32.mrf.mxu1 }
 0x115   :  { %v3484_v34 = vadd.f32 %v685_v28, %v615_v26  ;;  %v743_v15 = vadd.f32 %v726_v39, %v620_v44  ;;  %v571_v26 = vpop.f32.mrf.mxu2  ;;  %v609_v39 = vpop.f32.mrf.mxu3 }
 0x116   :  { %v621_v30 = vadd.f32 %v571_v26, %v497_v63 }
 0x117   :  { %v776_v37 = vsel %vm379_vm3, %v3482_v33, %v3484_v34  ;;  %v771_v38 = vsel %vm770_vm5, %v3484_v34, %v3482_v33  ;;  %v774_v47 = vsel %vm773_vm6, %v3484_v34, %v3482_v33  ;;  %v3518_v35 = vrot.slane %v743_v15, 6 }
 0x118   :  { %v777_v23 = vrot.slane %v776_v37, 6  ;;  %v772_v40 = vrot.slane %v771_v38, 2  ;;  %v775_v12 = vrot.slane %v774_v47, 4 }
 0x11a   :  { %v2819_v31 = vrot.slane %v777_v23, 9  ;;  %v2817_v43 = vrot.slane %v772_v40, 9  ;;  %v2818_v17 = vrot.slane %v775_v12, 9 }
 0x11c   :  { %v688_v55 = vpop.f32.mrf.mxu0  ;;  %v3497_v57 = vmax.f32 %v777_v23, %v2819_v31  ;;  %v3499_v58 = vmax.f32 %v772_v40, %v2817_v43  ;;  %v729_v21 = vpop.f32.mrf.mxu1  ;;  %v3522_v60 = vmax.f32 %v775_v12, %v2818_v17  ;;  %v500_v31 = vadd.f32 %v3468_v5, %v374_v42 }
 0x11d   :  { %v740_v10 = vadd.f32 %v688_v55, %v617_v52  ;;  %v745_v23 = vadd.f32 %v729_v21, %v622_v46  ;;  %v339_v52 = vadd.f32 %v3466_v3, %v3452_v50  ;;  %v574_v48 = vpop.f32.mrf.mxu2 }
 0x11e   :  { %963 = vrot.lane.b32.xlu1 %v3497_v57, %s3176_s0  ;;  %959 = vrot.lane.b32.xlu0 %v3499_v58, %s3176_s0 }
 0x11f   :  { %v779_v59 = vsel %vm770_vm5, %v740_v10, %v763_v0  ;;  %v778_v13 = vsel %vm768_vm7, %v740_v10, %v763_v0  ;;  %v781_v18 = vsel %vm773_vm6, %v740_v10, %v763_v0  ;;  %v783_v24 = vsel %vm379_vm3, %v763_v0, %v740_v10 }
 0x120   :  { %v780_v14 = vrot.slane %v779_v59, 2  ;;  %v2820_v62 = vrot.slane %v778_v13, 9  ;;  %v782_v32 = vrot.slane %v781_v18, 4  ;;  %v784_v36 = vrot.slane %v783_v24, 6 }
 0x121   :  { %v3543_v54 = vrot.slane %v745_v23, 6  ;;  %v624_v0 = vadd.f32 %v609_v39, %v500_v31  ;;  %v499_v1 = vadd.f32 %v3478_v11, %v339_v52  ;;  %v377_v11 = vadd.f32 %v3470_v6, %v3454_v51  ;;  %v1261_v52 = vld [vmem:[#allocation7 + $0x2b0] sm:$0xff] }
 0x122   :  { %v2821_v22 = vrot.slane %v780_v14, 9  ;;  %v3516_v29 = vmax.f32 %v778_v13, %v2820_v62  ;;  %v2822_v37 = vrot.slane %v782_v32, 9  ;;  %v2823_v40 = vrot.slane %v784_v36, 9  ;;  %v612_v62 = vpop.f32.mrf.mxu3 }
 0x123   :  { %v502_v15 = vadd.f32 %v3474_v8, %v377_v11  ;;  %v769_v31 = vsel %vm768_vm7, %v3484_v34, %v3482_v33  ;;  %v1287_v33 = vld [vmem:[#allocation7 + $0x380] sm:$0xff]  ;;  %v1257_v11 = vld [vmem:[#allocation7 + $0x290] sm:$0xff] }
 0x124   :  { %v691_v27 = vpop.f32.mrf.mxu0  ;;  %v3514_v28 = vmax.f32 %v780_v14, %v2821_v22  ;;  %v732_v43 = vpop.f32.mrf.mxu1  ;;  %v3537_v47 = vmax.f32 %v782_v32, %v2822_v37  ;;  %v3547_v61 = vmax.f32 %v784_v36, %v2823_v40  ;;  %v623_v14 = vadd.f32 %v574_v48, %v499_v1 }
 0x125   :  { %v3520_v45 = vadd.f32 %v691_v27, %v619_v20  ;;  %v747_v56 = vadd.f32 %v732_v43, %v624_v0  ;;  %v342_v22 = vadd.f32 %v3476_v9, %v3456_v53  ;;  %v626_v51 = vadd.f32 %v612_v62, %v502_v15  ;;  %v577_v9 = vpop.f32.mrf.mxu2  ;;  %v1263_v43 = vld [vmem:[#allocation7 + $0x2c0] sm:$0xff]  ;;  %v1289_v0 = vld [vmem:[#allocation7 + $0x390] sm:$0x3f] }
 0x126   :  { %967 = vrot.lane.b32.xlu2 %v3514_v28, %s3176_s0  ;;  %965 = vrot.lane.b32.xlu1 %v3516_v29, %s3176_s0  ;;  %v2816_v1 = vrot.slane %v769_v31, 9 }
 0x127   :  { %961 = vrot.lane.b32.xlu0 %v3522_v60, %s3176_s0  ;;  %v785_v2 = vsel %vm768_vm7, %v3520_v45, %v3518_v35  ;;  %v766_v24 = vrot.slane %v747_v56, 6  ;;  %v501_v8 = vadd.f32 %v3480_v16, %v342_v22  ;;  %1387 = vmatpush.msra.mxu2 %v1263_v43  ;;  %v1277_v43 = vld [vmem:[#allocation7 + $0x330] sm:$0xff] }
 0x128   :  { %v2824_v38 = vrot.slane %v785_v2, 9  ;;  %2840 = vmatpush.msk.msra.mxu3 %vm379_vm3, %v1289_v0  ;;  %v1241_v0 = vld [vmem:[#allocation7 + $0x210] sm:$0xff] }
 0x129   :  { %v625_v37 = vadd.f32 %v577_v9, %v501_v8  ;;  %1388 = vmatpush.msra.mxu2 %v1261_v52  ;;  %v1275_v52 = vld [vmem:[#allocation7 + $0x320] sm:$0xff] }
 0x12a   :  { %v3539_v49 = vmax.f32 %v785_v2, %v2824_v38  ;;  %1414 = vmatpush.msra.mxu3 %v1287_v33  ;;  %v1239_v33 = vld [vmem:[#allocation7 + $0x200] sm:$0xff] }
 0x12c   :  { %v694_v7 = vpop.f32.mrf.mxu0  ;;  %v735_v6 = vpop.f32.mrf.mxu1 }
 0x12d   :  { %v3545_v55 = vadd.f32 %v694_v7, %v621_v30  ;;  %v749_v36 = vadd.f32 %v735_v6, %v626_v51 }
 0x12e   :  { %969 = vrot.lane.b32.xlu2 %v3537_v47, %s3176_s0  ;;  %973 = vrot.lane.b32.xlu1 %v3539_v49, %s3176_s0 }
 0x12f   :  { %971 = vrot.lane.b32.xlu0 %v3547_v61, %s3176_s0  ;;  %v793_v50 = vsel %vm770_vm5, %v3545_v55, %v3543_v54  ;;  %v797_v3 = vsel %vm379_vm3, %v3543_v54, %v3545_v55  ;;  %v795_v5 = vsel %vm773_vm6, %v3545_v55, %v3543_v54  ;;  %v767_v42 = vrot.slane %v749_v36, 6 }
 0x130   :  { %v794_v10 = vrot.slane %v793_v50, 2  ;;  %v798_v12 = vrot.slane %v797_v3, 6  ;;  %v796_v44 = vrot.slane %v795_v5, 4  ;;  %v1259_v3 = vld [vmem:[#allocation7 + $0x2a0] sm:$0xff]  ;;  %v1285_v5 = vld [vmem:[#allocation7 + $0x370] sm:$0xff] }
 0x131   :  { %1389 = vmatpush.msra.mxu2 %v1259_v3  ;;  %1415 = vmatpush.msra.mxu3 %v1285_v5  ;;  %v1237_v3 = vld [vmem:[#allocation7 + $0x1f0] sm:$0xff] }
 0x132   :  { %v2829_v41 = vrot.slane %v794_v10, 9  ;;  %v2831_v59 = vrot.slane %v798_v12, 9  ;;  %v2830_v13 = vrot.slane %v796_v44, 9  ;;  %v1269_v5 = vld [vmem:[#allocation7 + $0x2f0] sm:$0xff] }
 0x133   :  { %1390 = vmatpush.msra.mxu2 %v1257_v11  ;;  %v1267_v11 = vld [vmem:[#allocation7 + $0x2e0] sm:$0xff] }
 0x134   :  { %v697_v17 = vpop.f32.mrf.mxu0  ;;  %v3568_v18 = vmax.f32 %v794_v10, %v2829_v41  ;;  %v3570_v19 = vmax.f32 %v798_v12, %v2831_v59  ;;  %v3572_v21 = vmax.f32 %v796_v44, %v2830_v13  ;;  %v786_v10 = vsel %vm770_vm5, %v3520_v45, %v3518_v35 }
 0x135   :  { %v746_v4 = vadd.f32 %v697_v17, %v623_v14  ;;  %v3610_v44 = vmax.f32 %v769_v31, %v2816_v1  ;;  %v792_v59 = vsel %vm768_vm7, %v3545_v55, %v3543_v54  ;;  %v787_v13 = vrot.slane %v786_v10, 2  ;;  %v1255_v14 = vld [vmem:[#allocation7 + $0x280] sm:$0xff]  ;;  %v1253_v17 = vld [vmem:[#allocation7 + $0x270] sm:$0xff] }
 0x136   :  { %983 = vrot.lane.b32.xlu2 %v3568_v18, %s3176_s0  ;;  %987 = vrot.lane.b32.xlu1 %v3570_v19, %s3176_s0  ;;  %v2828_v62 = vrot.slane %v792_v59, 9  ;;  %v788_v54 = vsel %vm773_vm6, %v3520_v45, %v3518_v35  ;;  %v790_v55 = vsel %vm379_vm3, %v3518_v35, %v3520_v45  ;;  %v1245_v31 = vld [vmem:[#allocation7 + $0x230] sm:$0xff] }
 0x137   :  { %985 = vrot.lane.b32.xlu0 %v3572_v21, %s3176_s0  ;;  %v799_v20 = vsel %vm768_vm7, %v746_v4, %v766_v24  ;;  %v802_v25 = vsel %vm773_vm6, %v746_v4, %v766_v24  ;;  %v800_v53 = vsel %vm770_vm5, %v746_v4, %v766_v24  ;;  %v804_v46 = vsel %vm379_vm3, %v766_v24, %v746_v4  ;;  %v1204_v1 = vld [vmem:[#allocation7 + $0xf0] sm:$0xff] }
 0x138   :  { %v2832_v26 = vrot.slane %v799_v20, 9  ;;  %v803_v27 = vrot.slane %v802_v25, 4  ;;  %v801_v32 = vrot.slane %v800_v53, 2  ;;  %v805_v40 = vrot.slane %v804_v46, 6  ;;  %1391 = vmatpush.msra.mxu2 %v1255_v14  ;;  %1525 = vmatpush.msra.mxu0 %v1204_v1  ;;  %v1200_v10 = vld [vmem:[#allocation7 + $0xd0] sm:$0xff] }
 0x139   :  { %v2825_v22 = vrot.slane %v787_v13, 9  ;;  %v3630_v4 = vmax.f32 %v792_v59, %v2828_v62  ;;  %v789_v6 = vrot.slane %v788_v54, 4  ;;  %v791_v8 = vrot.slane %v790_v55, 6  ;;  %v1198_v59 = vld [vmem:[#allocation7 + $0xc0] sm:$0xff]  ;;  %v1265_v14 = vld [vmem:[#allocation7 + $0x2d0] sm:$0xff]  ;;  %v1264_v62 = vld [vmem:[#allocation7 + $0x2c8] sm:$0xff] }
 0x13a   :  { %v2834_v63 = vrot.slane %v803_v27, 9  ;;  %v2833_v2 = vrot.slane %v801_v32, 9  ;;  %v3587_v38 = vmax.f32 %v799_v20, %v2832_v26  ;;  %v2835_v48 = vrot.slane %v805_v40, 9  ;;  %1392 = vmatpush.msra.mxu2 %v1253_v17  ;;  %v1196_v17 = vld [vmem:[#allocation7 + $0xb0] sm:$0xff]  ;;  %v1288_v54 = vld [vmem:[#allocation7 + $0x388] sm:$0xff]  ;;  %v1194_v55 = vld [vmem:[#allocation7 + $0xa0] sm:$0xff] }
 0x13b   :  { %v3634_v20 = vmax.f32 %v787_v13, %v2825_v22  ;;  %v2826_v35 = vrot.slane %v789_v6, 9  ;;  %v2827_v45 = vrot.slane %v791_v8, 9  ;;  %v1233_v13 = vld [vmem:[#allocation7 + $0x1d0] sm:$0xff]  ;;  %v1262_v22 = vld [vmem:[#allocation7 + $0x2b8] sm:$0xff] }
 0x13c   :  { %v700_v16 = vpop.f32.mrf.mxu0  ;;  %v3589_v39 = vmax.f32 %v803_v27, %v2834_v63  ;;  %v3591_v23 = vmax.f32 %v801_v32, %v2833_v2  ;;  %v3608_v12 = vmax.f32 %v805_v40, %v2835_v48  ;;  %v1251_v2 = vld [vmem:[#allocation7 + $0x260] sm:$0xff]  ;;  %v1281_v40 = vld [vmem:[#allocation7 + $0x350] sm:$0xff] }
 0x13d   :  { %v748_v30 = vadd.f32 %v700_v16, %v625_v37  ;;  %v3643_v26 = vmax.f32 %v789_v6, %v2826_v35  ;;  %v3645_v27 = vmax.f32 %v791_v8, %v2827_v45  ;;  %v1283_v37 = vld [vmem:[#allocation7 + $0x360] sm:$0xff]  ;;  %1393 = vmatpush.msra.mxu2 %v1251_v2  ;;  %v1249_v16 = vld [vmem:[#allocation7 + $0x250] sm:$0xff]  ;;  %v1286_v6 = vld [vmem:[#allocation7 + $0x378] sm:$0xff] }
 0x13e   :  { %989 = vrot.lane.b32.xlu2 %v3587_v38, %s3176_s0  ;;  %993 = vrot.lane.b32.xlu1 %v3589_v39, %s3176_s0  ;;  %v1273_v48 = vld [vmem:[#allocation7 + $0x310] sm:$0xff]  ;;  %v1258_v35 = vld [vmem:[#allocation7 + $0x298] sm:$0xff]  ;;  %v1284_v45 = vld [vmem:[#allocation7 + $0x368] sm:$0xff] }
 0x13f   :  { %991 = vrot.lane.b32.xlu0 %v3591_v23, %s3176_s0  ;;  %v806_v7 = vsel %vm768_vm7, %v748_v30, %v767_v42  ;;  %v807_v50 = vsel %vm770_vm5, %v748_v30, %v767_v42  ;;  %v809_v24 = vsel %vm773_vm6, %v748_v30, %v767_v42  ;;  %v811_v9 = vsel %vm379_vm3, %v767_v42, %v748_v30  ;;  %v1247_v42 = vld [vmem:[#allocation7 + $0x240] sm:$0xff]  ;;  %v1192_v8 = vld [vmem:[#allocation7 + $0x90] sm:$0xff] }
 0x140   :  { %v2836_v34 = vrot.slane %v806_v7, 9  ;;  %v808_v56 = vrot.slane %v807_v50, 2  ;;  %v810_v25 = vrot.slane %v809_v24, 4  ;;  %v812_v32 = vrot.slane %v811_v9, 6  ;;  %1416 = vmatpush.msra.mxu3 %v1283_v37  ;;  %1394 = vmatpush.msra.mxu2 %v1249_v16  ;;  %v1279_v30 = vld [vmem:[#allocation7 + $0x340] sm:$0xff]  ;;  %v1260_v24 = vld [vmem:[#allocation7 + $0x2a8] sm:$0xff] }
 0x141   :  { %v1202_v50 = vld [vmem:[#allocation7 + $0xe0] sm:$0xff]  ;;  %v1228_v9 = vld [vmem:[#allocation7 + $0x1b0] sm:$0xff] }
 0x142   :  { %v3612_v41 = vmax.f32 %v806_v7, %v2836_v34  ;;  %v2837_v15 = vrot.slane %v808_v56, 9  ;;  %v2838_v53 = vrot.slane %v810_v25, 9  ;;  %v2839_v46 = vrot.slane %v812_v32, 9  ;;  %1417 = vmatpush.msra.mxu3 %v1281_v40  ;;  %1395 = vmatpush.msra.mxu2 %v1247_v42  ;;  %v1243_v7 = vld [vmem:[#allocation7 + $0x220] sm:$0xff]  ;;  %v1188_v2 = vld [vmem:[#allocation7 + $0x70] sm:$0xff]  ;;  %v1254_v40 = vld [vmem:[#allocation7 + $0x278] sm:$0xff] }
 0x143   :  { %v1271_v34 = vld [vmem:[#allocation7 + $0x300] sm:$0xff]  ;;  %1526 = vmatpush.msra.mxu0 %v1202_v50  ;;  %v1280_v42 = vld [vmem:[#allocation7 + $0x348] sm:$0xff] }
 0x144   :  { %v3632_v51 = vmax.f32 %v808_v56, %v2837_v15  ;;  %v3647_v36 = vmax.f32 %v810_v25, %v2838_v53  ;;  %v3655_v63 = vmax.f32 %v812_v32, %v2839_v46  ;;  %1418 = vmatpush.msra.mxu3 %v1279_v30  ;;  %1396 = vmatpush.msra.mxu2 %v1245_v31  ;;  %v1235_v56 = vld [vmem:[#allocation7 + $0x1e0] sm:$0xff]  ;;  %v1290_v15 = vld [vmem:[#allocation7 + $0x398] sm:$0x3f]  ;;  %v1256_v32 = vld [vmem:[#allocation7 + $0x288] sm:$0xff] }
 0x145   :  { %1527 = vmatpush.msra.mxu0 %v1200_v10  ;;  %v1230_v25 = vld [vmem:[#allocation7 + $0x1c0] sm:$0x3f]  ;;  %v1282_v46 = vld [vmem:[#allocation7 + $0x358] sm:$0xff]  ;;  %v1224_v31 = vld [vmem:[#allocation7 + $0x190] sm:$0xff] }
 0x146   :  { %995 = vrot.lane.b32.xlu2 %v3608_v12, %s3176_s0  ;;  %957 = vrot.lane.b32.xlu1 %v3610_v44, %s3176_s0  ;;  %v1190_v53 = vld [vmem:[#allocation7 + $0x80] sm:$0xff]  ;;  %v1248_v10 = vld [vmem:[#allocation7 + $0x248] sm:$0xff] }
 0x147   :  { %997 = vrot.lane.b32.xlu0 %v3612_v41, %s3176_s0  ;;  %1419 = vmatpush.msra.mxu3 %v1277_v43  ;;  %v1226_v16 = vld [vmem:[#allocation7 + $0x1a0] sm:$0xff]  ;;  %v1102_v43 = vld [vmem:[#allocation5] sm:$0x3] }
 0x148   :  { %1397 = vmatpush.msra.mxu2 %v1243_v7  ;;  %1528 = vmatpush.msra.mxu0 %v1198_v59  ;;  %v1186_v30 = vld [vmem:[#allocation7 + $0x60] sm:$0xff]  ;;  %v1252_v7 = vld [vmem:[#allocation7 + $0x268] sm:$0xff]  ;;  %v1105_v1 = vperm.slane %v1102_v43, 1 }
 0x149   :  { %1420 = vmatpush.msra.mxu3 %v1275_v52  ;;  %2846 = vmatpush.msk.msrb.mxu1 %vm379_vm3, %v1230_v25  ;;  %v1278_v52 = vld [vmem:[#allocation7 + $0x338] sm:$0xff]  ;;  %v1182_v50 = vld [vmem:[#allocation7 + $0x40] sm:$0xff] }
 0x14a   :  { %1398 = vmatpush.msra.mxu2 %v1241_v0  ;;  %1529 = vmatpush.msra.mxu0 %v1196_v17  ;;  %v1184_v0 = vld [vmem:[#allocation7 + $0x50] sm:$0xff]  ;;  %v1218_v59 = vld [vmem:[#allocation7 + $0x160] sm:$0xff] }
 0x14b   :  { %1421 = vmatpush.msra.mxu3 %v1273_v48  ;;  %1552 = vmatpush.msrb.mxu1 %v1228_v9  ;;  %v1222_v48 = vld [vmem:[#allocation7 + $0x180] sm:$0xff] }
 0x14c   :  { %1399 = vmatpush.msra.mxu2 %v1239_v33  ;;  %1530 = vmatpush.msra.mxu0 %v1194_v55  ;;  %v1250_v33 = vld [vmem:[#allocation7 + $0x258] sm:$0xff]  ;;  %v1178_v17 = vld [vmem:[#allocation7 + $0x20] sm:$0xff] }
 0x14d   :  { %1422 = vmatpush.msra.mxu3 %v1271_v34  ;;  %1553 = vmatpush.msrb.mxu1 %v1226_v16  ;;  %v1276_v34 = vld [vmem:[#allocation7 + $0x328] sm:$0xff]  ;;  %v1270_v55 = vld [vmem:[#allocation7 + $0x2f8] sm:$0xff] }
 0x14e   :  { %981 = vrot.lane.b32.xlu2 %v3630_v4, %s3176_s0  ;;  %999 = vrot.lane.b32.xlu1 %v3632_v51, %s3176_s0 }
 0x14f   :  { %975 = vrot.lane.b32.xlu0 %v3634_v20, %s3176_s0  ;;  %1400 = vmatpush.msra.mxu2 %v1237_v3  ;;  %v1220_v3 = vld [vmem:[#allocation7 + $0x170] sm:$0xff] }
 0x150   :  { %1423 = vmatpush.msra.mxu3 %v1269_v5  ;;  %1531 = vmatpush.msra.mxu0 %v1192_v8 }
 0x151   :  { %1401 = vmatpush.msra.mxu2 %v1235_v56  ;;  %1554 = vmatpush.msrb.mxu1 %v1224_v31  ;;  %v1274_v56 = vld [vmem:[#allocation7 + $0x318] sm:$0xff] }
 0x152   :  { %1424 = vmatpush.msra.mxu3 %v1267_v11  ;;  %1532 = vmatpush.msra.mxu0 %v1190_v53  ;;  %v1180_v11 = vld [vmem:[#allocation7 + $0x30] sm:$0xff]  ;;  %v1174_v53 = vld [vmem:[#allocation7] sm:$0xff] }
 0x153   :  { %1402 = vmatpush.msra.mxu2 %v1233_v13  ;;  %1555 = vmatpush.msrb.mxu1 %v1222_v48  ;;  %v1104_v13 = vperm.slane %v1102_v43, 0 }
 0x154   :  { %1425 = vmatpush.msra.mxu3 %v1265_v14  ;;  %1533 = vmatpush.msra.mxu0 %v1188_v2  ;;  %v1106_v14 = vrot.slane %v1105_v1, 6 }
 0x155   :  { %1433 = vmatpush.msrb.mxu2 %v1264_v62  ;;  %1556 = vmatpush.msrb.mxu1 %v1220_v3  ;;  %v1246_v62 = vld [vmem:[#allocation7 + $0x238] sm:$0xff]  ;;  %v1646_v3 = vld [vmem:[#allocation7 + $0x480] sm:$0xff] }
 0x156   :  { %977 = vrot.lane.b32.xlu2 %v3643_v26, %s3176_s0  ;;  %979 = vrot.lane.b32.xlu1 %v3645_v27, %s3176_s0  ;;  %v1110_v8 = vsel %vm773_vm6, %v1104_v13, %v1106_v14  ;;  %v1108_v1 = vsel %vm770_vm5, %v1104_v13, %v1106_v14 }
 0x157   :  { %1001 = vrot.lane.b32.xlu0 %v3647_v36, %s3176_s0  ;;  %2843 = vmatpush.msk.msrb.mxu3 %vm379_vm3, %v1290_v15  ;;  %v1272_v15 = vld [vmem:[#allocation7 + $0x308] sm:$0xff]  ;;  %v3667_v31 = vrot.slane %v1110_v8, 4 }
 0x158   :  { %1434 = vmatpush.msrb.mxu2 %v1262_v22  ;;  %1534 = vmatpush.msra.mxu0 %v1186_v30  ;;  %v1216_v22 = vld [vmem:[#allocation7 + $0x150] sm:$0xff]  ;;  %v1210_v30 = vld [vmem:[#allocation7 + $0x120] sm:$0xff] }
 0x159   :  { %1460 = vmatpush.msrb.mxu3 %v1288_v54  ;;  %1557 = vmatpush.msrb.mxu1 %v1218_v59  ;;  %v1244_v54 = vld [vmem:[#allocation7 + $0x228] sm:$0xff] }
 0x15a   :  { %1435 = vmatpush.msrb.mxu2 %v1260_v24  ;;  %1535 = vmatpush.msra.mxu0 %v1184_v0  ;;  %v1176_v24 = vld [vmem:[#allocation7 + $0x10] sm:$0xff]  ;;  %v1112_v0 = vsel %vm379_vm3, %v1106_v14, %v1104_v13 }
 0x15b   :  { %1461 = vmatpush.msrb.mxu3 %v1286_v6  ;;  %1558 = vmatpush.msrb.mxu1 %v1216_v22  ;;  %v1214_v6 = vld [vmem:[#allocation7 + $0x140] sm:$0xff]  ;;  %v3680_v59 = vrot.slane %v1112_v0, 6 }
 0x15c   :  { %1436 = vmatpush.msrb.mxu2 %v1258_v35  ;;  %1536 = vmatpush.msra.mxu0 %v1182_v50  ;;  %v1242_v35 = vld [vmem:[#allocation7 + $0x218] sm:$0xff]  ;;  %v1206_v22 = vld [vmem:[#allocation7 + $0x100] sm:$0xff] }
 0x15d   :  { %1462 = vmatpush.msrb.mxu3 %v1284_v45  ;;  %1559 = vmatpush.msrb.mxu1 %v1214_v6  ;;  %v1268_v45 = vld [vmem:[#allocation7 + $0x2e8] sm:$0xff] }
 0x15e   :  { %1003 = vrot.lane.b32.xlu2 %v3655_v63, %s3176_s0  ;;  %1437 = vmatpush.msrb.mxu2 %v1256_v32  ;;  %v1212_v32 = vld [vmem:[#allocation7 + $0x130] sm:$0xff] }
 0x15f   :  { %1463 = vmatpush.msrb.mxu3 %v1282_v46  ;;  %1537 = vmatpush.msra.mxu0 %v1180_v11  ;;  %v1648_v46 = vld [vmem:[#allocation7 + $0x490] sm:$0xff] }
 0x160   :  { %1438 = vmatpush.msrb.mxu2 %v1254_v40  ;;  %1560 = vmatpush.msrb.mxu1 %v1212_v32  ;;  %v1240_v40 = vld [vmem:[#allocation7 + $0x208] sm:$0xff]  ;;  %v1208_v11 = vld [vmem:[#allocation7 + $0x110] sm:$0xff] }
 0x161   :  { %1464 = vmatpush.msrb.mxu3 %v1280_v42  ;;  %1538 = vmatpush.msra.mxu0 %v1178_v17  ;;  %v1266_v42 = vld [vmem:[#allocation7 + $0x2d8] sm:$0xff] }
 0x162   :  { %1439 = vmatpush.msrb.mxu2 %v1252_v7  ;;  %1561 = vmatpush.msrb.mxu1 %v1210_v30 }
 0x163   :  { %1465 = vmatpush.msrb.mxu3 %v1278_v52  ;;  %1539 = vmatpush.msra.mxu0 %v1176_v24  ;;  %v1674_v24 = vld [vmem:[#allocation7 + $0x560] sm:$0x3f] }
 0x164   :  { %1440 = vmatpush.msrb.mxu2 %v1250_v33  ;;  %1562 = vmatpush.msrb.mxu1 %v1208_v11  ;;  %v1117_v11 = vrot.slane %v3680_v59, 1 }
 0x165   :  { %1466 = vmatpush.msrb.mxu3 %v1276_v34  ;;  %1540 = vmatpush.msra.mxu0 %v1174_v53  ;;  %v3675_v34 = vsel %vm768_vm7, %v1104_v13, %v1106_v14  ;;  %v1644_v13 = vld [vmem:[#allocation7 + $0x470] sm:$0xff] }
 0x166   :  { %1441 = vmatpush.msrb.mxu2 %v1248_v10  ;;  %v1116_v10 = vrot.slane %v3667_v31, 1  ;;  %v3686_v14 = vrot.slane %v3675_v34, 1  ;;  %1563 = vmatpush.msrb.mxu1 %v1206_v22 }
 0x167   :  { %1467 = vmatpush.msrb.mxu3 %v1274_v56  ;;  %1722 = vmatpush.msrb.mxu0 %v1648_v46  ;;  %v1238_v56 = vld [vmem:[#allocation7 + $0x1f8] sm:$0xff] }
 0x168   :  { %1442 = vmatpush.msrb.mxu2 %v1246_v62  ;;  %v3683_v62 = vrot.slane %v1108_v1, 2  ;;  %2852 = vmatpush.msk.msra.mxu1 %vm379_vm3, %v1674_v24  ;;  %v1636_v1 = vld [vmem:[#allocation7 + $0x430] sm:$0xff] }
 0x169   :  { %1468 = vmatpush.msrb.mxu3 %v1272_v15  ;;  %1723 = vmatpush.msrb.mxu0 %v1646_v3 }
 0x16a   :  { %1443 = vmatpush.msrb.mxu2 %v1244_v54 }
 0x16b   :  { %1469 = vmatpush.msrb.mxu3 %v1270_v55  ;;  %1724 = vmatpush.msrb.mxu0 %v1644_v13 }
 0x16c   :  { %1444 = vmatpush.msrb.mxu2 %v1242_v35  ;;  %v1234_v35 = vld [vmem:[#allocation7 + $0x1d8] sm:$0xff] }
 0x16d   :  { %1470 = vmatpush.msrb.mxu3 %v1268_v45  ;;  %v3697_v45 = vrot.slane %v3683_v62, 1 }
 0x16e   :  { %1445 = vmatpush.msrb.mxu2 %v1240_v40  ;;  %v1672_v40 = vld [vmem:[#allocation7 + $0x550] sm:$0xff] }
 0x16f   :  { %1471 = vmatpush.msrb.mxu3 %v1266_v42  ;;  %4404 = vst [vmem:[#allocation26_spill] sm:$0xff] %v3697_v45  ;;  %1749 = vmatpush.msra.mxu1 %v1672_v40 }
 0x170   :  { %1446 = vmatpush.msrb.mxu2 %v1238_v56 }
 0x180   :  { %v3661_v37 = vpop.permute.xlu2 %967 }
 0x181   :  { %v1010_v25 = vrot.slane %v3661_v37, 2 }
 0x183   :  { %v1035_v7 = vsel %vm1029_vm8, %v3661_v37, %v1010_v25 }
 0x184   :  { %v1083_v37 = vmax.f32 %v3514_v28, %v1035_v7  ;;  %v1236_v28 = vld [vmem:[#allocation7 + $0x1e8] sm:$0xff] }
 0x185   :  { %1447 = vmatpush.msrb.mxu2 %v1236_v28 }
 0x186   :  { %v1131_v6 = vadd.f32 %v1116_v10, %v1083_v37 }
 0x187   :  { %1448 = vmatpush.msrb.mxu2 %v1234_v35 }
 0x188   :  { %v970_v5 = vpop.permute.xlu2 %969  ;;  %v1155_v7 = vmax.f32 %v1131_v6, 0.0 }
 0x189   :  { %v1011_v9 = vrot.slane %v970_v5, 2 }
 0x18b   :  { %v1036_v48 = vsel %vm1029_vm8, %v970_v5, %v1011_v9  ;;  %v1640_v9 = vld [vmem:[#allocation7 + $0x450] sm:$0xff] }
 0x18c   :  { %v1084_v5 = vmax.f32 %v3537_v47, %v1036_v48  ;;  %v1642_v47 = vld [vmem:[#allocation7 + $0x460] sm:$0xff] }
 0x18d   :  { %1725 = vmatpush.msrb.mxu0 %v1642_v47 }
 0x18f   :  { %1726 = vmatpush.msrb.mxu0 %v1640_v9  ;;  %v1632_v9 = vld [vmem:[#allocation7 + $0x410] sm:$0xff] }
 0x190   :  { %v3665_v2 = vpop.permute.xlu2 %983  ;;  %v964_v16 = vpop.permute.xlu1 %963 }
 0x191   :  { %v960_v43 = vpop.permute.xlu0 %959  ;;  %v1008_v33 = vrot.slane %v964_v16, 2  ;;  %v1018_v32 = vrot.slane %v3665_v2, 2 }
 0x192   :  { %v1006_v52 = vrot.slane %v960_v43, 2 }
 0x193   :  { %v1033_v15 = vsel %vm1029_vm8, %v964_v16, %v1008_v33  ;;  %v1668_v33 = vld [vmem:[#allocation7 + $0x530] sm:$0xff] }
 0x194   :  { %v1031_v50 = vsel %vm1029_vm8, %v960_v43, %v1006_v52  ;;  %v1081_v53 = vmax.f32 %v3497_v57, %v1033_v15  ;;  %v1638_v43 = vld [vmem:[#allocation7 + $0x440] sm:$0xff] }
 0x195   :  { %v1079_v17 = vmax.f32 %v3499_v58, %v1031_v50  ;;  %v1132_v58 = vadd.f32 %v3680_v59, %v1084_v5  ;;  %1727 = vmatpush.msrb.mxu0 %v1638_v43  ;;  %v1670_v52 = vld [vmem:[#allocation7 + $0x540] sm:$0xff]  ;;  %v3708_v50 = vsel %vm1029_vm8, %v3665_v2, %v1018_v32  ;;  %v3716_v2 = vperm.slane %v1155_v7, 2  ;;  %v1664_v32 = vld [vmem:[#allocation7 + $0x510] sm:$0xff] }
 0x196   :  { %v1129_v57 = vadd.f32 %v3697_v45, %v1081_v53  ;;  %1750 = vmatpush.msra.mxu1 %v1670_v52  ;;  %v1634_v15 = vld [vmem:[#allocation7 + $0x420] sm:$0xff]  ;;  %v1091_v6 = vmax.f32 %v3568_v18, %v3708_v50 }
 0x197   :  { %v1127_v46 = vadd.f32 %v3686_v14, %v1079_v17  ;;  %v1156_v0 = vmax.f32 %v1132_v58, 0.0  ;;  %1728 = vmatpush.msrb.mxu0 %v1636_v1  ;;  %v3714_v17 = vperm.slane %v1155_v7, 0  ;;  %v1630_v18 = vld [vmem:[#allocation7 + $0x400] sm:$0xff]  ;;  %v1628_v1 = vld [vmem:[#allocation7 + $0x3f0] sm:$0xff] }
 0x198   :  { %v3690_v54 = vpop.permute.xlu2 %989  ;;  %v966_v55 = vpop.permute.xlu1 %965  ;;  %1751 = vmatpush.msra.mxu1 %v1668_v33 }
 0x199   :  { %v1009_v8 = vrot.slane %v966_v55, 2  ;;  %v962_v25 = vpop.permute.xlu0 %961  ;;  %v1021_v37 = vrot.slane %v3690_v54, 2  ;;  %1729 = vmatpush.msrb.mxu0 %v1634_v15  ;;  %v3719_v47 = vperm.slane %v1156_v0, 0  ;;  %v3721_v24 = vperm.slane %v1156_v0, 2  ;;  %v1662_v0 = vld [vmem:[#allocation7 + $0x500] sm:$0xff] }
 0x19a   :  { %v1007_v30 = vrot.slane %v962_v25, 2 }
 0x19b   :  { %v1034_v16 = vsel %vm1029_vm8, %v966_v55, %v1009_v8  ;;  %v1666_v55 = vld [vmem:[#allocation7 + $0x520] sm:$0xff]  ;;  %v1153_v8 = vmax.f32 %v1129_v57, 0.0  ;;  %1730 = vmatpush.msrb.mxu0 %v1632_v9 }
 0x19c   :  { %v1082_v42 = vmax.f32 %v3516_v29, %v1034_v16  ;;  %v1032_v48 = vsel %vm1029_vm8, %v962_v25, %v1007_v30  ;;  %v1151_v29 = vmax.f32 %v1127_v46, 0.0  ;;  %1752 = vmatpush.msra.mxu1 %v1666_v55  ;;  %v1046_v46 = vsel %vm1029_vm8, %v3690_v54, %v1021_v37 }
 0x19d   :  { %v1080_v3 = vmax.f32 %v3522_v60, %v1032_v48  ;;  %v3738_v57 = vperm.slane %v1153_v8, 0  ;;  %v3740_v54 = vperm.slane %v1153_v8, 2  ;;  %1731 = vmatpush.msrb.mxu0 %v1630_v18  ;;  %v1094_v33 = vmax.f32 %v3587_v38, %v1046_v46  ;;  %v1624_v46 = vld [vmem:[#allocation7 + $0x3d0] sm:$0xff] }
 0x19e   :  { %v1130_v56 = vadd.f32 %v3667_v31, %v1082_v42  ;;  %v3725_v25 = vperm.slane %v1151_v29, 0  ;;  %1753 = vmatpush.msra.mxu1 %v1664_v32  ;;  %v3731_v30 = vperm.slane %v1151_v29, 2 }
 0x19f   :  { %v1128_v28 = vadd.f32 %v3683_v62, %v1080_v3  ;;  %v1660_v3 = vld [vmem:[#allocation7 + $0x4f0] sm:$0xff]  ;;  %1732 = vmatpush.msrb.mxu0 %v1628_v1  ;;  %v1622_v1 = vld [vmem:[#allocation7 + $0x3c0] sm:$0xff] }
 0x1a0   :  { %v996_v5 = vpop.permute.xlu2 %995  ;;  %v974_v13 = vpop.permute.xlu1 %973  ;;  %v1154_v16 = vmax.f32 %v1130_v56, 0.0  ;;  %1754 = vmatpush.msra.mxu1 %v1662_v0 }
 0x1a1   :  { %v1013_v22 = vrot.slane %v974_v13, 2  ;;  %v972_v60 = vpop.permute.xlu0 %971  ;;  %v1152_v35 = vmax.f32 %v1128_v28, 0.0  ;;  %v1024_v40 = vrot.slane %v996_v5, 2  ;;  %v1626_v28 = vld [vmem:[#allocation7 + $0x3e0] sm:$0xff] }
 0x1a2   :  { %v1012_v53 = vrot.slane %v972_v60, 2  ;;  %v3751_v37 = vperm.slane %v1154_v16, 0  ;;  %1755 = vmatpush.msra.mxu1 %v1660_v3  ;;  %1733 = vmatpush.msrb.mxu0 %v1626_v28 }
 0x1a3   :  { %v1038_v58 = vsel %vm1029_vm8, %v974_v13, %v1013_v22  ;;  %v3733_v43 = vperm.slane %v1152_v35, 0  ;;  %v3735_v7 = vperm.slane %v1152_v35, 2  ;;  %v3758_v38 = vsel %vm1029_vm8, %v996_v5, %v1024_v40 }
 0x1a4   :  { %v1086_v42 = vmax.f32 %v3539_v49, %v1038_v58  ;;  %v1037_v52 = vsel %vm1029_vm8, %v972_v60, %v1012_v53  ;;  %v3760_v22 = vperm.slane %v1154_v16, 2  ;;  %v1658_v58 = vld [vmem:[#allocation7 + $0x4e0] sm:$0xff]  ;;  %v3765_v53 = vadd.f32 %v3686_v14, %v1091_v6  ;;  %v1656_v6 = vld [vmem:[#allocation7 + $0x4d0] sm:$0xff]  ;;  %1734 = vmatpush.msrb.mxu0 %v1624_v46 }
 0x1a5   :  { %v1085_v48 = vmax.f32 %v3547_v61, %v1037_v52  ;;  %v1340_v50 = vsel %vm1339_vm9, %v3733_v43, %v3725_v25  ;;  %v1353_v29 = vsel %vm1339_vm9, %v3735_v7, %v3731_v30  ;;  %v3770_v16 = vadd.f32 %v3667_v31, %v1094_v33  ;;  %1756 = vmatpush.msra.mxu1 %v1658_v58  ;;  %v1654_v33 = vld [vmem:[#allocation7 + $0x4c0] sm:$0xff]  ;;  %v1231_v58 = vld [vmem:[#allocation7 + $0x1c8] sm:$0x3f] }
 0x1a6   :  { %v1134_v49 = vadd.f32 %v3675_v34, %v1086_v42  ;;  %v1342_v61 = vsel %vm1341_vm10, %v3738_v57, %v1340_v50  ;;  %v1354_v56 = vsel %vm1341_vm10, %v3740_v54, %v1353_v29  ;;  %v1097_v40 = vmax.f32 %v3608_v12, %v3758_v38  ;;  %1735 = vmatpush.msrb.mxu0 %v1622_v1 }
 0x1a7   :  { %v1133_v55 = vadd.f32 %v1117_v11, %v1085_v48  ;;  %v1344_v32 = vsel %vm1343_vm11, %v3751_v37, %v1342_v61  ;;  %v1355_v18 = vsel %vm1343_vm11, %v3760_v22, %v1354_v56  ;;  %1757 = vmatpush.msra.mxu1 %v1656_v6  ;;  %v1205_v6 = vld [vmem:[#allocation7 + $0xf8] sm:$0xff] }
 0x1a8   :  { %v982_v13 = vpop.permute.xlu2 %981  ;;  %v988_v15 = vpop.permute.xlu1 %987  ;;  %v1158_v60 = vmax.f32 %v1134_v49, 0.0  ;;  %v1346_v3 = vsel %vm1345_vm12, %v3714_v17, %v1344_v32 }
 0x1a9   :  { %v1017_v8 = vrot.slane %v982_v13, 2  ;;  %v986_v35 = vpop.permute.xlu0 %985  ;;  %v1020_v9 = vrot.slane %v988_v15, 2  ;;  %v1157_v52 = vmax.f32 %v1133_v55, 0.0  ;;  %v1348_v28 = vsel %vm1347_vm13, %v3719_v47, %v1346_v3  ;;  %1758 = vmatpush.msra.mxu1 %v1654_v33  ;;  %v1229_v33 = vld [vmem:[#allocation7 + $0x1b8] sm:$0xff]  ;;  %v1227_v3 = vld [vmem:[#allocation7 + $0x1a8] sm:$0xff] }
 0x1aa   :  { %v1019_v5 = vrot.slane %v986_v35, 2  ;;  %v3774_v42 = vperm.slane %v1158_v60, 0  ;;  %v3786_v61 = vperm.slane %v1158_v60, 2 }
 0x1ab   :  { %v1042_v0 = vsel %vm1029_vm8, %v982_v13, %v1017_v8  ;;  %v1045_v49 = vsel %vm1029_vm8, %v988_v15, %v1020_v9  ;;  %v3788_v56 = vperm.slane %v1157_v52, 0  ;;  %v3790_v38 = vperm.slane %v1157_v52, 2  ;;  %v1620_v15 = vld [vmem:[#allocation7 + $0x3b0] sm:$0xff]  ;;  %v1618_v9 = vld [vmem:[#allocation7 + $0x3a0] sm:$0xff] }
 0x1ac   :  { %4405 = vst [vmem:[#allocation27_spill] sm:$0xff] %v3774_v42  ;;  %v1044_v48 = vsel %vm1029_vm8, %v986_v35, %v1019_v5  ;;  %v1090_v50 = vmax.f32 %v3630_v4, %v1042_v0  ;;  %v1093_v12 = vmax.f32 %v3570_v19, %v1045_v49  ;;  %v1356_v13 = vsel %vm1345_vm12, %v3716_v2, %v1355_v18  ;;  %v1652_v4 = vld [vmem:[#allocation7 + $0x4b0] sm:$0xff]  ;;  %v1650_v0 = vld [vmem:[#allocation7 + $0x4a0] sm:$0xff] }
 0x1ad   :  { %v1092_v29 = vmax.f32 %v3572_v21, %v1044_v48  ;;  %4406 = vst [vmem:[#allocation28_spill] sm:$0xff] %v3786_v61  ;;  %v1357_v60 = vsel %vm1347_vm13, %v3721_v24, %v1356_v13  ;;  %v1350_v55 = vsel %vm1349_vm14, %v3788_v56, %v1348_v28  ;;  %1736 = vmatpush.msrb.mxu0 %v1620_v15  ;;  %v1163_v5 = vmax.f32 %v3765_v53, 0.0 }
 0x1ae   :  { %v1141_v19 = vadd.f32 %v3697_v45, %v1093_v12  ;;  %v1358_v8 = vsel %vm1349_vm14, %v3790_v38, %v1357_v60  ;;  %v1138_v32 = vadd.f32 %v3675_v34, %v1090_v50  ;;  %v3808_v18 = vsel %vm1351_vm15, %v3774_v42, %v1350_v55  ;;  %1759 = vmatpush.msra.mxu1 %v1652_v4  ;;  %v1203_v12 = vld [vmem:[#allocation7 + $0xe8] sm:$0xff] }
 0x1af   :  { %v1140_v21 = vadd.f32 %v3683_v62, %v1092_v29  ;;  %v1166_v49 = vmax.f32 %v3770_v16, 0.0  ;;  %v1145_v48 = vadd.f32 %v1117_v11, %v1097_v40  ;;  %1403 = vmatmul.f32.vlgmr.msra.gmra.mxu2 %v3808_v18  ;;  %v3816_v53 = vsel %vm1351_vm15, %v3786_v61, %v1358_v8  ;;  %1737 = vmatpush.msrb.mxu0 %v1618_v9 }
 0x1b0   :  { %v994_v35 = vpop.permute.xlu1 %993  ;;  %4407 = vst [vmem:[#allocation29_spill] sm:$0xff] %v3816_v53  ;;  %v1165_v50 = vmax.f32 %v1141_v19, 0.0  ;;  %2841 = vmatmul.msk.f32.vlgmr.msra.gmra.mxu3 %vm1376_vm1, %v3816_v53  ;;  %2849 = vmatpush.msk.msra.mxu2 %vm379_vm3, %v1231_v58  ;;  %v1682_v11 = vsel %vm1339_vm9, %v3738_v57, %v3733_v43  ;;  %v1323_v13 = vperm.slane %v1163_v5, 0  ;;  %v1689_v15 = vsel %vm1339_vm9, %v3740_v54, %v3735_v7  ;;  %v1195_v53 = vld [vmem:[#allocation7 + $0xa8] sm:$0xff] }
 0x1b1   :  { %v1164_v46 = vmax.f32 %v1140_v21, 0.0  ;;  %v992_v52 = vpop.permute.xlu0 %991  ;;  %v1023_v1 = vrot.slane %v994_v35, 2  ;;  %1571 = vmatpush.msra.mxu3 %v1205_v6  ;;  %1760 = vmatpush.msra.mxu1 %v1650_v0  ;;  %v1162_v4 = vmax.f32 %v1138_v32, 0.0  ;;  %v1201_v21 = vld [vmem:[#allocation7 + $0xd8] sm:$0xff]  ;;  %v1324_v28 = vperm.slane %v1163_v5, 2  ;;  %v1199_v6 = vld [vmem:[#allocation7 + $0xc8] sm:$0xff] }
 0x1b2   :  { %v1022_v29 = vrot.slane %v992_v52, 2  ;;  %1598 = vmatpush.msra.mxu2 %v1229_v33  ;;  %v3832_v60 = vperm.slane %v1166_v49, 0  ;;  %v3834_v55 = vperm.slane %v1166_v49, 2  ;;  %v1169_v8 = vmax.f32 %v1145_v48, 0.0  ;;  %v3850_v48 = vpop.permute.xlu2 %977 }
 0x1b3   :  { %v3824_v16 = vperm.slane %v1164_v46, 0  ;;  %v1048_v40 = vsel %vm1029_vm8, %v994_v35, %v1023_v1  ;;  %v3830_v19 = vperm.slane %v1164_v46, 2  ;;  %1572 = vmatpush.msra.mxu3 %v1203_v12  ;;  %v1225_v35 = vld [vmem:[#allocation7 + $0x198] sm:$0xff]  ;;  %v3838_v58 = vsel %vm1341_vm10, %v3751_v37, %v1682_v11  ;;  %v1223_v12 = vld [vmem:[#allocation7 + $0x188] sm:$0xff] }
 0x1b4   :  { %v3840_v9 = vperm.slane %v1165_v50, 0  ;;  %v1096_v32 = vmax.f32 %v3589_v39, %v1048_v40  ;;  %v1047_v46 = vsel %vm1029_vm8, %v992_v52, %v1022_v29  ;;  %1599 = vmatpush.msra.mxu2 %v1227_v3  ;;  %v1690_v5 = vsel %vm1341_vm10, %v3760_v22, %v1689_v15  ;;  %v1197_v11 = vld [vmem:[#allocation7 + $0xb8] sm:$0xff] }
 0x1b5   :  { %v3846_v0 = vperm.slane %v1165_v50, 2  ;;  %v1360_v49 = vsel %vm1339_vm9, %v3824_v16, %v1323_v13  ;;  %v1095_v1 = vmax.f32 %v3591_v23, %v1047_v46  ;;  %1573 = vmatpush.msra.mxu3 %v1201_v21  ;;  %v1483_v39 = vperm.slane %v1162_v4, 0  ;;  %v1221_v21 = vld [vmem:[#allocation7 + $0x178] sm:$0xff] }
 0x1b6   :  { %v1367_v52 = vsel %vm1339_vm9, %v3830_v19, %v1324_v28  ;;  %v1144_v29 = vadd.f32 %v3680_v59, %v1096_v32  ;;  %1600 = vmatpush.msra.mxu2 %v1225_v35  ;;  %v3856_v3 = vperm.slane %v1169_v8, 0  ;;  %v1484_v15 = vperm.slane %v1162_v4, 2 }
 0x1b7   :  { %v1143_v61 = vadd.f32 %v1116_v10, %v1095_v1  ;;  %1574 = vmatpush.msra.mxu3 %v1199_v6  ;;  %v3860_v46 = vperm.slane %v1169_v8, 2  ;;  %v1015_v42 = vrot.slane %v3850_v48, 2  ;;  %v1361_v59 = vsel %vm1341_vm10, %v3840_v9, %v1360_v49  ;;  %v1219_v10 = vld [vmem:[#allocation7 + $0x168] sm:$0xff] }
 0x1b8   :  { %v958_v33 = vpop.permute.xlu1 %957  ;;  %v1168_v45 = vmax.f32 %v1144_v29, 0.0  ;;  %1601 = vmatpush.msra.mxu2 %v1223_v12  ;;  %v1368_v32 = vsel %vm1341_vm10, %v3846_v0, %v1367_v52  ;;  %v1499_v8 = vsel %vm1339_vm9, %v1323_v13, %v1483_v39  ;;  %v1193_v29 = vld [vmem:[#allocation7 + $0x98] sm:$0xff] }
 0x1b9   :  { %v998_v40 = vpop.permute.xlu0 %997  ;;  %v1005_v50 = vrot.slane %v958_v33, 2  ;;  %v1167_v35 = vmax.f32 %v1143_v61, 0.0  ;;  %1575 = vmatpush.msra.mxu3 %v1197_v11  ;;  %v1506_v61 = vsel %vm1339_vm9, %v1324_v28, %v1484_v15  ;;  %v1217_v52 = vld [vmem:[#allocation7 + $0x158] sm:$0xff]  ;;  %v1215_v28 = vld [vmem:[#allocation7 + $0x148] sm:$0xff]  ;;  %v3900_v15 = vsel %vm1343_vm11, %v3716_v2, %v1690_v5 }
 0x1ba   :  { %v1025_v23 = vrot.slane %v998_v40, 2  ;;  %v3870_v6 = vperm.slane %v1168_v45, 0  ;;  %1602 = vmatpush.msra.mxu2 %v1221_v21  ;;  %v3875_v49 = vperm.slane %v1168_v45, 2 }
 0x1bb   :  { %v1030_v31 = vsel %vm1029_vm8, %v958_v33, %v1005_v50  ;;  %v3877_v11 = vperm.slane %v1167_v35, 0  ;;  %v3879_v33 = vperm.slane %v1167_v35, 2  ;;  %1576 = vmatpush.msra.mxu3 %v1195_v53 }
 0x1bc   :  { %v1050_v4 = vsel %vm1029_vm8, %v998_v40, %v1025_v23  ;;  %v1078_v12 = vmax.f32 %v3610_v44, %v1030_v31  ;;  %v1191_v40 = vld [vmem:[#allocation7 + $0x88] sm:$0xff]  ;;  %1603 = vmatpush.msra.mxu2 %v1219_v10  ;;  %v1362_v44 = vsel %vm1343_vm11, %v3832_v60, %v1361_v59  ;;  %v1189_v59 = vld [vmem:[#allocation7 + $0x78] sm:$0xff]  ;;  %v1500_v31 = vsel %vm1341_vm10, %v3824_v16, %v1499_v8 }
 0x1bd   :  { %v1098_v1 = vmax.f32 %v3612_v41, %v1050_v4  ;;  %v1369_v41 = vsel %vm1343_vm11, %v3834_v55, %v1368_v32  ;;  %1577 = vmatpush.msra.mxu3 %v1193_v29  ;;  %v1363_v53 = vsel %vm1345_vm12, %v3877_v11, %v1362_v44  ;;  %v1507_v10 = vsel %vm1341_vm10, %v3830_v19, %v1506_v61  ;;  %v1187_v8 = vld [vmem:[#allocation7 + $0x68] sm:$0xff] }
 0x1be   :  { %v1126_v39 = vadd.f32 %v3675_v34, %v1078_v12  ;;  %v1370_v50 = vsel %vm1345_vm12, %v3879_v33, %v1369_v41  ;;  %1604 = vmatpush.msra.mxu2 %v1217_v52  ;;  %v1364_v4 = vsel %vm1347_vm13, %v3870_v6, %v1363_v53  ;;  %v1185_v53 = vld [vmem:[#allocation7 + $0x58] sm:$0xff] }
 0x1bf   :  { %v1146_v13 = vadd.f32 %v3675_v34, %v1098_v1  ;;  %v3896_v34 = vsel %vm1343_vm11, %v3714_v17, %v3838_v58  ;;  %v3910_v58 = vsel %vm1029_vm8, %v3850_v48, %v1015_v42  ;;  %1578 = vmatpush.msra.mxu3 %v1191_v40  ;;  %v1371_v32 = vsel %vm1347_vm13, %v3875_v49, %v1370_v50  ;;  %v1213_v1 = vld [vmem:[#allocation7 + $0x138] sm:$0xff]  ;;  %v1004_v40 = vpop.permute.xlu2 %1003 }
 0x1c0   :  { %v3887_v45 = vpop.permute.xlu1 %999  ;;  %v1150_v21 = vmax.f32 %v1126_v39, 0.0  ;;  %1605 = vmatpush.msra.mxu2 %v1215_v28  ;;  %v1365_v48 = vsel %vm1349_vm14, %v3856_v3, %v1364_v4  ;;  %v1501_v39 = vsel %vm1343_vm11, %v3840_v9, %v1500_v31  ;;  %v1372_v50 = vsel %vm1349_vm14, %v3860_v46, %v1371_v32 }
 0x1c1   :  { %v1170_v23 = vmax.f32 %v1146_v13, 0.0  ;;  %v976_v35 = vpop.permute.xlu0 %975  ;;  %1579 = vmatpush.msra.mxu3 %v1189_v59  ;;  %v1026_v42 = vrot.slane %v3887_v45, 2  ;;  %v1028_v31 = vrot.slane %v1004_v40, 2 }
 0x1c2   :  { %v1014_v5 = vrot.slane %v976_v35, 2  ;;  %v1481_v52 = vperm.slane %v1150_v21, 0  ;;  %v1482_v13 = vperm.slane %v1150_v21, 2  ;;  %1606 = vmatpush.msra.mxu2 %v1213_v1  ;;  %v1181_v1 = vld [vmem:[#allocation7 + $0x38] sm:$0xff] }
 0x1c3   :  { %v3914_v12 = vperm.slane %v1170_v23, 0  ;;  %v3916_v29 = vperm.slane %v1170_v23, 2  ;;  %v1211_v23 = vld [vmem:[#allocation7 + $0x128] sm:$0xff]  ;;  %1580 = vmatpush.msra.mxu3 %v1187_v8 }
 0x1c4   :  { %v1039_v61 = vsel %vm1029_vm8, %v976_v35, %v1014_v5  ;;  %v1485_v44 = vsel %vm1339_vm9, %v3725_v25, %v1481_v52  ;;  %v1492_v41 = vsel %vm1339_vm9, %v3731_v30, %v1482_v13  ;;  %v3946_v30 = vsel %vm1339_vm9, %v3834_v55, %v3846_v0  ;;  %v1183_v35 = vld [vmem:[#allocation7 + $0x48] sm:$0xff]  ;;  %1607 = vmatpush.msra.mxu2 %v1211_v23 }
 0x1c5   :  { %v1087_v28 = vmax.f32 %v3634_v20, %v1039_v61  ;;  %v1486_v21 = vsel %vm1341_vm10, %v3733_v43, %v1485_v44  ;;  %v1493_v59 = vsel %vm1341_vm10, %v3735_v7, %v1492_v41  ;;  %v3937_v25 = vsel %vm1351_vm15, %v3914_v12, %v1365_v48  ;;  %v1209_v7 = vld [vmem:[#allocation7 + $0x118] sm:$0xff]  ;;  %1581 = vmatpush.msra.mxu3 %v1185_v53  ;;  %v1207_v23 = vld [vmem:[#allocation7 + $0x108] sm:$0xff] }
 0x1c6   :  { %v3941_v20 = vsel %vm1351_vm15, %v3916_v29, %v1372_v50  ;;  %v1088_v43 = vmax.f32 %v3643_v26, %v3910_v58  ;;  %1406 = vmatmul.f32.gmra.mxu2 %v3937_v25  ;;  %v1487_v4 = vsel %vm1343_vm11, %v3738_v57, %v1486_v21  ;;  %v1494_v58 = vsel %vm1343_vm11, %v3740_v54, %v1493_v59  ;;  %v1875_v50 = vld [vmem:[#allocation7 + $0x730] sm:$0x3f] }
 0x1c7   :  { %2842 = vmatmul.msk.f32.gmra.mxu3 %vm1376_vm1, %v3941_v20  ;;  %v3956_v5 = vadd.f32 %v3686_v14, %v1087_v28  ;;  %v1488_v26 = vsel %vm1345_vm12, %v3751_v37, %v1487_v4  ;;  %v1502_v61 = vsel %vm1345_vm12, %v3832_v60, %v1501_v39  ;;  %v1508_v48 = vsel %vm1343_vm11, %v3846_v0, %v1507_v10  ;;  %v1179_v10 = vld [vmem:[#allocation7 + $0x28] sm:$0xff] }
 0x1c8   :  { %v980_v32 = vpop.permute.xlu1 %979  ;;  %v1489_v8 = vsel %vm1347_vm13, %v3714_v17, %v1488_v26  ;;  %v1051_v44 = vsel %vm1029_vm8, %v3887_v45, %v1026_v42  ;;  %1582 = vmatpush.msra.mxu3 %v1183_v35  ;;  %1608 = vmatpush.msra.mxu2 %v1209_v7  ;;  %v1495_v53 = vsel %vm1345_vm12, %v3760_v22, %v1494_v58  ;;  %v1849_v58 = vld [vmem:[#allocation7 + $0x660] sm:$0xff] }
 0x1c9   :  { %v1002_v52 = vpop.permute.xlu0 %1001  ;;  %v1016_v13 = vrot.slane %v980_v32, 2  ;;  %v1490_v28 = vsel %vm1349_vm14, %v3719_v47, %v1489_v8  ;;  %v3977_v39 = vsel %vm1339_vm9, %v3840_v9, %v3824_v16  ;;  %v1503_v42 = vsel %vm1347_vm13, %v3877_v11, %v1502_v61  ;;  %v1649_v8 = vld [vmem:[#allocation7 + $0x498] sm:$0xff] }
 0x1ca   :  { %v1027_v41 = vrot.slane %v1002_v52, 2  ;;  %v3982_v45 = vsel %vm1351_vm15, %v3788_v56, %v1490_v28  ;;  %v1159_v59 = vmax.f32 %v3956_v5, 0.0  ;;  %1583 = vmatpush.msra.mxu3 %v1181_v1  ;;  %v1496_v16 = vsel %vm1347_vm13, %v3716_v2, %v1495_v53  ;;  %1609 = vmatpush.msra.mxu2 %v1207_v23 }
 0x1cb   :  { %v1041_v21 = vsel %vm1029_vm8, %v980_v32, %v1016_v13  ;;  %1541 = vmatmul.f32.vlgmr.msra.gmra.mxu0 %v3982_v45  ;;  %v1509_v7 = vsel %vm1345_vm12, %v3834_v55, %v1508_v48  ;;  %v1099_v4 = vmax.f32 %v3632_v51, %v1051_v44  ;;  %v1177_v32 = vld [vmem:[#allocation7 + $0x18] sm:$0xff]  ;;  %v1497_v26 = vsel %vm1349_vm14, %v3721_v24, %v1496_v16  ;;  %v1175_v48 = vld [vmem:[#allocation7 + $0x8] sm:$0xff] }
 0x1cc   :  { %v1052_v35 = vsel %vm1029_vm8, %v1002_v52, %v1027_v41  ;;  %2858 = vmatpush.msk.msra.mxu0 %vm379_vm3, %v1875_v50  ;;  %v1510_v5 = vsel %vm1347_vm13, %v3879_v33, %v1509_v7  ;;  %v4000_v1 = vadd.f32 %v3683_v62, %v1088_v43  ;;  %v4003_v52 = vsel %vm1029_vm8, %v1004_v40, %v1028_v31  ;;  %v1847_v43 = vld [vmem:[#allocation7 + $0x650] sm:$0xff]  ;;  %v1873_v41 = vld [vmem:[#allocation7 + $0x720] sm:$0xff] }
 0x1cd   :  { %1584 = vmatpush.msra.mxu3 %v1179_v10  ;;  %v1089_v51 = vmax.f32 %v3645_v27, %v1041_v21  ;;  %v4008_v13 = vsel %vm1351_vm15, %v3790_v38, %v1497_v26  ;;  %v1100_v61 = vmax.f32 %v3647_v36, %v1052_v35  ;;  %v1504_v40 = vsel %vm1349_vm14, %v3870_v6, %v1503_v42  ;;  %v1675_v36 = vld [vmem:[#allocation7 + $0x568] sm:$0x3f]  ;;  %v4409_v21 = vld [vmem:[#allocation26_spill] sm:$0xff] }
 0x1ce   :  { %2847 = vmatmul.msk.f32.vlgmr.msrb.gmra.mxu1 %vm1376_vm1, %v4008_v13  ;;  %1449 = vmatmul.f32.vlgmr.msrb.gmra.mxu2 %v3808_v18  ;;  %v1685_v27 = vsel %vm1345_vm12, %v3719_v47, %v3896_v34  ;;  %v1703_v31 = vsel %vm1339_vm9, %v3846_v0, %v3830_v19  ;;  %v4022_v44 = vperm.slane %v1159_v59, 0  ;;  %v1511_v18 = vsel %vm1349_vm14, %v3875_v49, %v1510_v5  ;;  %v4408_v50 = vld [vmem:[#allocation29_spill] sm:$0xff]  ;;  %v1845_v0 = vld [vmem:[#allocation7 + $0x640] sm:$0xff]  ;;  %v1673_v35 = vld [vmem:[#allocation7 + $0x558] sm:$0xff] }
 0x1cf   :  { %1585 = vmatpush.msra.mxu3 %v1177_v32  ;;  %1923 = vmatpush.msrb.mxu1 %v1849_v58  ;;  %v1686_v28 = vsel %vm1347_vm13, %v3788_v56, %v1685_v27  ;;  %v1101_v53 = vmax.f32 %v3655_v63, %v4003_v52  ;;  %v4031_v34 = vadd.f32 %v3686_v14, %v1099_v4  ;;  %v1647_v19 = vld [vmem:[#allocation7 + $0x488] sm:$0xff]  ;;  %v4038_v10 = vperm.slane %v1159_v59, 2  ;;  %v1871_v14 = vld [vmem:[#allocation7 + $0x710] sm:$0xff]  ;;  %v1645_v59 = vld [vmem:[#allocation7 + $0x478] sm:$0xff] }
 0x1d0   :  { %2844 = vmatmul.msk.f32.vlgmr.msrb.gmra.mxu3 %vm1376_vm1, %v4408_v50  ;;  %1768 = vmatpush.msrb.mxu2 %v1649_v8  ;;  %v1692_v23 = vsel %vm1345_vm12, %v3721_v24, %v3900_v15  ;;  %v4041_v42 = vadd.f32 %v4409_v21, %v1089_v51  ;;  %v4045_v16 = vsel %vm1351_vm15, %v3856_v3, %v1504_v40  ;;  %v1160_v4 = vmax.f32 %v4000_v1, 0.0  ;;  %v1843_v32 = vld [vmem:[#allocation7 + $0x630] sm:$0xff]  ;;  %v4410_v58 = vld [vmem:[#allocation27_spill] sm:$0xff]  ;;  %v1671_v51 = vld [vmem:[#allocation7 + $0x548] sm:$0xff] }
 0x1d1   :  { %1586 = vmatpush.msra.mxu3 %v1175_v48  ;;  %1924 = vmatpush.msrb.mxu1 %v1847_v43  ;;  %v1693_v7 = vsel %vm1347_vm13, %v3790_v38, %v1692_v23  ;;  %v4051_v15 = vadd.f32 %v3683_v62, %v1100_v61  ;;  %v4056_v26 = vsel %vm1351_vm15, %v3860_v46, %v1511_v18  ;;  %v1869_v8 = vld [vmem:[#allocation7 + $0x700] sm:$0xff]  ;;  %v1171_v48 = vmax.f32 %v4031_v34, 0.0  ;;  %v1855_v52 = vld [vmem:[#allocation7 + $0x690] sm:$0xff] }
 0x1d2   :  { %1950 = vmatpush.msra.mxu0 %v1873_v41  ;;  %v1687_v5 = vsel %vm1349_vm14, %v4410_v58, %v1686_v28  ;;  %1769 = vmatpush.msrb.mxu2 %v1647_v19  ;;  %v1697_v1 = vsel %vm1341_vm10, %v3832_v60, %v3977_v39  ;;  %v1883_v61 = vsel %vm1339_vm9, %v3751_v37, %v3738_v57  ;;  %v4411_v43 = vld [vmem:[#allocation28_spill] sm:$0xff]  ;;  %v1669_v41 = vld [vmem:[#allocation7 + $0x538] sm:$0xff]  ;;  %v4088_v34 = vperm.slane %v1160_v4, 0  ;;  %v1867_v19 = vld [vmem:[#allocation7 + $0x6f0] sm:$0xff] }
 0x1d3   :  { %2855 = vmatpush.msk.msrb.mxu3 %vm379_vm3, %v1675_v36  ;;  %1925 = vmatpush.msrb.mxu1 %v1845_v0  ;;  %v4062_v62 = vsel %vm1351_vm15, %v4022_v44, %v1687_v5  ;;  %v1694_v40 = vsel %vm1349_vm14, %v4411_v43, %v1693_v7  ;;  %v4075_v27 = vsel %vm1343_vm11, %v3877_v11, %v1697_v1  ;;  %v1643_v39 = vld [vmem:[#allocation7 + $0x468] sm:$0xff]  ;;  %v1841_v50 = vld [vmem:[#allocation7 + $0x620] sm:$0xff]  ;;  %v1172_v1 = vmax.f32 %v4051_v15, 0.0  ;;  %v1665_v15 = vld [vmem:[#allocation7 + $0x518] sm:$0xff] }
 0x1d4   :  { %1951 = vmatpush.msra.mxu0 %v1871_v14  ;;  %v1884_v36 = vsel %vm1341_vm10, %v3714_v17, %v1883_v61  ;;  %1770 = vmatpush.msrb.mxu2 %v1645_v59  ;;  %v4081_v57 = vsel %vm1351_vm15, %v4038_v10, %v1694_v40  ;;  %v1890_v28 = vsel %vm1339_vm9, %v3760_v22, %v3740_v54  ;;  %v4096_v14 = vperm.slane %v1160_v4, 2  ;;  %v1641_v59 = vld [vmem:[#allocation7 + $0x458] sm:$0xff]  ;;  %v1667_v4 = vld [vmem:[#allocation7 + $0x528] sm:$0xff]  ;;  %v1839_v61 = vld [vmem:[#allocation7 + $0x610] sm:$0xff] }
 0x1d5   :  { %1795 = vmatpush.msrb.mxu3 %v1673_v35  ;;  %1926 = vmatpush.msrb.mxu1 %v1843_v32  ;;  %v1885_v18 = vsel %vm1343_vm11, %v3719_v47, %v1884_v36  ;;  %v1704_v0 = vsel %vm1341_vm10, %v3834_v55, %v1703_v31  ;;  %v1891_v35 = vsel %vm1341_vm10, %v3716_v2, %v1890_v28  ;;  %v4109_v32 = vperm.slane %v1171_v48, 0  ;;  %v1865_v40 = vld [vmem:[#allocation7 + $0x6e0] sm:$0xff] }
 0x1d6   :  { %1952 = vmatpush.msra.mxu0 %v1869_v8  ;;  %v1886_v23 = vsel %vm1345_vm12, %v3788_v56, %v1885_v18  ;;  %2848 = vmatmul.msk.f32.gmra.mxu1 %vm1376_vm1, %v4056_v26  ;;  %v4103_v54 = vsel %vm1343_vm11, %v3879_v33, %v1704_v0  ;;  %v1892_v7 = vsel %vm1343_vm11, %v3721_v24, %v1891_v35  ;;  %v4130_v18 = vperm.slane %v1171_v48, 2  ;;  %v1863_v0 = vld [vmem:[#allocation7 + $0x6d0] sm:$0xff]  ;;  %v1637_v35 = vld [vmem:[#allocation7 + $0x438] sm:$0xff]  ;;  %v1829_v63 = vld [vmem:[#allocation7 + $0x5c0] sm:$0xff] }
 0x1d7   :  { %1796 = vmatpush.msrb.mxu3 %v1671_v51  ;;  %1544 = vmatmul.f32.gmra.mxu0 %v4045_v16  ;;  %v1887_v31 = vsel %vm1347_vm13, %v4410_v58, %v1886_v23  ;;  %v1893_v51 = vsel %vm1345_vm12, %v3790_v38, %v1892_v7  ;;  %v1897_v8 = vsel %vm1339_vm9, %v3832_v60, %v3840_v9  ;;  %v1639_v9 = vld [vmem:[#allocation7 + $0x448] sm:$0xff] }
 0x1d8   :  { %1771 = vmatpush.msrb.mxu2 %v1643_v39  ;;  %v1888_v5 = vsel %vm1349_vm14, %v4022_v44, %v1887_v31  ;;  %1927 = vmatpush.msrb.mxu1 %v1841_v50  ;;  %v1894_v39 = vsel %vm1347_vm13, %v4411_v43, %v1893_v51  ;;  %v1663_v31 = vld [vmem:[#allocation7 + $0x508] sm:$0xff]  ;;  %v1861_v51 = vld [vmem:[#allocation7 + $0x6c0] sm:$0xff] }
 0x1d9   :  { %1797 = vmatpush.msrb.mxu3 %v1669_v41  ;;  %1953 = vmatpush.msra.mxu0 %v1867_v19  ;;  %v4121_v36 = vsel %vm1351_vm15, %v4088_v34, %v1888_v5  ;;  %v1898_v41 = vsel %vm1341_vm10, %v3877_v11, %v1897_v8  ;;  %v1895_v28 = vsel %vm1349_vm14, %v4038_v10, %v1894_v39  ;;  %v1835_v5 = vld [vmem:[#allocation7 + $0x5f0] sm:$0xff] }
 0x1da   :  { %1452 = vmatmul.f32.gmra.mxu2 %v3937_v25  ;;  %2845 = vmatmul.msk.f32.gmra.mxu3 %vm1376_vm1, %v3941_v20  ;;  %v1899_v50 = vsel %vm1343_vm11, %v3870_v6, %v1898_v41  ;;  %v1905_v19 = vsel %vm1341_vm10, %v3879_v33, %v3946_v30  ;;  %v1837_v25 = vld [vmem:[#allocation7 + $0x600] sm:$0xff]  ;;  %v4141_v20 = vsel %vm1351_vm15, %v4096_v14, %v1895_v28  ;;  %v1635_v41 = vld [vmem:[#allocation7 + $0x428] sm:$0xff] }
 0x1db   :  { %1772 = vmatpush.msrb.mxu2 %v1641_v59  ;;  %1798 = vmatpush.msrb.mxu3 %v1667_v4  ;;  %v1900_v48 = vsel %vm1345_vm12, %v3856_v3, %v1899_v50  ;;  %v1906_v23 = vsel %vm1343_vm11, %v3875_v49, %v1905_v19  ;;  %v2084_v59 = vsel %vm1339_vm9, %v3714_v17, %v3751_v37  ;;  %v4154_v4 = vperm.slane %v1172_v1, 2  ;;  %v1859_v50 = vld [vmem:[#allocation7 + $0x6b0] sm:$0xff] }
 0x1dc   :  { %1928 = vmatpush.msrb.mxu1 %v1839_v61  ;;  %1954 = vmatpush.msra.mxu0 %v1865_v40  ;;  %v1901_v30 = vsel %vm1347_vm13, %v3914_v12, %v1900_v48  ;;  %v1907_v7 = vsel %vm1345_vm12, %v3860_v46, %v1906_v23  ;;  %v2085_v40 = vsel %vm1341_vm10, %v3719_v47, %v2084_v59  ;;  %v4176_v19 = vperm.slane %v1172_v1, 0  ;;  %v1659_v1 = vld [vmem:[#allocation7 + $0x4e8] sm:$0xff] }
 0x1dd   :  { %1773 = vmatpush.msrb.mxu2 %v1639_v9  ;;  %1799 = vmatpush.msrb.mxu3 %v1665_v15  ;;  %v1902_v8 = vsel %vm1349_vm14, %v4109_v32, %v1901_v30  ;;  %v1908_v61 = vsel %vm1347_vm13, %v3916_v29, %v1907_v7  ;;  %v2086_v37 = vsel %vm1343_vm11, %v3788_v56, %v2085_v40  ;;  %v1661_v9 = vld [vmem:[#allocation7 + $0x4f8] sm:$0xff]  ;;  %v1833_v56 = vld [vmem:[#allocation7 + $0x5e0] sm:$0xff] }
 0x1de   :  { %1929 = vmatpush.msrb.mxu1 %v1837_v25  ;;  %1955 = vmatpush.msra.mxu0 %v1863_v0  ;;  %v1909_v17 = vsel %vm1349_vm14, %v4130_v18, %v1908_v61  ;;  %v2091_v39 = vsel %vm1339_vm9, %v3716_v2, %v3760_v22  ;;  %v2087_v15 = vsel %vm1345_vm12, %v4410_v58, %v2086_v37  ;;  %v1633_v58 = vld [vmem:[#allocation7 + $0x418] sm:$0xff]  ;;  %v1857_v0 = vld [vmem:[#allocation7 + $0x6a0] sm:$0xff] }
 0x1df   :  { %1774 = vmatpush.msrb.mxu2 %v1637_v35  ;;  %1800 = vmatpush.msrb.mxu3 %v1663_v31  ;;  %v2092_v47 = vsel %vm1341_vm10, %v3721_v24, %v2091_v39  ;;  %v2098_v28 = vsel %vm1339_vm9, %v3877_v11, %v3832_v60  ;;  %v2105_v24 = vsel %vm1339_vm9, %v3879_v33, %v3834_v55  ;;  %v1161_v35 = vmax.f32 %v4041_v42, 0.0  ;;  %v1631_v31 = vld [vmem:[#allocation7 + $0x408] sm:$0xff]  ;;  %v1657_v30 = vld [vmem:[#allocation7 + $0x4d8] sm:$0xff]  ;;  %v1825_v39 = vld [vmem:[#allocation7 + $0x5a0] sm:$0xff] }
 0x1e0   :  { %1930 = vmatpush.msrb.mxu1 %v1835_v5  ;;  %1956 = vmatpush.msra.mxu0 %v1861_v51  ;;  %v2093_v2 = vsel %vm1343_vm11, %v3790_v38, %v2092_v47  ;;  %v2099_v22 = vsel %vm1341_vm10, %v3870_v6, %v2098_v28  ;;  %v4190_v60 = vsel %vm1351_vm15, %v4154_v4, %v1909_v17  ;;  %v1627_v17 = vld [vmem:[#allocation7 + $0x3e8] sm:$0xff] }
 0x1e1   :  { %1738 = vmatmul.f32.vlgmr.msrb.gmra.mxu0 %v4062_v62  ;;  %2853 = vmatmul.msk.f32.vlgmr.msra.gmra.mxu1 %vm1376_vm1, %v4081_v57  ;;  %v2094_v11 = vsel %vm1345_vm12, %v4411_v43, %v2093_v2  ;;  %v2100_v38 = vsel %vm1343_vm11, %v3856_v3, %v2099_v22  ;;  %v4198_v55 = vsel %vm1351_vm15, %v4176_v19, %v1902_v8  ;;  %v1831_v43 = vld [vmem:[#allocation7 + $0x5d0] sm:$0xff]  ;;  %v2081_v37 = vperm.slane %v1161_v35, 2  ;;  %v1850_v28 = vld [vmem:[#allocation7 + $0x668] sm:$0xff] }
 0x1e2   :  { %1775 = vmatpush.msrb.mxu2 %v1635_v41  ;;  %1801 = vmatpush.msrb.mxu3 %v1661_v9  ;;  %v2101_v33 = vsel %vm1345_vm12, %v3914_v12, %v2100_v38  ;;  %v2106_v25 = vsel %vm1341_vm10, %v3875_v49, %v2105_v24  ;;  %v1149_v23 = vadd.f32 %v4409_v21, %v1101_v53  ;;  %v1655_v21 = vld [vmem:[#allocation7 + $0x4c8] sm:$0xff]  ;;  %v1851_v41 = vld [vmem:[#allocation7 + $0x670] sm:$0xff] }
 0x1e3   :  { %1931 = vmatpush.msrb.mxu1 %v1833_v56  ;;  %1957 = vmatpush.msra.mxu0 %v1859_v50  ;;  %v2107_v48 = vsel %vm1343_vm11, %v3860_v46, %v2106_v25  ;;  %v2088_v7 = vsel %vm1347_vm13, %v4022_v44, %v2087_v15  ;;  %v1699_v53 = vsel %vm1345_vm12, %v3870_v6, %v4075_v27  ;;  %v1629_v44 = vld [vmem:[#allocation7 + $0x3f8] sm:$0xff]  ;;  %v1827_v27 = vld [vmem:[#allocation7 + $0x5b0] sm:$0xff]  ;;  %v2048_v56 = vld [vmem:[#allocation7 + $0x820] sm:$0xff] }
 0x1e4   :  { %1587 = vmatmul.f32.vlgmr.msra.gmra.mxu3 %v3982_v45  ;;  %2850 = vmatmul.msk.f32.vlgmr.msra.gmra.mxu2 %vm1376_vm1, %v4008_v13  ;;  %v2108_v59 = vsel %vm1345_vm12, %v3916_v29, %v2107_v48  ;;  %v1706_v45 = vsel %vm1345_vm12, %v3875_v49, %v4103_v54  ;;  %v2089_v13 = vsel %vm1349_vm14, %v4088_v34, %v2088_v7  ;;  %v1853_v49 = vld [vmem:[#allocation7 + $0x680] sm:$0xff]  ;;  %v2080_v54 = vperm.slane %v1161_v35, 0  ;;  %v1625_v15 = vld [vmem:[#allocation7 + $0x3d8] sm:$0xff]  ;;  %v1623_v24 = vld [vmem:[#allocation7 + $0x3c8] sm:$0xff] }
 0x1e5   :  { %1776 = vmatpush.msrb.mxu2 %v1633_v58  ;;  %1802 = vmatpush.msrb.mxu3 %v1659_v1  ;;  %v2095_v42 = vsel %vm1347_vm13, %v4038_v10, %v2094_v11  ;;  %v2102_v5 = vsel %vm1347_vm13, %v4109_v32, %v2101_v33  ;;  %v2109_v6 = vsel %vm1347_vm13, %v4130_v18, %v2108_v59  ;;  %v1173_v8 = vmax.f32 %v1149_v23, 0.0  ;;  %v1821_v11 = vld [vmem:[#allocation7 + $0x580] sm:$0xff]  ;;  %v1848_v58 = vld [vmem:[#allocation7 + $0x658] sm:$0xff]  ;;  %v2046_v1 = vld [vmem:[#allocation7 + $0x810] sm:$0xff] }
 0x1e6   :  { %1932 = vmatpush.msrb.mxu1 %v1831_v43  ;;  %1958 = vmatpush.msra.mxu0 %v1857_v0  ;;  %v2096_v34 = vsel %vm1349_vm14, %v4096_v14, %v2095_v42  ;;  %v1700_v51 = vsel %vm1347_vm13, %v3856_v3, %v1699_v53  ;;  %v1707_v10 = vsel %vm1347_vm13, %v3860_v46, %v1706_v45  ;;  %v1653_v14 = vld [vmem:[#allocation7 + $0x4b8] sm:$0xff]  ;;  %v2044_v33 = vld [vmem:[#allocation7 + $0x800] sm:$0xff]  ;;  %v1619_v43 = vld [vmem:[#allocation7 + $0x3a8] sm:$0xff] }
 0x1e7   :  { %1777 = vmatpush.msrb.mxu2 %v1631_v31  ;;  %1803 = vmatpush.msrb.mxu3 %v1657_v30  ;;  %v1701_v61 = vsel %vm1349_vm14, %v3914_v12, %v1700_v51  ;;  %v1708_v40 = vsel %vm1349_vm14, %v3916_v29, %v1707_v10  ;;  %v2050_v12 = vld [vmem:[#allocation7 + $0x830] sm:$0xff]  ;;  %v1651_v29 = vld [vmem:[#allocation7 + $0x4a8] sm:$0xff]  ;;  %v4254_v9 = vsel %vm1351_vm15, %v2080_v54, %v2089_v13  ;;  %v2082_v47 = vperm.slane %v1173_v8, 0  ;;  %v2076_v25 = vld [vmem:[#allocation7 + $0x900] sm:$0x3f] }
 0x1e8   :  { %1933 = vmatpush.msrb.mxu1 %v1829_v63  ;;  %1959 = vmatpush.msra.mxu0 %v1855_v52  ;;  %v4244_v3 = vsel %vm1351_vm15, %v4109_v32, %v1701_v61  ;;  %v4248_v46 = vsel %vm1351_vm15, %v4130_v18, %v1708_v40  ;;  %v2083_v32 = vperm.slane %v1173_v8, 2  ;;  %v1823_v18 = vld [vmem:[#allocation7 + $0x590] sm:$0xff]  ;;  %v4258_v50 = vsel %vm1351_vm15, %v2081_v37, %v2096_v34  ;;  %v1844_v0 = vld [vmem:[#allocation7 + $0x638] sm:$0xff]  ;;  %v1842_v31 = vld [vmem:[#allocation7 + $0x628] sm:$0xff] }
 0x1e9   :  { %1778 = vmatpush.msrb.mxu2 %v1629_v44  ;;  %1804 = vmatpush.msrb.mxu3 %v1655_v21  ;;  %v2103_v2 = vsel %vm1349_vm14, %v4176_v19, %v2102_v5  ;;  %v2110_v22 = vsel %vm1349_vm14, %v4154_v4, %v2109_v6  ;;  %v1621_v19 = vld [vmem:[#allocation7 + $0x3b8] sm:$0xff]  ;;  %v1819_v4 = vld [vmem:[#allocation7 + $0x570] sm:$0xff]  ;;  %v1874_v30 = vld [vmem:[#allocation7 + $0x728] sm:$0xff] }
 0x1ea   :  { %1934 = vmatpush.msrb.mxu1 %v1827_v27  ;;  %1960 = vmatpush.msra.mxu0 %v1853_v49  ;;  %v4267_v38 = vsel %vm1351_vm15, %v2082_v47, %v2103_v2  ;;  %v1876_v48 = vld [vmem:[#allocation7 + $0x738] sm:$0x3f]  ;;  %v2042_v23 = vld [vmem:[#allocation7 + $0x7f0] sm:$0xff]  ;;  %v2040_v7 = vld [vmem:[#allocation7 + $0x7e0] sm:$0xff] }
 0x1eb   :  { %1741 = vmatmul.f32.gmra.mxu0 %v4244_v3  ;;  %2854 = vmatmul.msk.f32.gmra.mxu1 %vm1376_vm1, %v4248_v46  ;;  %v2074_v35 = vld [vmem:[#allocation7 + $0x8f0] sm:$0xff]  ;;  %v2072_v59 = vld [vmem:[#allocation7 + $0x8e0] sm:$0xff]  ;;  %v1840_v63 = vld [vmem:[#allocation7 + $0x618] sm:$0xff] }
 0x1ec   :  { %1779 = vmatpush.msrb.mxu2 %v1627_v17  ;;  %1805 = vmatpush.msrb.mxu3 %v1653_v14  ;;  %v1872_v52 = vld [vmem:[#allocation7 + $0x718] sm:$0xff]  ;;  %v2038_v53 = vld [vmem:[#allocation7 + $0x7d0] sm:$0xff]  ;;  %v1838_v13 = vld [vmem:[#allocation7 + $0x608] sm:$0xff] }
 0x1ed   :  { %1935 = vmatpush.msrb.mxu1 %v1825_v39  ;;  %1961 = vmatpush.msra.mxu0 %v1851_v41  ;;  %v2070_v45 = vld [vmem:[#allocation7 + $0x8d0] sm:$0xff]  ;;  %v1870_v44 = vld [vmem:[#allocation7 + $0x708] sm:$0xff]  ;;  %v2036_v21 = vld [vmem:[#allocation7 + $0x7c0] sm:$0xff] }
 0x1ee   :  { %1590 = vmatmul.f32.gmra.mxu3 %v4045_v16  ;;  %2851 = vmatmul.msk.f32.gmra.mxu2 %vm1376_vm1, %v4056_v26  ;;  %v4270_v16 = vsel %vm1351_vm15, %v2083_v32, %v2110_v22  ;;  %v1846_v26 = vld [vmem:[#allocation7 + $0x648] sm:$0xff]  ;;  %v2068_v42 = vld [vmem:[#allocation7 + $0x8c0] sm:$0xff]  ;;  %v2034_v5 = vld [vmem:[#allocation7 + $0x7b0] sm:$0xff] }
 0x1ef   :  { %2124 = vmatpush.msrb.mxu0 %v2050_v12  ;;  %1806 = vmatpush.msrb.mxu3 %v1651_v29  ;;  %v2066_v6 = vld [vmem:[#allocation7 + $0x8b0] sm:$0xff]  ;;  %v1834_v27 = vld [vmem:[#allocation7 + $0x5e8] sm:$0xff]  ;;  %v2032_v34 = vld [vmem:[#allocation7 + $0x7a0] sm:$0xff] }
 0x1f0   :  { %1780 = vmatpush.msrb.mxu2 %v1625_v15  ;;  %1936 = vmatpush.msrb.mxu1 %v1823_v18  ;;  %v1866_v49 = vld [vmem:[#allocation7 + $0x6e8] sm:$0xff]  ;;  %v2064_v54 = vld [vmem:[#allocation7 + $0x8a0] sm:$0xff]  ;;  %v1832_v51 = vld [vmem:[#allocation7 + $0x5d8] sm:$0xff] }
 0x1f1   :  { %1969 = vmatpush.msra.mxu3 %v1850_v28  ;;  %2125 = vmatpush.msrb.mxu0 %v2048_v56  ;;  %v1864_v10 = vld [vmem:[#allocation7 + $0x6d8] sm:$0xff]  ;;  %v2030_v8 = vld [vmem:[#allocation7 + $0x790] sm:$0xff]  ;;  %v1830_v40 = vld [vmem:[#allocation7 + $0x5c8] sm:$0xff] }
 0x1f2   :  { %1781 = vmatpush.msrb.mxu2 %v1623_v24  ;;  %1937 = vmatpush.msrb.mxu1 %v1821_v11  ;;  %v2062_v61 = vld [vmem:[#allocation7 + $0x890] sm:$0xff]  ;;  %v1862_v17 = vld [vmem:[#allocation7 + $0x6c8] sm:$0xff]  ;;  %v2028_v14 = vld [vmem:[#allocation7 + $0x780] sm:$0xff] }
 0x1f3   :  { %1970 = vmatpush.msra.mxu3 %v1848_v58  ;;  %2126 = vmatpush.msrb.mxu0 %v2046_v1  ;;  %v2060_v37 = vld [vmem:[#allocation7 + $0x880] sm:$0xff]  ;;  %v1860_v39 = vld [vmem:[#allocation7 + $0x6b8] sm:$0xff]  ;;  %v2058_v41 = vld [vmem:[#allocation7 + $0x870] sm:$0xff] }
 0x1f4   :  { %1782 = vmatpush.msrb.mxu2 %v1621_v19  ;;  %1938 = vmatpush.msrb.mxu1 %v1819_v4  ;;  %v1826_v12 = vld [vmem:[#allocation7 + $0x5a8] sm:$0xff]  ;;  %v2024_v32 = vld [vmem:[#allocation7 + $0x760] sm:$0xff]  ;;  %v1824_v18 = vld [vmem:[#allocation7 + $0x598] sm:$0xff] }
 0x1f5   :  { %1971 = vmatpush.msra.mxu3 %v1846_v26  ;;  %2127 = vmatpush.msrb.mxu0 %v2044_v33  ;;  %v1858_v29 = vld [vmem:[#allocation7 + $0x6a8] sm:$0xff]  ;;  %v2056_v15 = vld [vmem:[#allocation7 + $0x860] sm:$0xff]  ;;  %v1856_v47 = vld [vmem:[#allocation7 + $0x698] sm:$0xff] }
 0x1f6   :  { %2864 = vmatpush.msk.msra.mxu1 %vm379_vm3, %v2076_v25  ;;  %1783 = vmatpush.msrb.mxu2 %v1619_v43  ;;  %v2022_v28 = vld [vmem:[#allocation7 + $0x750] sm:$0xff]  ;;  %v1822_v2 = vld [vmem:[#allocation7 + $0x588] sm:$0xff]  ;;  %v2020_v24 = vld [vmem:[#allocation7 + $0x740] sm:$0xff] }
 0x1f7   :  { %1939 = vmatmul.f32.vlgmr.msrb.gmra.mxu1 %v4121_v36  ;;  %2859 = vmatmul.msk.f32.vlgmr.msra.gmra.mxu0 %vm1376_vm1, %v4141_v20  ;;  %v2054_v56 = vld [vmem:[#allocation7 + $0x850] sm:$0xff]  ;;  %v1854_v22 = vld [vmem:[#allocation7 + $0x688] sm:$0xff]  ;;  %v2052_v11 = vld [vmem:[#allocation7 + $0x840] sm:$0xff] }
 0x1f8   :  { %1972 = vmatpush.msra.mxu3 %v1844_v0  ;;  %2861 = vmatpush.msk.msra.mxu2 %vm379_vm3, %v1876_v48  ;;  %v1820_v58 = vld [vmem:[#allocation7 + $0x578] sm:$0xff]  ;;  %v2077_v4 = vld [vmem:[#allocation7 + $0x908] sm:$0x3f] }
 0x1f9   :  { %2128 = vmatpush.msrb.mxu0 %v2042_v23  ;;  %2151 = vmatpush.msra.mxu1 %v2074_v35  ;;  %v1852_v1 = vld [vmem:[#allocation7 + $0x678] sm:$0xff]  ;;  %v2049_v26 = vld [vmem:[#allocation7 + $0x828] sm:$0xff] }
 0x1fa   :  { %1784 = vmatmul.f32.vlgmr.msrb.gmra.mxu2 %v4062_v62  ;;  %2856 = vmatmul.msk.f32.vlgmr.msrb.gmra.mxu3 %vm1376_vm1, %v4081_v57  ;;  %v1836_v62 = vld [vmem:[#allocation7 + $0x5f8] sm:$0xff]  ;;  %v2073_v43 = vld [vmem:[#allocation7 + $0x8e8] sm:$0xff] }
 0x1fb   :  { %1973 = vmatpush.msra.mxu3 %v1842_v31  ;;  %1996 = vmatpush.msra.mxu2 %v1874_v30  ;;  %v1868_v57 = vld [vmem:[#allocation7 + $0x6f8] sm:$0xff]  ;;  %v2045_v0 = vld [vmem:[#allocation7 + $0x808] sm:$0xff] }
 0x1fc   :  { %2129 = vmatpush.msrb.mxu0 %v2040_v7  ;;  %2152 = vmatpush.msra.mxu1 %v2072_v59  ;;  %v2051_v19 = vld [vmem:[#allocation7 + $0x838] sm:$0xff]  ;;  %v2041_v23 = vld [vmem:[#allocation7 + $0x7e8] sm:$0xff] }
 0x1fd   :  { %1974 = vmatpush.msra.mxu3 %v1840_v63  ;;  %1997 = vmatpush.msra.mxu2 %v1872_v52  ;;  %v2075_v33 = vld [vmem:[#allocation7 + $0x8f8] sm:$0xff]  ;;  %v2065_v30 = vld [vmem:[#allocation7 + $0x8a8] sm:$0xff] }
 0x1fe   :  { %2130 = vmatpush.msrb.mxu0 %v2038_v53  ;;  %2153 = vmatpush.msra.mxu1 %v2070_v45  ;;  %v2047_v25 = vld [vmem:[#allocation7 + $0x818] sm:$0xff]  ;;  %v2037_v7 = vld [vmem:[#allocation7 + $0x7c8] sm:$0xff] }
 0x1ff   :  { %1975 = vmatpush.msra.mxu3 %v1838_v13  ;;  %1998 = vmatpush.msra.mxu2 %v1870_v44  ;;  %v2071_v48 = vld [vmem:[#allocation7 + $0x8d8] sm:$0xff]  ;;  %v2061_v52 = vld [vmem:[#allocation7 + $0x888] sm:$0xff] }
 0x200   :  { %2131 = vmatpush.msrb.mxu0 %v2036_v21  ;;  %2154 = vmatpush.msra.mxu1 %v2068_v42  ;;  %v2067_v35 = vld [vmem:[#allocation7 + $0x8b8] sm:$0xff]  ;;  %v2057_v45 = vld [vmem:[#allocation7 + $0x868] sm:$0xff] }
 0x201   :  { %1942 = vmatmul.f32.gmra.mxu1 %v4198_v55  ;;  %2860 = vmatmul.msk.f32.gmra.mxu0 %vm1376_vm1, %v4190_v60  ;;  %v2039_v31 = vld [vmem:[#allocation7 + $0x7d8] sm:$0xff]  ;;  %v2029_v13 = vld [vmem:[#allocation7 + $0x788] sm:$0xff] }
 0x202   :  { %1976 = vmatpush.msra.mxu3 %v1836_v62  ;;  %1999 = vmatpush.msra.mxu2 %v1868_v57  ;;  %v2063_v59 = vld [vmem:[#allocation7 + $0x898] sm:$0xff]  ;;  %v2053_v42 = vld [vmem:[#allocation7 + $0x848] sm:$0xff] }
 0x203   :  { %2132 = vmatpush.msrb.mxu0 %v2034_v5  ;;  %2155 = vmatpush.msra.mxu1 %v2066_v6  ;;  %v2035_v63 = vld [vmem:[#allocation7 + $0x7b8] sm:$0xff]  ;;  %v2025_v62 = vld [vmem:[#allocation7 + $0x768] sm:$0xff] }
 0x204   :  { %1787 = vmatmul.f32.gmra.mxu2 %v4244_v3  ;;  %2857 = vmatmul.msk.f32.gmra.mxu3 %vm1376_vm1, %v4248_v46  ;;  %v1828_v3 = vld [vmem:[#allocation7 + $0x5b8] sm:$0xff]  ;;  %v2026_v46 = vld [vmem:[#allocation7 + $0x770] sm:$0xff]  ;;  %v2021_v5 = vld [vmem:[#allocation7 + $0x748] sm:$0xff] }
 0x205   :  { %1977 = vmatpush.msra.mxu3 %v1834_v27  ;;  %2000 = vmatpush.msra.mxu2 %v1866_v49  ;;  %v2059_v53 = vld [vmem:[#allocation7 + $0x878] sm:$0xff] }
 0x206   :  { %2133 = vmatpush.msrb.mxu0 %v2032_v34  ;;  %2156 = vmatpush.msra.mxu1 %v2064_v54  ;;  %v2055_v44 = vld [vmem:[#allocation7 + $0x858] sm:$0xff] }
 0x207   :  { %1978 = vmatpush.msra.mxu3 %v1832_v51  ;;  %2001 = vmatpush.msra.mxu2 %v1864_v10  ;;  %v2027_v21 = vld [vmem:[#allocation7 + $0x778] sm:$0xff] }
 0x208   :  { %2134 = vmatpush.msrb.mxu0 %v2030_v8  ;;  %2157 = vmatpush.msra.mxu1 %v2062_v61  ;;  %v2023_v57 = vld [vmem:[#allocation7 + $0x758] sm:$0xff] }
 0x209   :  { %1979 = vmatpush.msra.mxu3 %v1830_v40  ;;  %2002 = vmatpush.msra.mxu2 %v1862_v17 }
 0x20a   :  { %2135 = vmatpush.msrb.mxu0 %v2028_v14  ;;  %2158 = vmatpush.msra.mxu1 %v2060_v37 }
 0x20b   :  { %1980 = vmatpush.msra.mxu3 %v1828_v3  ;;  %2003 = vmatpush.msra.mxu2 %v1860_v39 }
 0x20c   :  { %2136 = vmatpush.msrb.mxu0 %v2026_v46  ;;  %2159 = vmatpush.msra.mxu1 %v2058_v41 }
 0x20d   :  { %1981 = vmatpush.msra.mxu3 %v1826_v12  ;;  %2004 = vmatpush.msra.mxu2 %v1858_v29 }
 0x20e   :  { %2137 = vmatpush.msrb.mxu0 %v2024_v32  ;;  %2160 = vmatpush.msra.mxu1 %v2056_v15 }
 0x20f   :  { %1982 = vmatpush.msra.mxu3 %v1824_v18  ;;  %2005 = vmatpush.msra.mxu2 %v1856_v47 }
 0x210   :  { %2138 = vmatpush.msrb.mxu0 %v2022_v28  ;;  %2161 = vmatpush.msra.mxu1 %v2054_v56 }
 0x211   :  { %1983 = vmatpush.msra.mxu3 %v1822_v2  ;;  %2006 = vmatpush.msra.mxu2 %v1854_v22 }
 0x212   :  { %2139 = vmatpush.msrb.mxu0 %v2020_v24  ;;  %2162 = vmatpush.msra.mxu1 %v2052_v11 }
 0x213   :  { %2140 = vmatmul.f32.vlgmr.msrb.gmra.mxu0 %v4254_v9  ;;  %2865 = vmatmul.msk.f32.vlgmr.msra.gmra.mxu1 %vm1376_vm1, %v4258_v50 }
 0x214   :  { %1984 = vmatpush.msra.mxu3 %v1820_v58  ;;  %2007 = vmatpush.msra.mxu2 %v1852_v1 }
 0x215   :  { %1985 = vmatmul.f32.vlgmr.msra.gmra.mxu3 %v4121_v36  ;;  %2862 = vmatmul.msk.f32.vlgmr.msra.gmra.mxu2 %vm1376_vm1, %v4141_v20  ;;  %v2043_v36 = vld [vmem:[#allocation7 + $0x7f8] sm:$0xff]  ;;  %v2069_v20 = vld [vmem:[#allocation7 + $0x8c8] sm:$0xff] }
 0x216   :  { %2170 = vmatpush.msrb.mxu2 %v2051_v19  ;;  %2867 = vmatpush.msk.msrb.mxu3 %vm379_vm3, %v2077_v4 }
 0x218   :  { %2171 = vmatpush.msrb.mxu2 %v2049_v26  ;;  %2197 = vmatpush.msrb.mxu3 %v2075_v33 }
 0x21a   :  { %2172 = vmatpush.msrb.mxu2 %v2047_v25  ;;  %2198 = vmatpush.msrb.mxu3 %v2073_v43 }
 0x21b   :  { %2143 = vmatmul.f32.gmra.mxu0 %v4267_v38  ;;  %2866 = vmatmul.msk.f32.gmra.mxu1 %vm1376_vm1, %v4270_v16 }
 0x21c   :  { %2173 = vmatpush.msrb.mxu2 %v2045_v0  ;;  %2199 = vmatpush.msrb.mxu3 %v2071_v48 }
 0x21d   :  { %1988 = vmatmul.f32.gmra.mxu3 %v4198_v55  ;;  %2863 = vmatmul.msk.f32.gmra.mxu2 %vm1376_vm1, %v4190_v60  ;;  %v2033_v55 = vld [vmem:[#allocation7 + $0x7a8] sm:$0xff]  ;;  %v2031_v60 = vld [vmem:[#allocation7 + $0x798] sm:$0xff] }
 0x21e   :  { %2174 = vmatpush.msrb.mxu2 %v2043_v36  ;;  %2200 = vmatpush.msrb.mxu3 %v2069_v20 }
 0x220   :  { %2175 = vmatpush.msrb.mxu2 %v2041_v23  ;;  %2201 = vmatpush.msrb.mxu3 %v2067_v35 }
 0x222   :  { %2176 = vmatpush.msrb.mxu2 %v2039_v31  ;;  %2202 = vmatpush.msrb.mxu3 %v2065_v30 }
 0x224   :  { %2177 = vmatpush.msrb.mxu2 %v2037_v7  ;;  %2203 = vmatpush.msrb.mxu3 %v2063_v59 }
 0x226   :  { %2178 = vmatpush.msrb.mxu2 %v2035_v63  ;;  %2204 = vmatpush.msrb.mxu3 %v2061_v52 }
 0x228   :  { %2179 = vmatpush.msrb.mxu2 %v2033_v55  ;;  %2205 = vmatpush.msrb.mxu3 %v2059_v53 }
 0x22a   :  { %2180 = vmatpush.msrb.mxu2 %v2031_v60  ;;  %2206 = vmatpush.msrb.mxu3 %v2057_v45 }
 0x22c   :  { %2181 = vmatpush.msrb.mxu2 %v2029_v13  ;;  %2207 = vmatpush.msrb.mxu3 %v2055_v44 }
 0x22e   :  { %2182 = vmatpush.msrb.mxu2 %v2027_v21  ;;  %2208 = vmatpush.msrb.mxu3 %v2053_v42 }
 0x22f   :  { %2868 = vmatmul.msk.f32.vlgmr.msrb.gmra.mxu3 %vm1376_vm1, %v4258_v50 }
 0x230   :  { %2183 = vmatpush.msrb.mxu2 %v2025_v62 }
 0x232   :  { %2184 = vmatpush.msrb.mxu2 %v2023_v57  ;;  %v1404_v6 = vpop.f32.mrf.mxu2 }
 0x233   :  { %v1427_v27 = vpop.f32.mrf.mxu3 }
 0x234   :  { %2185 = vmatpush.msrb.mxu2 %v2021_v5  ;;  %v1428_v49 = vadd.f32 %v1427_v27, %v1404_v6 }
 0x235   :  { %2186 = vmatmul.f32.vlgmr.msrb.gmra.mxu2 %v4254_v9 }
 0x237   :  { %2869 = vmatmul.msk.f32.gmra.mxu3 %vm1376_vm1, %v4270_v16 }
 0x23d   :  { %2189 = vmatmul.f32.gmra.mxu2 %v4267_v38 }
 0x248   :  { %v1542_v40 = vpop.f32.mrf.mxu0 }
 0x249   :  { %v1407_v34 = vpop.f32.mrf.mxu2  ;;  %v1543_v4 = vadd.f32 %v1542_v40, %v1428_v49 }
 0x24a   :  { %v1430_v54 = vpop.f32.mrf.mxu3 }
 0x24b   :  { %v1431_v51 = vadd.f32 %v1430_v54, %v1407_v34  ;;  %v1565_v17 = vpop.f32.mrf.mxu1 }
 0x24c   :  { %v1566_v36 = vadd.f32 %v1565_v17, %v1543_v4 }
 0x251   :  { %v1450_v50 = vpop.f32.mrf.mxu2 }
 0x253   :  { %v1473_v10 = vpop.f32.mrf.mxu3  ;;  %v1568_v9 = vpop.f32.mrf.mxu1 }
 0x254   :  { %v1545_v3 = vpop.f32.mrf.mxu0  ;;  %v1474_v58 = vadd.f32 %v1473_v10, %v1450_v50 }
 0x255   :  { %v1546_v53 = vadd.f32 %v1545_v3, %v1431_v51 }
 0x257   :  { %v1569_v5 = vadd.f32 %v1568_v9, %v1546_v53  ;;  %v2380_v53 = vld [vmem:[#allocation10 + $0x68] sm:$0xff] }
 0x25d   :  { %v1476_v8 = vpop.f32.mrf.mxu3  ;;  %v1453_v61 = vpop.f32.mrf.mxu2 }
 0x25e   :  { %v1739_v41 = vpop.f32.mrf.mxu0  ;;  %v1762_v12 = vpop.f32.mrf.mxu1  ;;  %v1477_v23 = vadd.f32 %v1476_v8, %v1453_v61 }
 0x25f   :  { %v1763_v33 = vadd.f32 %v1762_v12, %v1739_v41 }
 0x261   :  { %v1814_v30 = vadd.f32 %v1763_v33, %v1566_v36 }
 0x267   :  { %v1588_v14 = vpop.f32.mrf.mxu3  ;;  %v1611_v37 = vpop.f32.mrf.mxu2 }
 0x268   :  { %v1742_v38 = vpop.f32.mrf.mxu0  ;;  %v1765_v32 = vpop.f32.mrf.mxu1  ;;  %v1589_v19 = vadd.f32 %v1588_v14, %v1474_v58 }
 0x269   :  { %v1766_v44 = vadd.f32 %v1765_v32, %v1742_v38 }
 0x26a   :  { %v1612_v0 = vadd.f32 %v1611_v37, %v1589_v19 }
 0x26b   :  { %v1816_v40 = vadd.f32 %v1766_v44, %v1569_v5  ;;  %v2528_v44 = vld [vmem:[#allocation10 + $0x190] sm:$0xff] }
 0x26c   :  { %v2390_v5 = vld [vmem:[#allocation10 + $0xb0] sm:$0xff] }
 0x271   :  { %v1591_v39 = vpop.f32.mrf.mxu3  ;;  %v1614_v46 = vpop.f32.mrf.mxu2 }
 0x272   :  { %v1592_v59 = vadd.f32 %v1591_v39, %v1477_v23  ;;  %v2400_v23 = vld [vmem:[#allocation10 + $0x100] sm:$0xff] }
 0x274   :  { %v1940_v47 = vpop.f32.mrf.mxu1  ;;  %v1963_v28 = vpop.f32.mrf.mxu0  ;;  %v1615_v21 = vadd.f32 %v1614_v46, %v1592_v59  ;;  %v2395_v59 = vld [vmem:[#allocation10 + $0xd8] sm:$0xff] }
 0x275   :  { %v1964_v35 = vadd.f32 %v1963_v28, %v1940_v47 }
 0x277   :  { %v2015_v60 = vadd.f32 %v1964_v35, %v1814_v30  ;;  %v2399_v35 = vld [vmem:[#allocation10 + $0xf8] sm:$0xff]  ;;  %v2397_v30 = vld [vmem:[#allocation10 + $0xe8] sm:$0xff] }
 0x27d   :  { %v1808_v16 = vpop.f32.mrf.mxu3  ;;  %v1785_v29 = vpop.f32.mrf.mxu2 }
 0x27e   :  { %v1943_v22 = vpop.f32.mrf.mxu1  ;;  %v1966_v24 = vpop.f32.mrf.mxu0  ;;  %v1809_v26 = vadd.f32 %v1808_v16, %v1785_v29 }
 0x27f   :  { %v1967_v49 = vadd.f32 %v1966_v24, %v1943_v22 }
 0x280   :  { %v1815_v31 = vadd.f32 %v1809_v26, %v1612_v0 }
 0x281   :  { %v2017_v9 = vadd.f32 %v1967_v49, %v1816_v40  ;;  %v2376_v49 = vld [vmem:[#allocation10 + $0x48] sm:$0xff]  ;;  %v2525_v40 = vld [vmem:[#allocation10 + $0x178] sm:$0xff] }
 0x287   :  { %v1811_v15 = vpop.f32.mrf.mxu3  ;;  %v1788_v18 = vpop.f32.mrf.mxu2 }
 0x288   :  { %v1812_v45 = vadd.f32 %v1811_v15, %v1788_v18 }
 0x28a   :  { %v1817_v34 = vadd.f32 %v1812_v45, %v1615_v21  ;;  %v2529_v45 = vld [vmem:[#allocation10 + $0x198] sm:$0xff]  ;;  %v2392_v21 = vld [vmem:[#allocation10 + $0xc0] sm:$0xff] }
 0x28b   :  { %2546 = vmatpush.msra.mxu2 %v2529_v45  ;;  %v2383_v45 = vld [vmem:[#allocation10 + $0x80] sm:$0xff] }
 0x28d   :  { %2547 = vmatpush.msra.mxu2 %v2528_v44  ;;  %v2593_v44 = vld [vmem:[#allocation10 + $0x1d8] sm:$0xff] }
 0x290   :  { %v2141_v25 = vpop.f32.mrf.mxu0  ;;  %v2164_v43 = vpop.f32.mrf.mxu1 }
 0x291   :  { %v2165_v63 = vadd.f32 %v2164_v43, %v2141_v25 }
 0x293   :  { %v2216_v42 = vadd.f32 %v2165_v63, %v2015_v60  ;;  %v2382_v63 = vld [vmem:[#allocation10 + $0x78] sm:$0xff]  ;;  %v2393_v60 = vld [vmem:[#allocation10 + $0xc8] sm:$0xff] }
 0x294   :  { %2473 = vmatpush.msra.mxu3 %v2382_v63 }
 0x298   :  { %v1986_v56 = vpop.f32.mrf.mxu3  ;;  %v2009_v2 = vpop.f32.mrf.mxu2 }
 0x299   :  { %v2010_v48 = vadd.f32 %v2009_v2, %v1986_v56  ;;  %v2144_v6 = vpop.f32.mrf.mxu0  ;;  %v2167_v27 = vpop.f32.mrf.mxu1 }
 0x29a   :  { %v2168_v17 = vadd.f32 %v2167_v27, %v2144_v6  ;;  %v2389_v6 = vld [vmem:[#allocation10 + $0xa8] sm:$0xff]  ;;  %v2388_v27 = vld [vmem:[#allocation10 + $0xa0] sm:$0xff] }
 0x29b   :  { %v2016_v52 = vadd.f32 %v2010_v48, %v1815_v31  ;;  %v2398_v31 = vld [vmem:[#allocation10 + $0xf0] sm:$0xff] }
 0x29c   :  { %v2218_v12 = vadd.f32 %v2168_v17, %v2017_v9  ;;  %v2603_v17 = vld [vmem:[#allocation10 + $0x228] sm:$0xff] }
 0x29d   :  { %v2372_v9 = vld [vmem:[#allocation10 + $0x28] sm:$0xff] }
 0x2a0   :  { %v1989_v11 = vpop.f32.mrf.mxu3  ;;  %v2012_v1 = vpop.f32.mrf.mxu2 }
 0x2a1   :  { %v2013_v62 = vadd.f32 %v2012_v1, %v1989_v11 }
 0x2a3   :  { %v2018_v14 = vadd.f32 %v2013_v62, %v1817_v34  ;;  %v2391_v62 = vld [vmem:[#allocation10 + $0xb8] sm:$0xff]  ;;  %v2527_v34 = vld [vmem:[#allocation10 + $0x188] sm:$0xff] }
 0x2a4   :  { %2548 = vmatpush.msra.mxu2 %v2527_v34  ;;  %v2591_v34 = vld [vmem:[#allocation10 + $0x1c8] sm:$0xff] }
 0x2b2   :  { %v2210_v20 = vpop.f32.mrf.mxu3 }
 0x2b8   :  { %v2187_v7 = vpop.f32.mrf.mxu2 }
 0x2b9   :  { %v2211_v55 = vadd.f32 %v2210_v20, %v2187_v7  ;;  %v2401_v20 = vld [vmem:[#allocation10 + $0x108] sm:$0xff]  ;;  %v2396_v7 = vld [vmem:[#allocation10 + $0xe0] sm:$0xff] }
 0x2ba   :  { %v2213_v50 = vpop.f32.mrf.mxu3  ;;  %2419 = vmatpush.msrb.mxu1 %v2401_v20  ;;  %v2596_v20 = vld [vmem:[#allocation10 + $0x1f0] sm:$0xff] }
 0x2bb   :  { %v2217_v13 = vadd.f32 %v2211_v55, %v2016_v52  ;;  %v2381_v52 = vld [vmem:[#allocation10 + $0x70] sm:$0xff] }
 0x2bc   :  { %2420 = vmatpush.msrb.mxu1 %v2400_v23  ;;  %v2394_v55 = vld [vmem:[#allocation10 + $0xd0] sm:$0xff]  ;;  %2474 = vmatpush.msra.mxu3 %v2381_v52  ;;  %v2384_v23 = vld [vmem:[#allocation10 + $0x88] sm:$0xf] }
 0x2bd   :  { %v2224_v57 = vrot.slane %v2217_v13, 6  ;;  %v2379_v13 = vld [vmem:[#allocation10 + $0x60] sm:$0xff] }
 0x2be   :  { %2421 = vmatpush.msrb.mxu1 %v2399_v35  ;;  %2475 = vmatpush.msra.mxu3 %v2380_v53  ;;  %v2517_v35 = vld [vmem:[#allocation10 + $0x138] sm:$0xff] }
 0x2bf   :  { %v2226_v54 = vsel %vm768_vm7, %v2216_v42, %v2224_v57  ;;  %v2227_v10 = vsel %vm770_vm5, %v2216_v42, %v2224_v57  ;;  %v2229_v28 = vsel %vm773_vm6, %v2216_v42, %v2224_v57  ;;  %v2231_v22 = vsel %vm379_vm3, %v2224_v57, %v2216_v42  ;;  %v2378_v42 = vld [vmem:[#allocation10 + $0x58] sm:$0xff]  ;;  %v2377_v57 = vld [vmem:[#allocation10 + $0x50] sm:$0xff] }
 0x2c0   :  { %v2190_v8 = vpop.f32.mrf.mxu2  ;;  %v2870_v51 = vrot.slane %v2226_v54, 9  ;;  %v2228_v61 = vrot.slane %v2227_v10, 2  ;;  %v2230_v58 = vrot.slane %v2229_v28, 4  ;;  %v2232_v19 = vrot.slane %v2231_v22, 6  ;;  %2422 = vmatpush.msrb.mxu1 %v2398_v31  ;;  %2476 = vmatpush.msra.mxu3 %v2379_v13  ;;  %v2375_v10 = vld [vmem:[#allocation10 + $0x40] sm:$0xff]  ;;  %v2369_v28 = vld [vmem:[#allocation10 + $0x10] sm:$0xff] }
 0x2c1   :  { %v2214_v37 = vadd.f32 %v2213_v50, %v2190_v8  ;;  %v2526_v50 = vld [vmem:[#allocation10 + $0x180] sm:$0xff]  ;;  %v2386_v8 = vld [vmem:[#allocation10 + $0x90] sm:$0xff]  ;;  %v2337_v22 = vld [vmem:[#allocation8] sm:$0x3] }
 0x2c2   :  { %v4307_v3 = vmax.f32 %v2226_v54, %v2870_v51  ;;  %v2871_v39 = vrot.slane %v2228_v61, 9  ;;  %v2872_v4 = vrot.slane %v2230_v58, 9  ;;  %v2873_v26 = vrot.slane %v2232_v19, 9  ;;  %2423 = vmatpush.msrb.mxu1 %v2397_v30  ;;  %2477 = vmatpush.msra.mxu3 %v2378_v42  ;;  %v2387_v54 = vld [vmem:[#allocation10 + $0x98] sm:$0xff]  ;;  %v2595_v31 = vld [vmem:[#allocation10 + $0x1e8] sm:$0xff]  ;;  %v2516_v30 = vld [vmem:[#allocation10 + $0x130] sm:$0xff] }
 0x2c3   :  { %v2219_v46 = vadd.f32 %v2214_v37, %v2018_v14  ;;  %v2403_v51 = vld [vmem:[#allocation10 + $0x118] sm:$0xf]  ;;  %2549 = vmatpush.msra.mxu2 %v2526_v50  ;;  %v2373_v14 = vld [vmem:[#allocation10 + $0x30] sm:$0xff]  ;;  %v2515_v13 = vld [vmem:[#allocation10 + $0x128] sm:$0xff] }
 0x2c4   :  { %2288 = vrot.lane.b32.xlu2 %v4307_v3, %s3177_s21  ;;  %v4311_v41 = vmax.f32 %v2228_v61, %v2871_v39  ;;  %v4333_v25 = vmax.f32 %v2230_v58, %v2872_v4  ;;  %v4335_v0 = vmax.f32 %v2232_v19, %v2873_v26  ;;  %2424 = vmatpush.msrb.mxu1 %v2396_v7  ;;  %v2374_v61 = vld [vmem:[#allocation10 + $0x38] sm:$0xff]  ;;  %v2524_v37 = vld [vmem:[#allocation10 + $0x170] sm:$0xff]  ;;  %v2602_v39 = vld [vmem:[#allocation10 + $0x220] sm:$0xff]  ;;  %v2339_v7 = vperm.slane %v2337_v22, 0 }
 0x2c5   :  { %v2225_v16 = vrot.slane %v2219_v46, 6  ;;  %2478 = vmatpush.msra.mxu3 %v2377_v57  ;;  %2878 = vmatpush.msk.msra.mxu0 %vm214_vm0, %v2403_v51  ;;  %v2523_v46 = vld [vmem:[#allocation10 + $0x168] sm:$0xff]  ;;  %v2597_v26 = vld [vmem:[#allocation10 + $0x1f8] sm:$0xff]  ;;  %v2514_v42 = vld [vmem:[#allocation10 + $0x120] sm:$0xff] }
 0x2c6   :  { %2290 = vrot.lane.b32.xlu0 %v4311_v41, %s3177_s21  ;;  %2425 = vmatpush.msrb.mxu1 %v2395_v59  ;;  %v2368_v19 = vld [vmem:[#allocation10 + $0x8] sm:$0xff]  ;;  %v2590_v50 = vld [vmem:[#allocation10 + $0x1c0] sm:$0xff] }
 0x2c7   :  { %v2236_v29 = vsel %vm773_vm6, %v2218_v12, %v2225_v16  ;;  %v2234_v38 = vsel %vm770_vm5, %v2218_v12, %v2225_v16  ;;  %v2233_v32 = vsel %vm768_vm7, %v2218_v12, %v2225_v16  ;;  %v2238_v33 = vsel %vm379_vm3, %v2225_v16, %v2218_v12  ;;  %2479 = vmatpush.msra.mxu3 %v2376_v49  ;;  %v2601_v12 = vld [vmem:[#allocation10 + $0x218] sm:$0xff]  ;;  %v2371_v16 = vld [vmem:[#allocation10 + $0x20] sm:$0xff]  ;;  %v2519_v4 = vld [vmem:[#allocation10 + $0x148] sm:$0xff] }
 0x2c8   :  { %v2237_v15 = vrot.slane %v2236_v29, 4  ;;  %v2235_v18 = vrot.slane %v2234_v38, 2  ;;  %v2874_v47 = vrot.slane %v2233_v32, 9  ;;  %v2239_v43 = vrot.slane %v2238_v33, 6  ;;  %2426 = vmatpush.msrb.mxu1 %v2394_v55  ;;  %2550 = vmatpush.msra.mxu2 %v2525_v40  ;;  %v2522_v29 = vld [vmem:[#allocation10 + $0x160] sm:$0xff]  ;;  %v2600_v38 = vld [vmem:[#allocation10 + $0x210] sm:$0xff] }
 0x2c9   :  { %2480 = vmatpush.msra.mxu3 %v2375_v10  ;;  %v2340_v33 = vperm.slane %v2337_v22, 1  ;;  %v2594_v55 = vld [vmem:[#allocation10 + $0x1e0] sm:$0xff]  ;;  %vm2413_vm3 = vcmask 97280  }
 0x2ca   :  { %v2876_v56 = vrot.slane %v2237_v15, 9  ;;  %v2875_v2 = vrot.slane %v2235_v18, 9  ;;  %v4324_v1 = vmax.f32 %v2233_v32, %v2874_v47  ;;  %v2877_v48 = vrot.slane %v2239_v43, 9  ;;  %2427 = vmatpush.msrb.mxu1 %v2393_v60  ;;  %2551 = vmatpush.msra.mxu2 %v2524_v37  ;;  %v2402_v32 = vld [vmem:[#allocation10 + $0x110] sm:$0xff]  ;;  %v2599_v47 = vld [vmem:[#allocation10 + $0x208] sm:$0xff]  ;;  %v2589_v37 = vld [vmem:[#allocation10 + $0x1b8] sm:$0xff] }
 0x2cb   :  { %2481 = vmatpush.msra.mxu3 %v2374_v61  ;;  %2454 = vmatpush.msra.mxu0 %v2402_v32  ;;  %v2341_v59 = vrot.slane %v2340_v33, 6 }
 0x2cc   :  { %v4320_v24 = vmax.f32 %v2237_v15, %v2876_v56  ;;  %v4322_v11 = vmax.f32 %v2235_v18, %v2875_v2  ;;  %v4341_v36 = vmax.f32 %v2239_v43, %v2877_v48  ;;  %2428 = vmatpush.msrb.mxu1 %v2392_v21  ;;  %2552 = vmatpush.msra.mxu2 %v2523_v46  ;;  %v2370_v15 = vld [vmem:[#allocation10 + $0x18] sm:$0xff]  ;;  %v2520_v56 = vld [vmem:[#allocation10 + $0x150] sm:$0xff]  ;;  %v2598_v2 = vld [vmem:[#allocation10 + $0x200] sm:$0xff] }
 0x2cd   :  { %2482 = vmatpush.msra.mxu3 %v2373_v14  ;;  %v2521_v18 = vld [vmem:[#allocation10 + $0x158] sm:$0xff]  ;;  %v2367_v43 = vld [vmem:[#allocation10] sm:$0xff]  ;;  %2880 = vmatpush.msk.msrb.mxu0 %vm214_vm0, %v2384_v23 }
 0x2ce   :  { %2300 = vrot.lane.b32.xlu2 %v4320_v24, %s3177_s21  ;;  %2298 = vrot.lane.b32.xlu1 %v4322_v11, %s3177_s21  ;;  %v2518_v48 = vld [vmem:[#allocation10 + $0x140] sm:$0xff] }
 0x2cf   :  { %2296 = vrot.lane.b32.xlu0 %v4324_v1, %s3177_s21  ;;  %2429 = vmatpush.msrb.mxu1 %v2391_v62  ;;  %v2342_v62 = vsel %vm768_vm7, %v2339_v7, %v2341_v59 }
 0x2d0   :  { %2483 = vmatpush.msra.mxu3 %v2372_v9  ;;  %2553 = vmatpush.msra.mxu2 %v2522_v29 }
 0x2d1   :  { %2430 = vmatpush.msrb.mxu1 %v2390_v5  ;;  %2508 = vmatpush.msrb.mxu0 %v2383_v45  ;;  %v2592_v5 = vld [vmem:[#allocation10 + $0x1d0] sm:$0xff] }
 0x2d2   :  { %2484 = vmatpush.msra.mxu3 %v2371_v16  ;;  %2554 = vmatpush.msra.mxu2 %v2521_v18  ;;  %v2588_v16 = vld [vmem:[#allocation10 + $0x1b0] sm:$0xff] }
 0x2d3   :  { %2431 = vmatpush.msrb.mxu1 %v2389_v6 }
 0x2d4   :  { %2485 = vmatpush.msra.mxu3 %v2370_v15  ;;  %2555 = vmatpush.msra.mxu2 %v2520_v56 }
 0x2d5   :  { %2432 = vmatpush.msrb.mxu1 %v2388_v27  ;;  %v2345_v27 = vrot.slane %v2342_v62, 1 }
 0x2d6   :  { %2292 = vrot.lane.b32.xlu1 %v4333_v25, %s3177_s21  ;;  %2486 = vmatpush.msra.mxu3 %v2369_v28 }
 0x2d7   :  { %2294 = vrot.lane.b32.xlu0 %v4335_v0, %s3177_s21  ;;  %2433 = vmatpush.msrb.mxu1 %v2387_v54 }
 0x2d8   :  { %2487 = vmatpush.msra.mxu3 %v2368_v19  ;;  %2556 = vmatpush.msra.mxu2 %v2519_v4 }
 0x2d9   :  { %2434 = vmatpush.msrb.mxu1 %v2386_v8  ;;  %v2343_v8 = vsel %vm770_vm5, %v2339_v7, %v2341_v59  ;;  %v2530_v7 = vld [vmem:[#allocation10 + $0x1a0] sm:$0xff]  ;;  %vm2707_vm5 = vcmask 74752  }
 0x2da   :  { %2488 = vmatpush.msra.mxu3 %v2367_v43  ;;  %2557 = vmatpush.msra.mxu2 %v2518_v48  ;;  %v2344_v9 = vrot.slane %v2343_v8, 2  ;;  %v2531_v48 = vld [vmem:[#allocation10 + $0x1a8] sm:$0xf] }
 0x2db   :  { %2620 = vmatpush.msra.mxu1 %v2603_v17 }
 0x2dc   :  { %2558 = vmatpush.msra.mxu2 %v2517_v35 }
 0x2dd   :  { %2621 = vmatpush.msra.mxu1 %v2602_v39 }
 0x2de   :  { %2302 = vrot.lane.b32.xlu1 %v4341_v36, %s3177_s21  ;;  %2559 = vmatpush.msra.mxu2 %v2516_v30 }
 0x2df   :  { %2622 = vmatpush.msra.mxu1 %v2601_v12 }
 0x2e0   :  { %2560 = vmatpush.msra.mxu2 %v2515_v13 }
 0x2e1   :  { %2623 = vmatpush.msra.mxu1 %v2600_v38 }
 0x2e2   :  { %2561 = vmatpush.msra.mxu2 %v2514_v42 }
 0x2e3   :  { %2624 = vmatpush.msra.mxu1 %v2599_v47 }
 0x2e5   :  { %2625 = vmatpush.msra.mxu1 %v2598_v2 }
 0x2e7   :  { %2626 = vmatpush.msra.mxu1 %v2597_v26 }
 0x2e9   :  { %2627 = vmatpush.msra.mxu1 %v2596_v20 }
 0x2eb   :  { %2628 = vmatpush.msra.mxu1 %v2595_v31 }
 0x2ed   :  { %2629 = vmatpush.msra.mxu1 %v2594_v55 }
 0x2ef   :  { %2630 = vmatpush.msra.mxu1 %v2593_v44 }
 0x2f1   :  { %2631 = vmatpush.msra.mxu1 %v2592_v5 }
 0x2f3   :  { %2632 = vmatpush.msra.mxu1 %v2591_v34 }
 0x2f5   :  { %2633 = vmatpush.msra.mxu1 %v2590_v50 }
 0x2f7   :  { %2634 = vmatpush.msra.mxu1 %v2589_v37  ;;  %v2675_v37 = vld [vmem:[#allocation13 + $0x30] sm:$0x3] }
 0x2f8   :  { %2886 = vmatpush.msk.msrb.mxu3 %vm768_vm7, %v2675_v37 }
 0x2f9   :  { %2635 = vmatpush.msra.mxu1 %v2588_v16  ;;  %v2669_v16 = vld [vmem:[#allocation13] sm:$0xff] }
 0x31e   :  { %v2289_v58 = vpop.permute.xlu2 %2288 }
 0x31f   :  { %v2304_v63 = vrot.slane %v2289_v58, 2 }
 0x321   :  { %v2313_v57 = vsel %vm2312_vm2, %v2289_v58, %v2304_v63 }
 0x322   :  { %v2329_v54 = vmax.f32 %v4307_v3, %v2313_v57  ;;  %v2605_v57 = vld [vmem:[#allocation10 + $0x238] sm:$0xf] }
 0x324   :  { %v2351_v39 = vadd.f32 %v2342_v62, %v2329_v54 }
 0x326   :  { %v2359_v15 = vmax.f32 %v2351_v39, 0.0  ;;  %v2674_v39 = vld [vmem:[#allocation13 + $0x28] sm:$0xff] }
 0x327   :  { %2697 = vmatpush.msrb.mxu3 %v2674_v39 }
 0x328   :  { %v2301_v60 = vpop.permute.xlu2 %2300  ;;  %v2461_v33 = vperm.slane %v2359_v15, 0  ;;  %v2462_v13 = vperm.slane %v2359_v15, 2 }
 0x329   :  { %v2310_v6 = vrot.slane %v2301_v60, 2 }
 0x32b   :  { %v2319_v51 = vsel %vm2312_vm2, %v2301_v60, %v2310_v6 }
 0x32c   :  { %v2335_v3 = vmax.f32 %v4320_v24, %v2319_v51 }
 0x32e   :  { %v2357_v47 = vadd.f32 %v2344_v9, %v2335_v3 }
 0x330   :  { %v2365_v59 = vmax.f32 %v2357_v47, 0.0 }
 0x332   :  { %v2536_v44 = vperm.slane %v2365_v59, 0  ;;  %v2537_v50 = vperm.slane %v2365_v59, 2 }
 0x338   :  { %v2291_v52 = vpop.permute.xlu0 %2290 }
 0x339   :  { %v2305_v53 = vrot.slane %v2291_v52, 2 }
 0x33b   :  { %v2314_v21 = vsel %vm2312_vm2, %v2291_v52, %v2305_v53  ;;  %v2346_v52 = vrot.slane %v2344_v9, 1 }
 0x33c   :  { %v2330_v49 = vmax.f32 %v4311_v41, %v2314_v21 }
 0x33e   :  { %v2352_v61 = vadd.f32 %v2345_v27, %v2330_v49 }
 0x340   :  { %v2299_v10 = vpop.permute.xlu1 %2298  ;;  %v2360_v29 = vmax.f32 %v2352_v61, 0.0 }
 0x341   :  { %v2309_v40 = vrot.slane %v2299_v10, 2  ;;  %v2297_v17 = vpop.permute.xlu0 %2296 }
 0x342   :  { %v2308_v14 = vrot.slane %v2297_v17, 2  ;;  %v2406_v2 = vperm.slane %v2360_v29, 0 }
 0x343   :  { %v2318_v41 = vsel %vm2312_vm2, %v2299_v10, %v2309_v40 }
 0x344   :  { %v2334_v46 = vmax.f32 %v4322_v11, %v2318_v41  ;;  %v2317_v12 = vsel %vm2312_vm2, %v2297_v17, %v2308_v14  ;;  %v2407_v11 = vperm.slane %v2360_v29, 2  ;;  %v2673_v41 = vld [vmem:[#allocation13 + $0x20] sm:$0xff] }
 0x345   :  { %v2333_v38 = vmax.f32 %v4324_v1, %v2317_v12  ;;  %2698 = vmatpush.msrb.mxu3 %v2673_v41  ;;  %v2670_v12 = vld [vmem:[#allocation13 + $0x8] sm:$0xff] }
 0x346   :  { %v2356_v32 = vadd.f32 %v2345_v27, %v2334_v46  ;;  %v2604_v27 = vld [vmem:[#allocation10 + $0x230] sm:$0xff] }
 0x347   :  { %v2355_v18 = vadd.f32 %v2342_v62, %v2333_v38  ;;  %v2671_v46 = vld [vmem:[#allocation13 + $0x10] sm:$0xff] }
 0x348   :  { %v2364_v28 = vmax.f32 %v2356_v32, 0.0  ;;  %v2293_v56 = vpop.permute.xlu1 %2292 }
 0x349   :  { %v2363_v22 = vmax.f32 %v2355_v18, 0.0  ;;  %v2306_v58 = vrot.slane %v2293_v56, 2  ;;  %v2295_v24 = vpop.permute.xlu0 %2294 }
 0x34a   :  { %v2408_v19 = vperm.slane %v2364_v28, 0  ;;  %v2409_v4 = vperm.slane %v2364_v28, 2  ;;  %v2307_v26 = vrot.slane %v2295_v24, 2 }
 0x34b   :  { %v2463_v43 = vperm.slane %v2363_v22, 0  ;;  %v2315_v1 = vsel %vm2312_vm2, %v2293_v56, %v2306_v58 }
 0x34c   :  { %v2331_v20 = vmax.f32 %v4333_v25, %v2315_v1  ;;  %v2316_v23 = vsel %vm2312_vm2, %v2295_v24, %v2307_v26  ;;  %v2410_v35 = vsel %vm1339_vm9, %v2408_v19, %v2406_v2  ;;  %v2411_v31 = vsel %vm1339_vm9, %v2409_v4, %v2407_v11  ;;  %v2908_v19 = vld [vmem:[#allocation11] ss:$0 sm:$0xff] }
 0x34d   :  { %2435 = vmatmul.f32.vlgmr.msrb.gmra.mxu1 %v2410_v35  ;;  %2879 = vmatmul.msk.f32.vlgmr.msra.gmra.mxu0 %vm2413_vm3, %v2411_v31  ;;  %v2465_v30 = vsel %vm1339_vm9, %v2463_v43, %v2461_v33  ;;  %v2332_v55 = vmax.f32 %v4335_v0, %v2316_v23  ;;  %v2464_v25 = vperm.slane %v2363_v22, 2  ;;  %v2909_v43 = vld [vmem:[#allocation14] ss:$0 sm:$0xff] }
 0x34e   :  { %v2353_v63 = vadd.f32 %v2344_v9, %v2331_v20  ;;  %2489 = vmatmul.f32.vlgmr.msra.gmra.mxu3 %v2465_v30  ;;  %2882 = vmatpush.msk.msra.mxu0 %vm214_vm0, %v2531_v48  ;;  %v2672_v9 = vld [vmem:[#allocation13 + $0x18] sm:$0xff] }
 0x34f   :  { %v2354_v42 = vadd.f32 %v2346_v52, %v2332_v55  ;;  %v2466_v6 = vsel %vm1339_vm9, %v2464_v25, %v2462_v13  ;;  %2699 = vmatpush.msrb.mxu3 %v2672_v9 }
 0x350   :  { %v2361_v53 = vmax.f32 %v2353_v63, 0.0  ;;  %v2303_v60 = vpop.permute.xlu1 %2302  ;;  %2581 = vmatpush.msra.mxu0 %v2530_v7 }
 0x351   :  { %v2311_v45 = vrot.slane %v2303_v60, 2  ;;  %v2362_v49 = vmax.f32 %v2354_v42, 0.0  ;;  %2700 = vmatpush.msrb.mxu3 %v2671_v46 }
 0x352   :  { %v2534_v21 = vperm.slane %v2361_v53, 0  ;;  %v2535_v54 = vperm.slane %v2361_v53, 2 }
 0x353   :  { %v2320_v62 = vsel %vm2312_vm2, %v2303_v60, %v2311_v45  ;;  %v2608_v8 = vperm.slane %v2362_v49, 0  ;;  %v2609_v17 = vperm.slane %v2362_v49, 2  ;;  %2701 = vmatpush.msrb.mxu3 %v2670_v12 }
 0x354   :  { %v2336_v5 = vmax.f32 %v4341_v36, %v2320_v62  ;;  %v2538_v0 = vsel %vm1339_vm9, %v2536_v44, %v2534_v21  ;;  %v2539_v36 = vsel %vm1339_vm9, %v2537_v50, %v2535_v54 }
 0x355   :  { %2881 = vmatmul.msk.f32.vlgmr.msrb.gmra.mxu0 %vm2413_vm3, %v2466_v6  ;;  %2562 = vmatmul.f32.vlgmr.msra.gmra.mxu2 %v2538_v0 }
 0x356   :  { %v2358_v34 = vadd.f32 %v2346_v52, %v2336_v5  ;;  %2884 = vmatpush.msk.msrb.mxu0 %vm214_vm0, %v2605_v57  ;;  %2702 = vmatpush.msrb.mxu3 %v2669_v16  ;;  %vm2680_vm0 = vcmask 408576  }
 0x358   :  { %v2366_v10 = vmax.f32 %v2358_v34, 0.0  ;;  %2655 = vmatpush.msrb.mxu0 %v2604_v27 }
 0x35a   :  { %v2610_v51 = vperm.slane %v2366_v10, 0  ;;  %v2611_v40 = vperm.slane %v2366_v10, 2 }
 0x35c   :  { %v2612_v61 = vsel %vm1339_vm9, %v2610_v51, %v2608_v8  ;;  %v2613_v14 = vsel %vm1339_vm9, %v2611_v40, %v2609_v17 }
 0x35d   :  { %2883 = vmatmul.msk.f32.vlgmr.msra.gmra.mxu0 %vm2413_vm3, %v2539_v36  ;;  %2636 = vmatmul.f32.vlgmr.msra.gmra.mxu1 %v2612_v61 }
 0x365   :  { %2885 = vmatmul.msk.f32.vlgmr.msrb.gmra.mxu0 %vm2413_vm3, %v2613_v14 }
 0x3ca   :  { %v2456_v3 = vpop.f32.mrf.mxu0  ;;  %v2436_v38 = vpop.f32.mrf.mxu1 }
 0x3cb   :  { %v2457_v18 = vadd.f32 %v2456_v3, %v2436_v38 }
 0x3d1   :  { %v2490_v32 = vpop.f32.mrf.mxu3 }
 0x3d2   :  { %v2510_v29 = vpop.f32.mrf.mxu0  ;;  %v2491_v47 = vadd.f32 %v2490_v32, %v2457_v18 }
 0x3d4   :  { %v2511_v2 = vadd.f32 %v2510_v29, %v2491_v47 }
 0x3d8   :  { %v2563_v28 = vpop.f32.mrf.mxu2 }
 0x3da   :  { %v2583_v15 = vpop.f32.mrf.mxu0  ;;  %v2637_v22 = vpop.f32.mrf.mxu1 }
 0x3db   :  { %v2584_v56 = vadd.f32 %v2583_v15, %v2563_v28 }
 0x3dd   :  { %v2586_v24 = vadd.f32 %v2584_v56, %v2511_v2 }
 0x3e2   :  { %v2657_v58 = vpop.f32.mrf.mxu0 }
 0x3e3   :  { %v2658_v11 = vadd.f32 %v2657_v58, %v2637_v22 }
 0x3e5   :  { %v2660_v4 = vadd.f32 %v2658_v11, %v2586_v24 }
 0x3e7   :  { %v2665_v26 = vadd.f32 %v2908_v19, %v2660_v4 }
 0x3e9   :  { %v2666_v33 = vmax.f32 %v2665_v26, 0.0 }
 0x3eb   :  { %2887 = vmatmul.msk.f32.vlgmr.msrb.gmra.mxu3 %vm2680_vm0, %v2666_v33  ;;  %2668 = vst.msk [vmem:[#allocation17] sm:$0x3] %vm2667_vm4, %v2666_v33 }
 0x3ec   :  { %2730 = dma.vmem_to_hbm [thread:$0]  %s2726_s23, 32, %s2728_s25, [#allocation18]  }
 0x46e   :  { %v2704_v1 = vpop.f32.mrf.mxu3 }
 0x46f   :  { %v2705_v48 = vadd.f32 %v2909_v43, %v2704_v1 }
 0x471   :  { %2708 = vst.msk [vmem:[#allocation16] sm:$0x3] %vm2707_vm5, %v2705_v48 }
 0x472   :  { %2719 = dma.vmem_to_hbm [thread:$0]  %s2715_s26, 32, %s2717_s28, [#allocation4]  }
 0x473   :  { %3160 = dma.done.wait [#allocation4], 32  }
 0x474   :  { %3161 = vsyncadd [#allocation4], 4294967264 }
 0x475   :  { %3162 = dma.done.wait [#allocation18], 32  }
 0x476   :  { %3163 = vsyncadd [#allocation18], 4294967264 }
 0x477   :  { %2739 = vsyncpa [#allocation3], 1 }
 0x478   :  { %2740 = vsyncpa [#allocation6], 1 }
 0x479   :  { %2741 = vsyncpa [#allocation9], 1 }
 0x47a   :  { %2742 = vsyncpa [#allocation12], 1 }
 0x47b   :  { %2743 = vsyncpa [#allocation15], 1 }
 0x47c   :  { %2744 = vsyncpa [#allocation4], 1 }
 0x47d   :  { %2745 = vsyncpa [#allocation18], 1 }

</bundles_post_ra>
